<compile_context>
chip_gen: v7x
topology: tpu7x:2x2x1
jax: 0.10.0
libtpu: 0.0.40
codegen_flags: <defaults>
</compile_context>

<pallas_src>
import numpy as np
import jax
import jax.numpy as jnp
from jax.experimental import pallas as pl
from jax.experimental.pallas import tpu as pltpu


def _round_up(x, m):
    return (x + m - 1) // m * m


# ----------------------------- Pallas kernels -------------------------------

def _encoder_kernel(x_ref, w1, s1, t1, w2, s2, t2, w3, s3, t3,
                    wl, sl, tl, o_ref, acc_ref):
    """PointNetfeat (3->64->128->1024, max over points) + Linear + BN + ReLU.

    Grid: (B, N // TN).  Axis 1 is a max-reduction over point tiles; the
    bottleneck Linear is fused into the finalize step of the reduction.
    """
    j = pl.program_id(1)

    @pl.when(j == 0)
    def _():
        acc_ref[...] = jnp.full(acc_ref.shape, -jnp.inf, acc_ref.dtype)

    x = x_ref[0]                                                  # (TN, 3) f32
    h = jnp.maximum(
        jnp.dot(x, w1[...], preferred_element_type=jnp.float32)
        * s1[...] + t1[...], 0.0)
    h = jnp.maximum(
        jnp.dot(h.astype(jnp.bfloat16), w2[...],
                preferred_element_type=jnp.float32) * s2[...] + t2[...], 0.0)
    h = (jnp.dot(h.astype(jnp.bfloat16), w3[...],
                 preferred_element_type=jnp.float32) * s3[...] + t3[...])
    acc_ref[...] = jnp.maximum(acc_ref[...], jnp.max(h, axis=0, keepdims=True))

    @pl.when(j == pl.num_programs(1) - 1)
    def _():
        g = acc_ref[...]                                          # (1, 1024)
        feat = jnp.maximum(
            jnp.dot(g, wl[...], preferred_element_type=jnp.float32)
            * sl[...] + tl[...], 0.0)
        o_ref[0] = feat.astype(o_ref.dtype)


def _decoder_kernel(grid_ref, fb_ref, w1g, s1, w2, s2, t2, w3, s3, t3,
                    w4, b4, o_ref):
    """PointGenCon: 4 pointwise convs (+BN/ReLU x3, then 2*tanh).

    Channels-on-sublanes layout: activations are (C, TN), weights (Cout, Cin),
    so the final (3, TN) output block is lane-dense.  The concat([grid, feat])
    of the PyTorch code is realized as (W1_grid @ grid) + per-batch fused bias
    fb = s1 * (feat @ W1_feat) + t1, precomputed in the wrapper.
    Grid: (P, B, Np // TN), fully parallel.
    """
    g = grid_ref[0, 0]                                            # (3, TN) f32
    h = jnp.dot(w1g[0], g, preferred_element_type=jnp.float32)    # (db, TN)
    h = jnp.maximum(h * s1[0] + fb_ref[0, 0], 0.0)
    h = jnp.maximum(
        jnp.dot(w2[0], h.astype(jnp.bfloat16),
                preferred_element_type=jnp.float32) * s2[0] + t2[0], 0.0)
    h = jnp.maximum(
        jnp.dot(w3[0], h.astype(jnp.bfloat16),
                preferred_element_type=jnp.float32) * s3[0] + t3[0], 0.0)
    out = 2.0 * jnp.tanh(
        jnp.dot(w4[0], h, preferred_element_type=jnp.float32) + b4[0])
    o_ref[0] = out.astype(o_ref.dtype)                            # (3, TN)


# ------------------------------ wrappers -------------------------------------

def encoder_forward(x_bnc, enc, tn=512):
    """x_bnc: (B, N, 3) points-major. Returns (B, bottleneck) feature."""
    B, N, _ = x_bnc.shape
    tn_e = min(tn, _round_up(N, 128))
    n_pad = _round_up(N, tn_e)
    if n_pad != N:
        # Edge-replicate points: duplicates do not change the max-pool.
        x_bnc = jnp.pad(x_bnc, ((0, 0), (0, n_pad - N), (0, 0)), mode="edge")

    cfeat = enc["w3"].shape[1]                 # 1024
    bsize = enc["wl"].shape[1]
    bpad = _round_up(bsize, 128)               # lane-dense feature width
    wl, sl, tl = enc["wl"], enc["sl"], enc["tl"]
    if bpad != bsize:
        wl = jnp.pad(wl, ((0, 0), (0, bpad - bsize)))
        sl = jnp.pad(sl, ((0, 0), (0, bpad - bsize)))
        tl = jnp.pad(tl, ((0, 0), (0, bpad - bsize)))

    weights = [enc["w1"], enc["s1"], enc["t1"], enc["w2"], enc["s2"], enc["t2"],
               enc["w3"], enc["s3"], enc["t3"], wl, sl, tl]

    def wspec(a):
        nd = a.ndim
        return pl.BlockSpec(a.shape, lambda b, j: (0,) * nd)

    out = pl.pallas_call(
        _encoder_kernel,
        out_shape=jax.ShapeDtypeStruct((B, 1, bpad), jnp.float32),
        grid=(B, n_pad // tn_e),
        in_specs=[pl.BlockSpec((1, tn_e, 3), lambda b, j: (b, j, 0))]
                 + [wspec(w) for w in weights],
        out_specs=pl.BlockSpec((1, 1, bpad), lambda b, j: (b, 0, 0)),
        scratch_shapes=[pltpu.VMEM((1, cfeat), jnp.float32)],
        compiler_params=pltpu.CompilerParams(
            dimension_semantics=("parallel", "arbitrary")),
    )(x_bnc, *weights)
    return out[:, 0, :bsize]                   # (B, bottleneck)


def decoder_forward(grids, feat, decs, tn=512):
    """grids: (P, B, 3, Np) stacked sphere samples (PyTorch channel layout).
    feat: (B, bottleneck).  Returns (B, 3, P * Np)."""
    P, B, _, Np = grids.shape
    db = decs[0]["s1"].shape[0]
    tn_d = min(tn, _round_up(Np, 128))
    np_pad = _round_up(Np, tn_d)
    if np_pad != Np:
        grids = jnp.pad(grids, ((0, 0), (0, 0), (0, 0), (0, np_pad - Np)))
    nblk = np_pad // tn_d

    def stack(k):
        return jnp.stack([d[k] for d in decs])

    w1g, s1, t1 = stack("w1gT"), stack("s1"), stack("t1")
    w2, s2, t2 = stack("w2T"), stack("s2"), stack("t2")
    w3, s3, t3 = stack("w3T"), stack("s3"), stack("t3")
    w4, b4 = stack("w4T"), stack("b4")
    w1f = stack("w1f")                                    # (P, bsize, db)

    # Hoisted grid-invariant work: fused bias fb = s1 * (feat @ W1_feat) + t1.
    fb = jnp.einsum("bk,pkd->pbd", feat, w1f)
    fb = fb * s1[:, None, :, 0] + t1[:, None, :, 0]       # (P, B, db)
    fb = fb[..., None]                                    # (P, B, db, 1)

    def wspec(a):
        nd = a.ndim
        return pl.BlockSpec((1,) + a.shape[1:],
                            lambda p, b, j: (p,) + (0,) * (nd - 1))

    weights = [w1g, s1, w2, s2, t2, w3, s3, t3, w4, b4]
    out = pl.pallas_call(
        _decoder_kernel,
        out_shape=jax.ShapeDtypeStruct((B, 3, P * np_pad), jnp.float32),
        grid=(P, B, nblk),
        in_specs=[pl.BlockSpec((1, 1, 3, tn_d), lambda p, b, j: (p, b, 0, j)),
                  pl.BlockSpec((1, 1, db, 1), lambda p, b, j: (p, b, 0, 0))]
                 + [wspec(w) for w in weights],
        out_specs=pl.BlockSpec((1, 3, tn_d),
                               lambda p, b, j: (b, 0, p * nblk + j)),
        compiler_params=pltpu.CompilerParams(
            dimension_semantics=("parallel", "parallel", "parallel")),
    )(grids, fb, *weights)

    if np_pad != Np:
        out = out.reshape(B, 3, P, np_pad)[:, :, :, :Np].reshape(B, 3, P * Np)
    return out


def ae_atlasnet_sphere_forward(x_bcn, enc, decs, grids, tn=512):
    """x_bcn: (B, 3, num_points) PyTorch layout.
    grids: list of (B, 3, num_points // nb_primitives) unit-sphere samples.
    Returns (B, 3, num_points)."""
    x_bnc = jnp.transpose(x_bcn, (0, 2, 1))               # (B, N, 3) small glue
    feat = encoder_forward(x_bnc, enc, tn=tn)             # (B, bottleneck)
    return decoder_forward(jnp.stack(grids), feat, decs, tn=tn)


# -------------------------- parameter construction ---------------------------

def _linear_init(key, cin, cout):
    kw, kb = jax.random.split(key)
    bound = 1.0 / np.sqrt(cin)
    w = jax.random.uniform(kw, (cin, cout), jnp.float32, -bound, bound)
    b = jax.random.uniform(kb, (cout,), jnp.float32, -bound, bound)
    return w, b


def _bn_init(key, c):
    k1, k2, k3, k4 = jax.random.split(key, 4)
    gamma = 1.0 + 0.1 * jax.random.normal(k1, (c,), jnp.float32)
    beta = 0.1 * jax.random.normal(k2, (c,), jnp.float32)
    mean = 0.1 * jax.random.normal(k3, (c,), jnp.float32)
    var = 1.0 + 0.1 * jax.random.uniform(k4, (c,), jnp.float32)
    return gamma, beta, mean, var


def _fold_bn(gamma, beta, mean, var, conv_bias, eps=1e-5):
    s = gamma * jax.lax.rsqrt(var + eps)
    t = beta - mean * s + conv_bias * s
    return s, t


def make_params(key, bottleneck_size, nb_primitives):
    keys = jax.random.split(key, 9)
    enc = {}
    for name, kin, kbn, (cin, cout), bf16 in (
            ("1", keys[0], keys[1], (3, 64), False),
            ("2", keys[2], keys[3], (64, 128), True),
            ("3", keys[4], keys[5], (128, 1024), True),
            ("l", keys[6], keys[7], (1024, bottleneck_size), False)):
        w, b = _linear_init(kin, cin, cout)
        g, be, m, v = _bn_init(kbn, cout)
        s, t = _fold_bn(g, be, m, v, b)
        enc["w" + name] = w.astype(jnp.bfloat16) if bf16 else w
        enc["s" + name], enc["t" + name] = s[None, :], t[None, :]

    db = 3 + bottleneck_size
    decs = []
    for dkey in jax.random.split(keys[8], nb_primitives):
        dk = jax.random.split(dkey, 8)
        d = {}
        w1, b1 = _linear_init(dk[0], db, db)
        g, be, m, v = _bn_init(dk[1], db)
        s1, t1 = _fold_bn(g, be, m, v, b1)
        d["w1gT"] = w1[:3].T                                  # (db, 3)   f32
        d["w1f"] = w1[3:]                                     # (bsz, db) f32
        d["s1"], d["t1"] = s1[:, None], t1[:, None]
        w2, b2 = _linear_init(dk[2], db, db // 2)
        g, be, m, v = _bn_init(dk[3], db // 2)
        s2, t2 = _fold_bn(g, be, m, v, b2)
        d["w2T"] = w2.T.astype(jnp.bfloat16)                  # (db//2, db)
        d["s2"], d["t2"] = s2[:, None], t2[:, None]
        w3, b3 = _linear_init(dk[4], db // 2, db // 4)
        g, be, m, v = _bn_init(dk[5], db // 4)
        s3, t3 = _fold_bn(g, be, m, v, b3)
        d["w3T"] = w3.T.astype(jnp.bfloat16)                  # (db//4, db//2)
        d["s3"], d["t3"] = s3[:, None], t3[:, None]
        w4, b4 = _linear_init(dk[6], db // 4, 3)
        d["w4T"] = w4.T                                       # (3, db//4) f32
        d["b4"] = b4[:, None]                                 # (3, 1)
        decs.append(d)
    return enc, decs


# ------------------------------- reference -----------------------------------

def ref_forward(x_bcn, enc, decs, grids):
    f32 = lambda a: a.astype(jnp.float32)
    x = jnp.transpose(x_bcn, (0, 2, 1))
    h = jnp.maximum((x @ f32(enc["w1"])) * enc["s1"] + enc["t1"], 0.0)
    h = jnp.maximum((h @ f32(enc["w2"])) * enc["s2"] + enc["t2"], 0.0)
    h = (h @ f32(enc["w3"])) * enc["s3"] + enc["t3"]
    g = jnp.max(h, axis=1)
    feat = jnp.maximum((g @ f32(enc["wl"])) * enc["sl"] + enc["tl"], 0.0)
    outs = []
    for d, gr in zip(decs, grids):
        y = (jnp.einsum("ck,bkn->bcn", f32(d["w1gT"]), gr)
             + (feat @ d["w1f"])[:, :, None])
        y = jnp.maximum(y * d["s1"][None] + d["t1"][None], 0.0)
        y = jnp.maximum(jnp.einsum("ck,bkn->bcn", f32(d["w2T"]), y)
                        * d["s2"][None] + d["t2"][None], 0.0)
        y = jnp.maximum(jnp.einsum("ck,bkn->bcn", f32(d["w3T"]), y)
                        * d["s3"][None] + d["t3"][None], 0.0)
        outs.append(2.0 * jnp.tanh(
            jnp.einsum("ck,bkn->bcn", f32(d["w4T"]), y) + d["b4"][None]))
    return jnp.concatenate(outs, axis=2)


# --------------------------------- main ---------------------------------------

if __name__ == "__main__":
    B, num_points, bottleneck, nb_prim = 2, 256, 125, 2   # db = 3 + 125 = 128
    key = jax.random.PRNGKey(0)
    kparam, kx, kgrid = jax.random.split(key, 3)

    enc, decs = make_params(kparam, bottleneck, nb_prim)
    x = jax.random.normal(kx, (B, 3, num_points), jnp.float32)  # PyTorch NCW

    np_per = num_points // nb_prim
    grids = []
    for gk in jax.random.split(kgrid, nb_prim):
        g = jax.random.normal(gk, (B, 3, np_per), jnp.float32)
        grids.append(g / jnp.sqrt(jnp.sum(g * g, axis=1, keepdims=True)))

    out = ae_atlasnet_sphere_forward(x, enc, decs, grids)
    out = jax.block_until_ready(out)

    ref = ref_forward(x, enc, decs, grids)
    assert out.shape == (B, 3, num_points)
    assert bool(jnp.all(jnp.isfinite(out)))
    assert bool(jnp.allclose(out, ref, atol=3e-2, rtol=3e-2))
    print("KERNEL_OK")
</pallas_src>

<mosaic_0001>
module attributes {stable_mosaic.version = 11 : i64} {
  func.func @_encoder_kernel(%arg0: i32, %arg1: i32, %arg2: memref<1x256x3xf32, #tpu.memory_space<vmem>>, %arg3: memref<3x64xf32, #tpu.memory_space<vmem>>, %arg4: memref<1x64xf32, #tpu.memory_space<vmem>>, %arg5: memref<1x64xf32, #tpu.memory_space<vmem>>, %arg6: memref<64x128xbf16, #tpu.memory_space<vmem>>, %arg7: memref<1x128xf32, #tpu.memory_space<vmem>>, %arg8: memref<1x128xf32, #tpu.memory_space<vmem>>, %arg9: memref<128x1024xbf16, #tpu.memory_space<vmem>>, %arg10: memref<1x1024xf32, #tpu.memory_space<vmem>>, %arg11: memref<1x1024xf32, #tpu.memory_space<vmem>>, %arg12: memref<1024x128xf32, #tpu.memory_space<vmem>>, %arg13: memref<1x128xf32, #tpu.memory_space<vmem>>, %arg14: memref<1x128xf32, #tpu.memory_space<vmem>>, %arg15: memref<1x1x128xf32, #tpu.memory_space<vmem>>, %arg16: memref<1x1024xf32, #tpu.memory_space<vmem>>) attributes {dimension_semantics = [#tpu.dimension_semantics<parallel>, #tpu.dimension_semantics<arbitrary>], iteration_bounds = array<i64: 2, 1>, scalar_prefetch = 0 : i64, scratch_operands = 1 : i64, tpu.core_type = #tpu.core_type<tc>, window_params = [{transform_indices = @transform_0, window_bounds = array<i64: 1, 256, 3>}, {pipeline_mode = #tpu.pipeline_mode<synchronous>, transform_indices = @transform_1, window_bounds = array<i64: 3, 64>}, {pipeline_mode = #tpu.pipeline_mode<synchronous>, transform_indices = @transform_2, window_bounds = array<i64: 1, 64>}, {pipeline_mode = #tpu.pipeline_mode<synchronous>, transform_indices = @transform_3, window_bounds = array<i64: 1, 64>}, {pipeline_mode = #tpu.pipeline_mode<synchronous>, transform_indices = @transform_4, window_bounds = array<i64: 64, 128>}, {pipeline_mode = #tpu.pipeline_mode<synchronous>, transform_indices = @transform_5, window_bounds = array<i64: 1, 128>}, {pipeline_mode = #tpu.pipeline_mode<synchronous>, transform_indices = @transform_6, window_bounds = array<i64: 1, 128>}, {pipeline_mode = #tpu.pipeline_mode<synchronous>, transform_indices = @transform_7, window_bounds = array<i64: 128, 1024>}, {pipeline_mode = #tpu.pipeline_mode<synchronous>, transform_indices = @transform_8, window_bounds = array<i64: 1, 1024>}, {pipeline_mode = #tpu.pipeline_mode<synchronous>, transform_indices = @transform_9, window_bounds = array<i64: 1, 1024>}, {pipeline_mode = #tpu.pipeline_mode<synchronous>, transform_indices = @transform_10, window_bounds = array<i64: 1024, 128>}, {pipeline_mode = #tpu.pipeline_mode<synchronous>, transform_indices = @transform_11, window_bounds = array<i64: 1, 128>}, {pipeline_mode = #tpu.pipeline_mode<synchronous>, transform_indices = @transform_12, window_bounds = array<i64: 1, 128>}, {transform_indices = @transform_13, window_bounds = array<i64: 1, 1, 128>}]} {
    %c0_i32 = arith.constant 0 : i32
    %0 = arith.cmpi eq, %arg1, %c0_i32 : i32
    %1 = arith.extui %0 : i1 to i32
    %c0_i32_0 = arith.constant 0 : i32
    %2 = arith.cmpi ne, %1, %c0_i32_0 : i32
    scf.if %2 {
      %cst_32 = arith.constant 0xFF800000 : f32
      %43 = vector.broadcast %cst_32 : f32 to vector<1x1024xf32>
      %c0_33 = arith.constant 0 : index
      %c0_34 = arith.constant 0 : index
      %44 = vector.load %arg16[%c0_33, %c0_34] : memref<1x1024xf32, #tpu.memory_space<vmem>>, vector<1x1024xf32>
      tpu.vector_store %arg16[%c0_33, %c0_34], %43 {strides = array<i32>} : memref<1x1024xf32, #tpu.memory_space<vmem>>, vector<1x1024xf32>,
    } else {
    }
    %c0 = arith.constant 0 : index
    %c0_1 = arith.constant 0 : index
    %c0_2 = arith.constant 0 : index
    %3 = vector.load %arg2[%c0, %c0_1, %c0_2] : memref<1x256x3xf32, #tpu.memory_space<vmem>>, vector<1x256x3xf32>
    %4 = vector.shape_cast %3 : vector<1x256x3xf32> to vector<256x3xf32>
    %c0_3 = arith.constant 0 : index
    %c0_4 = arith.constant 0 : index
    %5 = vector.load %arg3[%c0_3, %c0_4] : memref<3x64xf32, #tpu.memory_space<vmem>>, vector<3x64xf32>
    %cst = arith.constant dense<0.000000e+00> : vector<256x64xf32>
    %6 = tpu.matmul %4, %5, %cst {dimension_numbers = #tpu.dot_dimension_numbers<[1], [0], [0], [1], [0, 0, 1, 1], [], []>} : vector<256x3xf32>, vector<3x64xf32>, vector<256x64xf32> -> vector<256x64xf32>
    %c0_5 = arith.constant 0 : index
    %c0_6 = arith.constant 0 : index
    %7 = vector.load %arg4[%c0_5, %c0_6] : memref<1x64xf32, #tpu.memory_space<vmem>>, vector<1x64xf32>
    %8 = vector.broadcast %7 : vector<1x64xf32> to vector<256x64xf32>
    %9 = arith.mulf %6, %8 : vector<256x64xf32>
    %c0_7 = arith.constant 0 : index
    %c0_8 = arith.constant 0 : index
    %10 = vector.load %arg5[%c0_7, %c0_8] : memref<1x64xf32, #tpu.memory_space<vmem>>, vector<1x64xf32>
    %11 = vector.broadcast %10 : vector<1x64xf32> to vector<256x64xf32>
    %12 = arith.addf %9, %11 : vector<256x64xf32>
    %cst_9 = arith.constant 0.000000e+00 : f32
    %13 = vector.broadcast %cst_9 : f32 to vector<256x64xf32>
    %14 = arith.maximumf %12, %13 : vector<256x64xf32>
    %15 = arith.truncf %14 : vector<256x64xf32> to vector<256x64xbf16>
    %c0_10 = arith.constant 0 : index
    %c0_11 = arith.constant 0 : index
    %16 = vector.load %arg6[%c0_10, %c0_11] : memref<64x128xbf16, #tpu.memory_space<vmem>>, vector<64x128xbf16>
    %cst_12 = arith.constant dense<0.000000e+00> : vector<256x128xf32>
    %17 = tpu.matmul %15, %16, %cst_12 {dimension_numbers = #tpu.dot_dimension_numbers<[1], [0], [0], [1], [0, 0, 1, 1], [], []>} : vector<256x64xbf16>, vector<64x128xbf16>, vector<256x128xf32> -> vector<256x128xf32>
    %c0_13 = arith.constant 0 : index
    %c0_14 = arith.constant 0 : index
    %18 = vector.load %arg7[%c0_13, %c0_14] : memref<1x128xf32, #tpu.memory_space<vmem>>, vector<1x128xf32>
    %19 = vector.broadcast %18 : vector<1x128xf32> to vector<256x128xf32>
    %20 = arith.mulf %17, %19 : vector<256x128xf32>
    %c0_15 = arith.constant 0 : index
    %c0_16 = arith.constant 0 : index
    %21 = vector.load %arg8[%c0_15, %c0_16] : memref<1x128xf32, #tpu.memory_space<vmem>>, vector<1x128xf32>
    %22 = vector.broadcast %21 : vector<1x128xf32> to vector<256x128xf32>
    %23 = arith.addf %20, %22 : vector<256x128xf32>
    %cst_17 = arith.constant 0.000000e+00 : f32
    %24 = vector.broadcast %cst_17 : f32 to vector<256x128xf32>
    %25 = arith.maximumf %23, %24 : vector<256x128xf32>
    %26 = arith.truncf %25 : vector<256x128xf32> to vector<256x128xbf16>
    %c0_18 = arith.constant 0 : index
    %c0_19 = arith.constant 0 : index
    %27 = vector.load %arg9[%c0_18, %c0_19] : memref<128x1024xbf16, #tpu.memory_space<vmem>>, vector<128x1024xbf16>
    %cst_20 = arith.constant dense<0.000000e+00> : vector<256x1024xf32>
    %28 = tpu.matmul %26, %27, %cst_20 {dimension_numbers = #tpu.dot_dimension_numbers<[1], [0], [0], [1], [0, 0, 1, 1], [], []>} : vector<256x128xbf16>, vector<128x1024xbf16>, vector<256x1024xf32> -> vector<256x1024xf32>
    %c0_21 = arith.constant 0 : index
    %c0_22 = arith.constant 0 : index
    %29 = vector.load %arg10[%c0_21, %c0_22] : memref<1x1024xf32, #tpu.memory_space<vmem>>, vector<1x1024xf32>
    %30 = vector.broadcast %29 : vector<1x1024xf32> to vector<256x1024xf32>
    %31 = arith.mulf %28, %30 : vector<256x1024xf32>
    %c0_23 = arith.constant 0 : index
    %c0_24 = arith.constant 0 : index
    %32 = vector.load %arg11[%c0_23, %c0_24] : memref<1x1024xf32, #tpu.memory_space<vmem>>, vector<1x1024xf32>
    %33 = vector.broadcast %32 : vector<1x1024xf32> to vector<256x1024xf32>
    %34 = arith.addf %31, %33 : vector<256x1024xf32>
    %c0_25 = arith.constant 0 : index
    %c0_26 = arith.constant 0 : index
    %35 = vector.load %arg16[%c0_25, %c0_26] : memref<1x1024xf32, #tpu.memory_space<vmem>>, vector<1x1024xf32>
    %cst_27 = arith.constant dense<0xFF800000> : vector<1024xf32>
    %36 = vector.multi_reduction <maximumf>, %34, %cst_27 [0] : vector<256x1024xf32> to vector<1024xf32>
    %37 = vector.shape_cast %36 : vector<1024xf32> to vector<1x1024xf32>
    %38 = arith.maximumf %35, %37 : vector<1x1024xf32>
    %c0_28 = arith.constant 0 : index
    %c0_29 = arith.constant 0 : index
    %39 = vector.load %arg16[%c0_28, %c0_29] : memref<1x1024xf32, #tpu.memory_space<vmem>>, vector<1x1024xf32>
    tpu.vector_store %arg16[%c0_28, %c0_29], %38 {strides = array<i32>} : memref<1x1024xf32, #tpu.memory_space<vmem>>, vector<1x1024xf32>,
    %c0_i32_30 = arith.constant 0 : i32
    %40 = arith.cmpi eq, %arg1, %c0_i32_30 : i32
    %41 = arith.extui %40 : i1 to i32
    %c0_i32_31 = arith.constant 0 : i32
    %42 = arith.cmpi ne, %41, %c0_i32_31 : i32
    scf.if %42 {
      %c0_32 = arith.constant 0 : index
      %c0_33 = arith.constant 0 : index
      %43 = vector.load %arg16[%c0_32, %c0_33] : memref<1x1024xf32, #tpu.memory_space<vmem>>, vector<1x1024xf32>
      %c0_34 = arith.constant 0 : index
      %c0_35 = arith.constant 0 : index
      %44 = vector.load %arg12[%c0_34, %c0_35] : memref<1024x128xf32, #tpu.memory_space<vmem>>, vector<1024x128xf32>
      %cst_36 = arith.constant dense<0.000000e+00> : vector<1x128xf32>
      %45 = tpu.matmul %43, %44, %cst_36 {dimension_numbers = #tpu.dot_dimension_numbers<[1], [0], [0], [1], [0, 0, 1, 1], [], []>} : vector<1x1024xf32>, vector<1024x128xf32>, vector<1x128xf32> -> vector<1x128xf32>
      %c0_37 = arith.constant 0 : index
      %c0_38 = arith.constant 0 : index
      %46 = vector.load %arg13[%c0_37, %c0_38] : memref<1x128xf32, #tpu.memory_space<vmem>>, vector<1x128xf32>
      %47 = arith.mulf %45, %46 : vector<1x128xf32>
      %c0_39 = arith.constant 0 : index
      %c0_40 = arith.constant 0 : index
      %48 = vector.load %arg14[%c0_39, %c0_40] : memref<1x128xf32, #tpu.memory_space<vmem>>, vector<1x128xf32>
      %49 = arith.addf %47, %48 : vector<1x128xf32>
      %cst_41 = arith.constant 0.000000e+00 : f32
      %50 = vector.broadcast %cst_41 : f32 to vector<1x128xf32>
      %51 = arith.maximumf %49, %50 : vector<1x128xf32>
      %c0_42 = arith.constant 0 : index
      %c0_43 = arith.constant 0 : index
      %c0_44 = arith.constant 0 : index
      %52 = vector.load %arg15[%c0_42, %c0_43, %c0_44] : memref<1x1x128xf32, #tpu.memory_space<vmem>>, vector<1x1x128xf32>
      %53 = vector.shape_cast %52 : vector<1x1x128xf32> to vector<1x128xf32>
      %54 = vector.shape_cast %51 : vector<1x128xf32> to vector<1x1x128xf32>
      tpu.vector_store %arg15[%c0_42, %c0_43, %c0_44], %54 {strides = array<i32>} : memref<1x1x128xf32, #tpu.memory_space<vmem>>, vector<1x1x128xf32>,
    } else {
    }
    return
  }
  func.func @transform_0(%arg0: i32, %arg1: i32) -> (i32, i32, i32) {
    %c0_i32 = arith.constant 0 : i32
    %c0_i32_0 = arith.constant 0 : i32
    return %arg0, %arg1, %c0_i32 : i32, i32, i32
  }
  func.func @transform_1(%arg0: i32, %arg1: i32) -> (i32, i32) {
    %c0_i32 = arith.constant 0 : i32
    %c0_i32_0 = arith.constant 0 : i32
    %c0_i32_1 = arith.constant 0 : i32
    return %c0_i32, %c0_i32_0 : i32, i32
  }
  func.func @transform_2(%arg0: i32, %arg1: i32) -> (i32, i32) {
    %c0_i32 = arith.constant 0 : i32
    %c0_i32_0 = arith.constant 0 : i32
    %c0_i32_1 = arith.constant 0 : i32
    return %c0_i32, %c0_i32_0 : i32, i32
  }
  func.func @transform_3(%arg0: i32, %arg1: i32) -> (i32, i32) {
    %c0_i32 = arith.constant 0 : i32
    %c0_i32_0 = arith.constant 0 : i32
    %c0_i32_1 = arith.constant 0 : i32
    return %c0_i32, %c0_i32_0 : i32, i32
  }
  func.func @transform_4(%arg0: i32, %arg1: i32) -> (i32, i32) {
    %c0_i32 = arith.constant 0 : i32
    %c0_i32_0 = arith.constant 0 : i32
    %c0_i32_1 = arith.constant 0 : i32
    return %c0_i32, %c0_i32_0 : i32, i32
  }
  func.func @transform_5(%arg0: i32, %arg1: i32) -> (i32, i32) {
    %c0_i32 = arith.constant 0 : i32
    %c0_i32_0 = arith.constant 0 : i32
    %c0_i32_1 = arith.constant 0 : i32
    return %c0_i32, %c0_i32_0 : i32, i32
  }
  func.func @transform_6(%arg0: i32, %arg1: i32) -> (i32, i32) {
    %c0_i32 = arith.constant 0 : i32
    %c0_i32_0 = arith.constant 0 : i32
    %c0_i32_1 = arith.constant 0 : i32
    return %c0_i32, %c0_i32_0 : i32, i32
  }
  func.func @transform_7(%arg0: i32, %arg1: i32) -> (i32, i32) {
    %c0_i32 = arith.constant 0 : i32
    %c0_i32_0 = arith.constant 0 : i32
    %c0_i32_1 = arith.constant 0 : i32
    return %c0_i32, %c0_i32_0 : i32, i32
  }
  func.func @transform_8(%arg0: i32, %arg1: i32) -> (i32, i32) {
    %c0_i32 = arith.constant 0 : i32
    %c0_i32_0 = arith.constant 0 : i32
    %c0_i32_1 = arith.constant 0 : i32
    return %c0_i32, %c0_i32_0 : i32, i32
  }
  func.func @transform_9(%arg0: i32, %arg1: i32) -> (i32, i32) {
    %c0_i32 = arith.constant 0 : i32
    %c0_i32_0 = arith.constant 0 : i32
    %c0_i32_1 = arith.constant 0 : i32
    return %c0_i32, %c0_i32_0 : i32, i32
  }
  func.func @transform_10(%arg0: i32, %arg1: i32) -> (i32, i32) {
    %c0_i32 = arith.constant 0 : i32
    %c0_i32_0 = arith.constant 0 : i32
    %c0_i32_1 = arith.constant 0 : i32
    return %c0_i32, %c0_i32_0 : i32, i32
  }
  func.func @transform_11(%arg0: i32, %arg1: i32) -> (i32, i32) {
    %c0_i32 = arith.constant 0 : i32
    %c0_i32_0 = arith.constant 0 : i32
    %c0_i32_1 = arith.constant 0 : i32
    return %c0_i32, %c0_i32_0 : i32, i32
  }
  func.func @transform_12(%arg0: i32, %arg1: i32) -> (i32, i32) {
    %c0_i32 = arith.constant 0 : i32
    %c0_i32_0 = arith.constant 0 : i32
    %c0_i32_1 = arith.constant 0 : i32
    return %c0_i32, %c0_i32_0 : i32, i32
  }
  func.func @transform_13(%arg0: i32, %arg1: i32) -> (i32, i32, i32) {
    %c0_i32 = arith.constant 0 : i32
    %c0_i32_0 = arith.constant 0 : i32
    %c0_i32_1 = arith.constant 0 : i32
    return %arg0, %c0_i32, %c0_i32_0 : i32, i32, i32
  }
}

</mosaic_0001>

<bundles_post_ra>
// kernel: tpu_custom_call.1
= control target key start
LH: loop header
LB: loop body
LE: loop exit
PB: predicated region body
PF: predicated region fallthrough
CT: control target
= control target key end

     0   :  { %s6556_s0 = inlined_call_operand.vmem [shape: f32[2,256,3], index: 0, kind: input, shape index: {}]   ;;  %s6557_s1 = inlined_call_operand.hbm [shape: f32[3,64], index: 1, kind: input, shape index: {}]   ;;  %s6558_s2 = inlined_call_operand.vmem [shape: f32[1,64], index: 2, kind: input, shape index: {}]   ;;  %s6559_s3 = inlined_call_operand.vmem [shape: f32[1,64], index: 3, kind: input, shape index: {}]   ;;  %s6560_s4 = inlined_call_operand.vmem [shape: bf16[64,128], index: 4, kind: input, shape index: {}]   ;;  %s6561_s5 = inlined_call_operand.hbm [shape: f32[1,128], index: 5, kind: input, shape index: {}]   ;;  %s6562_s6 = inlined_call_operand.hbm [shape: f32[1,128], index: 6, kind: input, shape index: {}]   ;;  %s6563_s7 = inlined_call_operand.vmem [shape: bf16[128,1024], index: 7, kind: input, shape index: {}]   ;;  %s6564_s8 = inlined_call_operand.vmem [shape: f32[1,1024], index: 8, kind: input, shape index: {}]   ;;  %s6565_s9 = inlined_call_operand.hbm [shape: f32[1,1024], index: 9, kind: input, shape index: {}]   ;;  %s6566_s10 = inlined_call_operand.hbm [shape: f32[1024,128], index: 10, kind: input, shape index: {}]   ;;  %s6567_s11 = inlined_call_operand.vmem [shape: f32[1,128], index: 11, kind: input, shape index: {}]   ;;  %s6568_s12 = inlined_call_operand.vmem [shape: f32[1,128], index: 12, kind: input, shape index: {}]   ;;  %s6569_s13 = inlined_call_operand.hbm [shape: f32[2,1,128], index: 13, kind: output, shape index: {}]  }
   0x1   :  { %6582 = sst [smem:[#allocation24_spill]] %s6561_s5 }
   0x2   :  { %6583 = sst [smem:[#allocation25_spill]] %s6568_s12 }
   0x3   :  { %6584 = sst [smem:[#allocation26_spill]] %s6569_s13 }
   0x4   :  { %18 = vsyncpa [#allocation4], 0 }
   0x5   :  { %19 = vsyncpa [#allocation7], 0 }
   0x6   :  { %20 = vsyncpa [#allocation10], 0 }
   0x7   :  { %21 = vsyncpa [#allocation5], 0 }
   0x8   :  { %23 = vsyncpa [#allocation5 + $0x1], 0  ;;  %s5071_s25 = smov 0   ;;  %s5073_s26 = smov 0  }
   0x9   :  { %s5075_s27 = smov 0   ;;  %s5077_s28 = smov 0  }
   0xa   :  { %s5079_s29 = smov 0   ;;  %s5081_s30 = smov 0  }
   0xb LB: > { %6585 = sst [smem:[#allocation17_spill]] %s4969_s25  ;;  %s4090_s14 = sadd.s32 4294967295, %s4989_s30   ;;  %s4989_s30 = sphi %s5081_s30, %s29_s30   ;;  %s4985_s29 = sphi %s5079_s29, %s6611_s29   ;;  %s4981_s28 = sphi %s5077_s28, %s6614_s28   ;;  %s4977_s27 = sphi %s5075_s27, %s6609_s27   ;;  %s4973_s26 = sphi %s5073_s26, %s6613_s26   ;;  %s4969_s25 = sphi %s5071_s25, %s6612_s25  }
   0xc   : > { %6586 = sst [smem:[#allocation18_spill]] %s4977_s27  ;;  %s4091_s15 = sadd.s32 4294967294, %s4989_s30  }
   0xd   : > { %6587 = sst [smem:[#allocation19_spill]] %s4985_s29  ;;  %s41_s16 = sadd.s32 1, %s4985_s29 }
   0xe   : > { %6588 = sst [smem:[#allocation20_spill]] %s4989_s30  ;;  %s328_s17 = sadd.s32 1, %s4977_s27 }
   0xf   : > { %p43_p0 = scmp.ge.s32.totalorder %s41_s16, 2  ;;  %p338_p1 = scmp.ne.s32.totalorder %s4977_s27, %s4973_s26 }
  0x10   : > { %p339_p2 = scmp.eq.s32.totalorder %s4090_s14, 1  ;;  %p344_p3 = scmp.ne.s32.totalorder %s4973_s26, %s4969_s25 }
  0x11   : > { %s6616_s16 = smov (%p43_p0, %s41_s16), 0  ;;  %p345_p5 = scmp.eq.s32.totalorder %s4091_s15, 1 }
  0x12   : > { %6589 = sst [smem:[#allocation21_spill]] %s6616_s16  ;;  %p5111_p4 = por %p339_p2, %p338_p1 }
  0x13   : > { %s325_s19 = ssub.s32 %s4985_s29, %s6616_s16  ;;  %p4092_p6 = scmp.ge.s32.totalorder %s4989_s30, 1 }
  0x14   : > { %s6590_s18 = scalar_select %p5111_p4, 1, 0 }
  0x15   : > { %p326_p7 = scmp.eq.s32.totalorder %s325_s19, 0  ;;  %p5118_p8 = por %p345_p5, %p344_p3 }
  0x16   : > { %p352_p9 = scmp.lt.s32.totalorder %s4989_s30, 3  ;;  %p5130_p11 = scmp.eq.s32.totalorder %s4090_s14, 0 }
  0x17   : > { %s6591_s20 = scalar_select %p5118_p8, 1, 0 }
  0x18   : > { %s5124_s21 = scalar_select %p326_p7, %s4977_s27, %s328_s17  }
  0x19   : > { %6592 = sst [smem:[#allocation22_spill]] %s6591_s20  ;;  %p5126_p10 = pnand %p4092_p6, %p352_p9 }
  0x1a   : > { %6593 = sst [smem:[#allocation23_spill]] %s5124_s21  ;;  %s4991_s24 = smov [#allocation6]  }
  0x1b   : > { %s6594_s22 = scalar_select %p5126_p10, 1, 0 }
  0x1c   : > { %s6595_s23 = scalar_select %p5130_p11, 1, 0 }
  0x1d   : > { %p4665_p12 = pneg %p5126_p10  ;;  %s385_s15 = sshll.u32 %s4991_s24, 4  ;;  %s386_s15 = int_to_ptr.vmem [resolvable:$true] %s385_s15 }
  0x1e   : > { %s4992_s19 = smov [#allocation9]   ;;  %s6597_s5 = sld [smem:[#allocation24_spill]] }
  0x1f   : > { %s413_s16 = sshll.u32 %s4992_s19, 4  ;;  %p5138_p13 = pnand %p5130_p11, %p4665_p12  ;;  %s5142_s16 = int_to_ptr.vmem [resolvable:$true] %s413_s16 }
  0x21   : > { %p5152_p1 = pneg %p5138_p13 }
  0x24   : > { %s4759_s21 = scalar_lea.hbm %s6597_s5, 16 }
  0x25   : > { %p4760_p0 = scmp.ne.s32.totalorder %s6597_s5, %s4759_s21  ;;  %p4766_p5 = scmp.lt.u32.totalorder %s4759_s21, %s6597_s5 }
  0x27   : > { %p4762_p2 = pnand %p5152_p1, %p4760_p0 }
  0x29   : > { %p4763_p3 = pneg %p4762_p2 }
  0x2b   : > { %p4768_p6 = pnand %p4766_p5, %p4763_p3 }
  0x2d   : > { %4771 = shalt.err (!%p4768_p6)
}
  0x2e   : > { %s4772_s29 = scalar_lea.vmem %s386_s15, 16  ;;  %s4779_s27 = scalar_lea.vmem %s386_s15, 32 }
  0x2f   : > { %p4773_p7 = scmp.ne.s32.totalorder %s386_s15, %s4772_s29  ;;  %p4780_p8 = scmp.lt.s32.totalorder %s386_s15, %s386_s15 }
  0x30   : > { %p4781_p4 = scmp.lt.s32.totalorder %s4779_s27, %s4772_s29 }
  0x31   : > { %p4775_p9 = pnand %p4773_p7, %p5152_p1 }
  0x32   : > { %p4782_p11 = por %p4781_p4, %p4780_p8 }
  0x33   : > { %p4776_p12 = pneg %p4775_p9 }
  0x35   : > { %p4783_p10 = pnand %p4782_p11, %p4776_p12 }
  0x37   : > { %4786 = shalt.err (!%p4783_p10)
}
  0x38   : > { %4671 = dma.hbm_to_vmem [thread:$0]  (!%p5138_p13), %s6597_s5, 16, %s386_s15, [#allocation7]  }
  0x39   : > { %s4787_s19 = scalar_lea.hbm %s6565_s9, 128 }
  0x3a   : > { %p4788_p0 = scmp.ne.s32.totalorder %s6565_s9, %s4787_s19  ;;  %p4794_p8 = scmp.lt.u32.totalorder %s4787_s19, %s6565_s9 }
  0x3c   : > { %p4790_p2 = pnand %p4788_p0, %p5152_p1 }
  0x3e   : > { %p4791_p4 = pneg %p4790_p2 }
  0x40   : > { %p4796_p10 = pnand %p4794_p8, %p4791_p4 }
  0x42   : > { %4799 = shalt.err (!%p4796_p10)
}
  0x43   : > { %s4800_s15 = scalar_lea.vmem %s5142_s16, 128  ;;  %p4808_p6 = scmp.lt.s32.totalorder %s5142_s16, %s5142_s16 }
  0x44   : > { %p4801_p11 = scmp.ne.s32.totalorder %s5142_s16, %s4800_s15  ;;  %p4809_p7 = scmp.lt.s32.totalorder %s4800_s15, %s4800_s15 }
  0x46   : > { %p4803_p3 = pnand %p4801_p11, %p5152_p1  ;;  %p4810_p9 = por %p4809_p7, %p4808_p6 }
  0x48   : > { %p4804_p5 = pneg %p4803_p3 }
  0x4a   : > { %p4811_p12 = pnand %p4810_p9, %p4804_p5 }
  0x4c   : > { %4814 = shalt.err (!%p4811_p12)
}
  0x4d   : > { %4677 = dma.hbm_to_vmem [thread:$0]  (!%p5138_p13), %s6565_s9, 128, %s5142_s16, [#allocation10]  }
  0x4e   : > { %s4993_s20 = smov [#allocation3]   ;;  %s4994_s25 = smov [#allocation8]  }
  0x4f   : > { %s365_s14 = sshll.u32 %s4993_s20, 4  ;;  %s396_s21 = sshll.u32 %s4994_s25, 4  ;;  %s366_s14 = int_to_ptr.vmem [resolvable:$true] %s365_s14  ;;  %s397_s21 = int_to_ptr.vmem [resolvable:$true] %s396_s21 }
  0x50   : > { %s4815_s27 = scalar_lea.hbm %s6557_s1, 64 }
  0x51   : > { %p4816_p0 = scmp.ne.s32.totalorder %s6557_s1, %s4815_s27  ;;  %p4822_p8 = scmp.lt.u32.totalorder %s4815_s27, %s6557_s1 }
  0x53   : > { %p4818_p2 = pnand %p4816_p0, %p5152_p1 }
  0x55   : > { %p4819_p4 = pneg %p4818_p2 }
  0x57   : > { %p4824_p10 = pnand %p4822_p8, %p4819_p4 }
  0x59   : > { %4827 = shalt.err (!%p4824_p10)
}
  0x5a   : > { %s4828_s16 = scalar_lea.vmem %s366_s14, 64  ;;  %p4836_p6 = scmp.lt.s32.totalorder %s366_s14, %s366_s14 }
  0x5b   : > { %p4829_p11 = scmp.ne.s32.totalorder %s366_s14, %s4828_s16  ;;  %p4837_p7 = scmp.lt.s32.totalorder %s4828_s16, %s4828_s16 }
  0x5d   : > { %p4831_p3 = pnand %p4829_p11, %p5152_p1  ;;  %p4838_p9 = por %p4837_p7, %p4836_p6 }
  0x5f   : > { %p4832_p5 = pneg %p4831_p3 }
  0x61   : > { %p4839_p12 = pnand %p4838_p9, %p4832_p5 }
  0x63   : > { %4842 = shalt.err (!%p4839_p12)
}
  0x64   : > { %4668 = dma.hbm_to_vmem [thread:$0]  (!%p5138_p13), %s6557_s1, 64, %s366_s14, [#allocation4]  }
  0x65   : > { %s4843_s25 = scalar_lea.hbm %s6562_s6, 16 }
  0x66   : > { %p4844_p0 = scmp.ne.s32.totalorder %s6562_s6, %s4843_s25  ;;  %p4850_p8 = scmp.lt.u32.totalorder %s4843_s25, %s6562_s6 }
  0x68   : > { %p4846_p2 = pnand %p4844_p0, %p5152_p1 }
  0x6a   : > { %p4847_p4 = pneg %p4846_p2 }
  0x6c   : > { %p4852_p10 = pnand %p4850_p8, %p4847_p4 }
  0x6e   : > { %4855 = shalt.err (!%p4852_p10)
}
  0x6f   : > { %s4856_s13 = scalar_lea.vmem %s397_s21, 16  ;;  %s4863_s14 = scalar_lea.vmem %s397_s21, 32 }
  0x70   : > { %p4857_p11 = scmp.ne.s32.totalorder %s397_s21, %s4856_s13  ;;  %p4864_p6 = scmp.lt.s32.totalorder %s397_s21, %s397_s21 }
  0x71   : > { %p4865_p7 = scmp.lt.s32.totalorder %s4863_s14, %s4856_s13 }
  0x72   : > { %p4859_p3 = pnand %p4857_p11, %p5152_p1 }
  0x73   : > { %p4866_p9 = por %p4865_p7, %p4864_p6 }
  0x74   : > { %p4860_p5 = pneg %p4859_p3 }
  0x76   : > { %p4867_p12 = pnand %p4866_p9, %p4860_p5 }
  0x78   : > { %4870 = shalt.err (!%p4867_p12)
}
  0x79   : > { %4674 = dma.hbm_to_vmem [thread:$0]  (!%p5138_p13), %s6562_s6, 16, %s397_s21, [#allocation7]  }
  0x7a   : > { %s4995_s30 = smov [#allocation11]   ;;  %s4871_s19 = scalar_lea.hbm %s6566_s10, 16384 }
  0x7b   : > { %s423_s12 = sshll.u32 %s4995_s30, 4  ;;  %p4872_p0 = scmp.ne.s32.totalorder %s6566_s10, %s4871_s19  ;;  %s424_s12 = int_to_ptr.vmem [resolvable:$true] %s423_s12 }
  0x7c   : > { %p4878_p8 = scmp.lt.u32.totalorder %s4871_s19, %s6566_s10 }
  0x7d   : > { %p4874_p2 = pnand %p4872_p0, %p5152_p1 }
  0x7f   : > { %p4875_p4 = pneg %p4874_p2 }
  0x81   : > { %p4880_p10 = pnand %p4878_p8, %p4875_p4 }
  0x83   : > { %4883 = shalt.err (!%p4880_p10)
}
  0x84   : > { %s4884_s21 = scalar_lea.vmem %s424_s12, 16384  ;;  %p4892_p6 = scmp.lt.s32.totalorder %s424_s12, %s424_s12 }
  0x85   : > { %p4885_p11 = scmp.ne.s32.totalorder %s424_s12, %s4884_s21  ;;  %p4893_p7 = scmp.lt.s32.totalorder %s4884_s21, %s4884_s21 }
  0x87   : > { %p4887_p3 = pnand %p4885_p11, %p5152_p1  ;;  %p4894_p9 = por %p4893_p7, %p4892_p6 }
  0x89   : > { %p4888_p5 = pneg %p4887_p3 }
  0x8b   : > { %p4895_p12 = pnand %p4894_p9, %p4888_p5 }
  0x8d   : > { %4898 = shalt.err (!%p4895_p12)
}
  0x8e   : > { %s4996_s14 = smov 128   ;;  %s4997_s16 = smov 8  }
  0x8f   : > { %4680 = dma.hbm_to_vmem [thread:$0]  (!%p5138_p13), %s6566_s10, 16384, %s424_s12, [#allocation10], %s4996_s14, %s4996_s14, %s4997_s16  }
  0x90   : > { %p6599_p0 = scmp.ne.s32.totalorder %s6594_s22, 0 }
  0x91   : > { %p6600_p2 = scmp.ne.s32.totalorder (!%p6599_p0), %s6595_s23, 0 }
  0x92   : > { %458 = sbr.rel (%p6599_p0) target bundleno = 1380 (0x564), region = 72 }
  0x99   : > { %4952 = dma.done.wait (%p6600_p2), [#allocation4], 64  }
  0x9a   : > { %4954 = vsyncadd (%p6600_p2), [#allocation4], 4294967232 }
  0x9b   : > { %4956 = dma.done.wait (%p6600_p2), [#allocation7], 32  }
  0x9c   : > { %4958 = vsyncadd (%p6600_p2), [#allocation7], 4294967264 }
  0x9d   : > { %4960 = dma.done.wait (%p6600_p2), [#allocation10], 16512  }
  0x9e   : > { %4962 = vsyncadd (%p6600_p2), [#allocation10], 4294950784  ;;  %p522_p13 = scmp.lt.s32.totalorder %s4981_s28, 1  ;;  %vm667_vm0 = vcmask 1042432   ;;  %vm570_vm1 = vcmask 23552   ;;  %v4753_v10 = vld [vmem:[%s6560_s4] sm:$0xff]  }
  0x9f   : > { %v569_v0 = vld [vmem:[#allocation3] sm:$0x7]  ;;  %4475 = vmatprep.subr.bf16.mxu1 %v4753_v10  ;;  %v4754_v34 = vld [vmem:[%s6560_s4 + $0x8] sm:$0xff]   ;;  %v4755_v35 = vld [vmem:[%s6560_s4 + $0x10] sm:$0xff]   ;;  %vm1054_vm2 = vcmask 523264   ;;  %s519_s14 = sand.u32 1, %s4973_s26  }
  0xa0   : > { %s523_s22 = scalar_select %p522_p13, %s4981_s28, 1  ;;  %4425 = vmatprep.subr.msk.mxu0 %vm667_vm0, %v569_v0  ;;  %4476 = vmatpush3.bf16.msra.mxu1 %v4753_v10  ;;  %v4756_v36 = vld [vmem:[%s6560_s4 + $0x18] sm:$0xff]   ;;  %v1390_v37 = vld [vmem:[%s6563_s7] sm:$0xff]  ;;  %v5351_v39 = vld [vmem:[%s6563_s7 + $0x8] sm:$0xff] }
  0xa1   : > { %4426 = vmatpush3.msk.msra.mxu0 %vm667_vm0, %v569_v0  ;;  %4477 = vmatprep.subr.bf16.mxu1 %v4754_v34  ;;  %v1394_v38 = vld [vmem:[%s6563_s7 + $0x20] sm:$0xff]  ;;  %v5356_v42 = vld [vmem:[%s6563_s7 + $0x28] sm:$0xff]  ;;  %s4228_s24 = sshll.u32 %s4981_s28, 4  ;;  %s520_s12 = scalar_lea.vmem [#allocation12], %s519_s14 }
  0xa2   : > { %s4231_s17 = sshll.u32 %s523_s22, 8  ;;  %v4164_v40 = vcombine.low %v1390_v37, %v1394_v38  ;;  %v4165_v41 = vcombine.high %v1390_v37, %v1394_v38  ;;  %v1398_v43 = vld [vmem:[%s6563_s7 + $0x40] sm:$0xff]  ;;  %v4166_v45 = vcombine.low %v5351_v39, %v5356_v42  ;;  %v4167_v46 = vcombine.high %v5351_v39, %v5356_v42  ;;  %v1407_v38 = vld [vmem:[%s6563_s7 + $0x88] sm:$0xff]  ;;  %s6602_s19 = sld [smem:[#allocation26_spill]] }
  0xa3   : > { %s5264_s20 = scalar_lea.vmem %s6556_s0, %s4231_s17  ;;  %v1402_v44 = vld [vmem:[%s6563_s7 + $0x60] sm:$0xff]  ;;  %v1419_v39 = vld [vmem:[%s6563_s7 + $0xe8] sm:$0xff]  ;;  %s6601_s17 = sld [smem:[#allocation25_spill]] }
  0xa4   : > { %v537_v1 = vld [vmem:[%s5264_s20] sm:$0xff]  ;;  %v538_v2 = vld [vmem:[%s5264_s20 + $0x8] sm:$0xff]  ;;  %v539_v3 = vld [vmem:[%s5264_s20 + $0x10] sm:$0xff]  ;;  %4478 = vmatpush3.bf16.msra.mxu1 %v4754_v34  ;;  %v4173_v47 = vcombine.high %v1398_v43, %v1402_v44  ;;  %1774 = vmatprep.subr.bf16.mxu0 %v4165_v41  ;;  %v4172_v50 = vcombine.low %v1398_v43, %v1402_v44  ;;  %s3959_s27 = scalar_lea.sflag [#allocation5], %s519_s14  ;;  %p6603_p4 = scmp.ne.s32.totalorder %s6590_s18, 0 }
  0xa5   : > { %4427 = vmatprep.mubr.msk.f32.mxu0 %vm570_vm1, %v537_v1  ;;  %v540_v4 = vld [vmem:[%s5264_s20 + $0x18] sm:$0xff]  ;;  %v541_v5 = vld [vmem:[%s5264_s20 + $0x20] sm:$0xff]  ;;  %v542_v6 = vld [vmem:[%s5264_s20 + $0x28] sm:$0xff]  ;;  %4479 = vmatprep.subr.bf16.mxu1 %v4755_v35  ;;  %s5000_s28 = smov [#allocation12]  }
  0xa6   : > { %4428 = vmatmul.mubr.msk.f32.vlgmr.msra.gmra.mrb[0].mxu0 %vm570_vm1, %v538_v2  ;;  %v543_v7 = vld [vmem:[%s5264_s20 + $0x30] sm:$0xff]  ;;  %v544_v8 = vld [vmem:[%s5264_s20 + $0x38] sm:$0xff]  ;;  %v545_v9 = vld [vmem:[%s5264_s20 + $0x40] sm:$0xff]  ;;  %s4903_s13 = sshll.u32 %s5000_s28, 4  ;;  %s4904_s13 = int_to_ptr.vmem [resolvable:$false] %s4903_s13 }
  0xa7   : > { %4430 = vmatprep.mubr.msk.f32.mxu0 %vm570_vm1, %v539_v3  ;;  %v546_v11 = vld [vmem:[%s5264_s20 + $0x48] sm:$0xff]  ;;  %v547_v12 = vld [vmem:[%s5264_s20 + $0x50] sm:$0xff]  ;;  %v548_v13 = vld [vmem:[%s5264_s20 + $0x58] sm:$0xff]  ;;  %1775 = vmatpush1.bf16.msra.mxu0 %v4164_v40  ;;  %s4905_s21 = scalar_lea.vmem %s4904_s13, 32 }
  0xa8   : > { %v549_v14 = vld [vmem:[%s5264_s20 + $0x60] sm:$0xff]  ;;  %v550_v15 = vld [vmem:[%s5264_s20 + $0x68] sm:$0xff]  ;;  %v551_v16 = vld [vmem:[%s5264_s20 + $0x70] sm:$0xff]  ;;  %4480 = vmatpush3.bf16.msra.mxu1 %v4755_v35  ;;  %1776 = vmatprep.subr.bf16.mxu0 %v4173_v47  ;;  %s6509_s29 = scalar_lea.hbm %s6602_s19, %s4228_s24 }
  0xa9   : > { %v552_v17 = vld [vmem:[%s5264_s20 + $0x78] sm:$0xff]  ;;  %v553_v18 = vld [vmem:[%s5264_s20 + $0x80] sm:$0xff]  ;;  %v554_v19 = vld [vmem:[%s5264_s20 + $0x88] sm:$0xff]  ;;  %4481 = vmatprep.subr.bf16.mxu1 %v4756_v36 }
  0xaa   : > { %4431 = vmatmul.mubr.msk.f32.gmra.mrb[2].mxu0 %vm570_vm1, %v540_v4  ;;  %v555_v20 = vld [vmem:[%s5264_s20 + $0x90] sm:$0xff]  ;;  %v556_v21 = vld [vmem:[%s5264_s20 + $0x98] sm:$0xff]  ;;  %v557_v22 = vld [vmem:[%s5264_s20 + $0xa0] sm:$0xff] }
  0xab   : > { %4433 = vmatprep.mubr.msk.f32.mxu0 %vm570_vm1, %v541_v5  ;;  %v558_v23 = vld [vmem:[%s5264_s20 + $0xa8] sm:$0xff]  ;;  %v559_v24 = vld [vmem:[%s5264_s20 + $0xb0] sm:$0xff]  ;;  %v560_v25 = vld [vmem:[%s5264_s20 + $0xb8] sm:$0xff]  ;;  %1777 = vmatpush1.bf16.msra.mxu0 %v4172_v50 }
  0xac   : > { %v561_v26 = vld [vmem:[%s5264_s20 + $0xc0] sm:$0xff]  ;;  %v562_v27 = vld [vmem:[%s5264_s20 + $0xc8] sm:$0xff]  ;;  %v563_v28 = vld [vmem:[%s5264_s20 + $0xd0] sm:$0xff]  ;;  %4482 = vmatpush3.bf16.msra.mxu1 %v4756_v36 }
  0xad   : > { %v564_v29 = vld [vmem:[%s5264_s20 + $0xd8] sm:$0xff]  ;;  %v565_v30 = vld [vmem:[%s5264_s20 + $0xe0] sm:$0xff]  ;;  %v566_v31 = vld [vmem:[%s5264_s20 + $0xe8] sm:$0xff]  ;;  %1967 = vmatprep.subr.bf16.mxu1 %v4167_v46 }
  0xae   : > { %4434 = vmatmul.mubr.msk.f32.gmra.mrb[4].mxu0 %vm570_vm1, %v542_v6  ;;  %v567_v32 = vld [vmem:[%s5264_s20 + $0xf0] sm:$0xff]  ;;  %v568_v33 = vld [vmem:[%s5264_s20 + $0xf8] sm:$0xff]  ;;  %v1406_v48 = vld [vmem:[%s6563_s7 + $0x80] sm:$0xff]  ;;  %s3971_s20 = sshll.u32 %s520_s12, 4  ;;  %s6511_s20 = int_to_ptr.vmem [resolvable:$true] %s3971_s20 }
  0xaf   : > { %4436 = vmatprep.mubr.msk.f32.mxu0 %vm570_vm1, %v543_v7  ;;  %v1410_v49 = vld [vmem:[%s6563_s7 + $0xa0] sm:$0xff]  ;;  %v1411_v40 = vld [vmem:[%s6563_s7 + $0xa8] sm:$0xff]  ;;  %s4899_s15 = scalar_lea.vmem %s6511_s20, 16  ;;  %p4906_p11 = scmp.lt.s32.totalorder %s6511_s20, %s4904_s13 }
  0xb0   : > { %v4181_v51 = vcombine.high %v1406_v48, %v1410_v49  ;;  %v1414_v52 = vld [vmem:[%s6563_s7 + $0xc0] sm:$0xff]  ;;  %v4180_v54 = vcombine.low %v1406_v48, %v1410_v49  ;;  %v4183_v50 = vcombine.high %v1407_v38, %v1411_v40  ;;  %p4900_p1 = scmp.ne.s32.totalorder %s6511_s20, %s4899_s15  ;;  %p4907_p3 = scmp.lt.s32.totalorder %s4905_s21, %s4899_s15 }
  0xb1   : > { %v1418_v53 = vld [vmem:[%s6563_s7 + $0xe0] sm:$0xff] }
  0xb2   : > { %4437 = vmatmul.mubr.msk.f32.gmra.mrb[6].mxu0 %vm570_vm1, %v544_v8  ;;  %1778 = vmatprep.subr.bf16.mxu0 %v4181_v51  ;;  %v4189_v55 = vcombine.high %v1414_v52, %v1418_v53  ;;  %v1422_v56 = vld [vmem:[%s6563_s7 + $0x100] sm:$0xff]  ;;  %v4188_v58 = vcombine.low %v1414_v52, %v1418_v53  ;;  %p4901_p8 = pnand %p4900_p1, %p6603_p4  ;;  %p4908_p5 = por %p4907_p3, %p4906_p11 }
  0xb3   : > { %4439 = vmatprep.mubr.msk.f32.mxu0 %vm570_vm1, %v545_v9  ;;  %v1426_v57 = vld [vmem:[%s6563_s7 + $0x120] sm:$0xff]  ;;  %1779 = vmatpush1.bf16.msra.mxu0 %v4180_v54  ;;  %v1415_v54 = vld [vmem:[%s6563_s7 + $0xc8] sm:$0xff] }
  0xb4   : > { %1780 = vmatprep.subr.bf16.mxu0 %v4189_v55  ;;  %v4197_v59 = vcombine.high %v1422_v56, %v1426_v57  ;;  %v1430_v60 = vld [vmem:[%s6563_s7 + $0x140] sm:$0xff]  ;;  %v4196_v62 = vcombine.low %v1422_v56, %v1426_v57  ;;  %v4182_v56 = vcombine.low %v1407_v38, %v1411_v40  ;;  %p4902_p10 = pneg %p4901_p8 }
  0xb5   : > { %v1434_v61 = vld [vmem:[%s6563_s7 + $0x160] sm:$0xff] }
  0xb6   : > { %4440 = vmatmul.mubr.msk.f32.gmra.mrb[8].mxu0 %vm570_vm1, %v546_v11  ;;  %v4205_v63 = vcombine.high %v1430_v60, %v1434_v61  ;;  %v1438_v0 = vld [vmem:[%s6563_s7 + $0x180] sm:$0xff]  ;;  %v4204_v2 = vcombine.low %v1430_v60, %v1434_v61  ;;  %v4191_v60 = vcombine.high %v1415_v54, %v1419_v39  ;;  %p4909_p6 = pnand %p4908_p5, %p4902_p10 }
  0xb7   : > { %4442 = vmatprep.mubr.msk.f32.mxu0 %vm570_vm1, %v547_v12  ;;  %1781 = vmatpush1.bf16.msra.mxu0 %v4188_v58  ;;  %v1442_v1 = vld [vmem:[%s6563_s7 + $0x1a0] sm:$0xff] }
  0xb8   : > { %1782 = vmatprep.subr.bf16.mxu0 %v4197_v59  ;;  %v4213_v3 = vcombine.high %v1438_v0, %v1442_v1  ;;  %v4212_v4 = vcombine.low %v1438_v0, %v1442_v1  ;;  %v5401_v5 = vld [vmem:[%s6558_s2] ss:$0 sm:$0xff]  ;;  %v1423_v0 = vld [vmem:[%s6563_s7 + $0x108] sm:$0xff] }
  0xb9   : > { %v5406_v7 = vld [vmem:[%s6559_s3] ss:$0 sm:$0xff]  ;;  %v1427_v1 = vld [vmem:[%s6563_s7 + $0x128] sm:$0xff] }
  0xba   : > { %4443 = vmatmul.mubr.msk.f32.gmra.mrb[10].mxu0 %vm570_vm1, %v548_v13 }
  0xbb   : > { %4445 = vmatprep.mubr.msk.f32.mxu0 %vm570_vm1, %v549_v14  ;;  %1783 = vmatpush1.bf16.msra.mxu0 %v4196_v62 }
  0xbc   : > { %1784 = vmatprep.subr.bf16.mxu0 %v4205_v63 }
  0xbe   : > { %4446 = vmatmul.mubr.msk.f32.gmra.mrb[12].mxu0 %vm570_vm1, %v550_v15 }
  0xbf   : > { %4448 = vmatprep.mubr.msk.f32.mxu0 %vm570_vm1, %v551_v16  ;;  %1785 = vmatpush1.bf16.msra.mxu0 %v4204_v2 }
  0xc0   : > { %1786 = vmatprep.subr.bf16.mxu0 %v4213_v3 }
  0xc2   : > { %4449 = vmatmul.mubr.msk.f32.gmra.mrb[14].mxu0 %vm570_vm1, %v552_v17 }
  0xc3   : > { %4451 = vmatprep.mubr.msk.f32.mxu0 %vm570_vm1, %v553_v18  ;;  %1787 = vmatpush1.bf16.msra.mxu0 %v4212_v4 }
  0xc6   : > { %4452 = vmatmul.mubr.msk.f32.gmra.mrb[16].mxu0 %vm570_vm1, %v554_v19 }
  0xc7   : > { %4454 = vmatprep.mubr.msk.f32.mxu0 %vm570_vm1, %v555_v20 }
  0xca   : > { %4455 = vmatmul.mubr.msk.f32.gmra.mrb[18].mxu0 %vm570_vm1, %v556_v21 }
  0xcb   : > { %4457 = vmatprep.mubr.msk.f32.mxu0 %vm570_vm1, %v557_v22 }
  0xce   : > { %4458 = vmatmul.mubr.msk.f32.gmra.mrb[20].mxu0 %vm570_vm1, %v558_v23 }
  0xcf   : > { %4460 = vmatprep.mubr.msk.f32.mxu0 %vm570_vm1, %v559_v24 }
  0xd2   : > { %4461 = vmatmul.mubr.msk.f32.gmra.mrb[22].mxu0 %vm570_vm1, %v560_v25 }
  0xd3   : > { %4463 = vmatprep.mubr.msk.f32.mxu0 %vm570_vm1, %v561_v26  ;;  %v1399_v26 = vld [vmem:[%s6563_s7 + $0x48] sm:$0xff] }
  0xd6   : > { %4464 = vmatmul.mubr.msk.f32.gmra.mrb[24].mxu0 %vm570_vm1, %v562_v27  ;;  %v1403_v27 = vld [vmem:[%s6563_s7 + $0x68] sm:$0xff] }
  0xd7   : > { %4466 = vmatprep.mubr.msk.f32.mxu0 %vm570_vm1, %v563_v28  ;;  %v4175_v34 = vcombine.high %v1399_v26, %v1403_v27  ;;  %v4174_v46 = vcombine.low %v1399_v26, %v1403_v27 }
  0xda   : > { %4467 = vmatmul.mubr.msk.f32.gmra.mrb[26].mxu0 %vm570_vm1, %v564_v29 }
  0xdb   : > { %4469 = vmatprep.mubr.msk.f32.mxu0 %vm570_vm1, %v565_v30 }
  0xde   : > { %4470 = vmatmul.mubr.msk.f32.gmra.mrb[28].mxu0 %vm570_vm1, %v566_v31 }
  0xdf   : > { %4472 = vmatprep.mubr.msk.f32.mxu0 %vm570_vm1, %v567_v32 }
  0xe2   : > { %4473 = vmatmul.mubr.msk.f32.gmra.mrb[30].mxu0 %vm570_vm1, %v568_v33 }
 0x179   : > { %v4429_v6 = vpop.f32.mrb[0].mxu0 }
 0x17a   : > { %v904_v8 = vmul.f32 %v4429_v6, %v5401_v5  ;;  %v737_v9 = vpop.f32.mrb[1].mxu0  ;;  %v4190_v6 = vcombine.low %v1415_v54, %v1419_v39 }
 0x17b   : > { %v903_v10 = vmul.f32 %v5401_v5, %v737_v9 }
 0x17c   : > { %v943_v11 = vadd.f32 %v5406_v7, %v904_v8 }
 0x17d   : > { %v942_v12 = vadd.f32 %v5406_v7, %v903_v10  ;;  %v4432_v13 = vpop.f32.mrb[2].mxu0 }
 0x17e   : > { %v975_v14 = vmax.f32 %v943_v11, 0.0  ;;  %v906_v15 = vmul.f32 %v4432_v13, %v5401_v5  ;;  %v747_v16 = vpop.f32.mrb[3].mxu0  ;;  %v4199_v11 = vcombine.high %v1423_v0, %v1427_v1 }
 0x17f   : > { %v974_v17 = vmax.f32 %v942_v12, 0.0  ;;  %v905_v18 = vmul.f32 %v5401_v5, %v747_v16  ;;  %v1435_v16 = vld [vmem:[%s6563_s7 + $0x168] sm:$0xff] }
 0x180   : > { %v945_v19 = vadd.f32 %v5406_v7, %v906_v15  ;;  %v1431_v15 = vld [vmem:[%s6563_s7 + $0x148] sm:$0xff] }
 0x181   : > { %v944_v20 = vadd.f32 %v5406_v7, %v905_v18  ;;  %v1006_v21 = vpack.c.bf16 %v975_v14, %v974_v17  ;;  %v4435_v22 = vpop.f32.mrb[4].mxu0 }
 0x182   : > { %v977_v23 = vmax.f32 %v945_v19, 0.0  ;;  %v908_v24 = vmul.f32 %v4435_v22, %v5401_v5  ;;  %v757_v25 = vpop.f32.mrb[5].mxu0 }
 0x183   : > { %v976_v28 = vmax.f32 %v944_v20, 0.0  ;;  %4483 = vmatprep.mubr.msk.bf16.mxu1 %vm1054_vm2, %v1006_v21  ;;  %v907_v29 = vmul.f32 %v5401_v5, %v757_v25  ;;  %v4198_v20 = vcombine.low %v1423_v0, %v1427_v1 }
 0x184   : > { %v947_v30 = vadd.f32 %v5406_v7, %v908_v24  ;;  %v4207_v24 = vcombine.high %v1431_v15, %v1435_v16 }
 0x185   : > { %v1007_v31 = vpack.c.bf16 %v977_v23, %v976_v28  ;;  %v946_v32 = vadd.f32 %v5406_v7, %v907_v29  ;;  %v4438_v33 = vpop.f32.mrb[6].mxu0  ;;  %v1439_v28 = vld [vmem:[%s6563_s7 + $0x188] sm:$0xff] }
 0x186   : > { %v979_v35 = vmax.f32 %v947_v30, 0.0  ;;  %v910_v36 = vmul.f32 %v4438_v33, %v5401_v5  ;;  %v767_v37 = vpop.f32.mrb[7].mxu0  ;;  %v1443_v29 = vld [vmem:[%s6563_s7 + $0x1a8] sm:$0xff]  ;;  %v4206_v33 = vcombine.low %v1431_v15, %v1435_v16 }
 0x187   : > { %4484 = vmatmul.mubr.msk.bf16.vlgmr.msra.gmra.mrb[0].mxu1 %vm1054_vm2, %v1007_v31  ;;  %v978_v41 = vmax.f32 %v946_v32, 0.0  ;;  %v909_v43 = vmul.f32 %v5401_v5, %v767_v37  ;;  %v4215_v37 = vcombine.high %v1439_v28, %v1443_v29 }
 0x188   : > { %v949_v44 = vadd.f32 %v5406_v7, %v910_v36  ;;  %1968 = vmatpush1.bf16.msra.mxu1 %v4166_v45 }
 0x189   : > { %v1008_v47 = vpack.c.bf16 %v979_v35, %v978_v41  ;;  %v948_v48 = vadd.f32 %v5406_v7, %v909_v43  ;;  %v4441_v49 = vpop.f32.mrb[8].mxu0  ;;  %1969 = vmatprep.subr.bf16.mxu1 %v4175_v34 }
 0x18a   : > { %v981_v51 = vmax.f32 %v949_v44, 0.0  ;;  %v912_v52 = vmul.f32 %v4441_v49, %v5401_v5  ;;  %v777_v53 = vpop.f32.mrb[9].mxu0 }
 0x18b   : > { %v980_v42 = vmax.f32 %v948_v48, 0.0  ;;  %4487 = vmatprep.mubr.msk.bf16.mxu1 %vm1054_vm2, %v1008_v47  ;;  %v911_v45 = vmul.f32 %v5401_v5, %v777_v53  ;;  %v4214_v47 = vcombine.low %v1439_v28, %v1443_v29 }
 0x18c   : > { %v951_v55 = vadd.f32 %v5406_v7, %v912_v52  ;;  %1970 = vmatpush1.bf16.msra.mxu1 %v4174_v46 }
 0x18d   : > { %v1009_v57 = vpack.c.bf16 %v981_v51, %v980_v42  ;;  %v950_v58 = vadd.f32 %v5406_v7, %v911_v45  ;;  %v4444_v59 = vpop.f32.mrb[10].mxu0  ;;  %1971 = vmatprep.subr.bf16.mxu1 %v4183_v50 }
 0x18e   : > { %v983_v61 = vmax.f32 %v951_v55, 0.0  ;;  %v914_v62 = vmul.f32 %v4444_v59, %v5401_v5  ;;  %v787_v63 = vpop.f32.mrb[11].mxu0 }
 0x18f   : > { %4488 = vmatmul.mubr.msk.bf16.gmra.mrb[4].mxu1 %vm1054_vm2, %v1009_v57  ;;  %v982_v2 = vmax.f32 %v950_v58, 0.0  ;;  %v913_v3 = vmul.f32 %v5401_v5, %v787_v63 }
 0x190   : > { %v953_v4 = vadd.f32 %v5406_v7, %v914_v62  ;;  %1972 = vmatpush1.bf16.msra.mxu1 %v4182_v56 }
 0x191   : > { %v1010_v8 = vpack.c.bf16 %v983_v61, %v982_v2  ;;  %v952_v9 = vadd.f32 %v5406_v7, %v913_v3  ;;  %v4447_v10 = vpop.f32.mrb[12].mxu0  ;;  %1973 = vmatprep.subr.bf16.mxu1 %v4191_v60 }
 0x192   : > { %v985_v12 = vmax.f32 %v953_v4, 0.0  ;;  %v916_v13 = vmul.f32 %v4447_v10, %v5401_v5  ;;  %v797_v14 = vpop.f32.mrb[13].mxu0 }
 0x193   : > { %v984_v17 = vmax.f32 %v952_v9, 0.0  ;;  %4491 = vmatprep.mubr.msk.bf16.mxu1 %vm1054_vm2, %v1010_v8  ;;  %v915_v18 = vmul.f32 %v5401_v5, %v797_v14 }
 0x194   : > { %v955_v19 = vadd.f32 %v5406_v7, %v916_v13  ;;  %1974 = vmatpush1.bf16.msra.mxu1 %v4190_v6 }
 0x195   : > { %v1011_v21 = vpack.c.bf16 %v985_v12, %v984_v17  ;;  %v954_v22 = vadd.f32 %v5406_v7, %v915_v18  ;;  %v4450_v23 = vpop.f32.mrb[14].mxu0  ;;  %1975 = vmatprep.subr.bf16.mxu1 %v4199_v11 }
 0x196   : > { %v987_v25 = vmax.f32 %v955_v19, 0.0  ;;  %v918_v26 = vmul.f32 %v4450_v23, %v5401_v5  ;;  %v807_v27 = vpop.f32.mrb[15].mxu0 }
 0x197   : > { %4492 = vmatmul.mubr.msk.bf16.gmra.mrb[8].mxu1 %vm1054_vm2, %v1011_v21  ;;  %v986_v30 = vmax.f32 %v954_v22, 0.0  ;;  %v917_v31 = vmul.f32 %v5401_v5, %v807_v27 }
 0x198   : > { %v957_v32 = vadd.f32 %v5406_v7, %v918_v26  ;;  %1976 = vmatpush1.bf16.msra.mxu1 %v4198_v20 }
 0x199   : > { %v1012_v34 = vpack.c.bf16 %v987_v25, %v986_v30  ;;  %v956_v35 = vadd.f32 %v5406_v7, %v917_v31  ;;  %v4453_v36 = vpop.f32.mrb[16].mxu0  ;;  %1977 = vmatprep.subr.bf16.mxu1 %v4207_v24 }
 0x19a   : > { %v989_v38 = vmax.f32 %v957_v32, 0.0  ;;  %v920_v40 = vmul.f32 %v4453_v36, %v5401_v5  ;;  %v817_v41 = vpop.f32.mrb[17].mxu0 }
 0x19b   : > { %v988_v43 = vmax.f32 %v956_v35, 0.0  ;;  %4495 = vmatprep.mubr.msk.bf16.mxu1 %vm1054_vm2, %v1012_v34  ;;  %v919_v44 = vmul.f32 %v5401_v5, %v817_v41 }
 0x19c   : > { %v959_v46 = vadd.f32 %v5406_v7, %v920_v40  ;;  %1978 = vmatpush1.bf16.msra.mxu1 %v4206_v33 }
 0x19d   : > { %v1013_v48 = vpack.c.bf16 %v989_v38, %v988_v43  ;;  %v958_v49 = vadd.f32 %v5406_v7, %v919_v44  ;;  %v4456_v50 = vpop.f32.mrb[18].mxu0  ;;  %1979 = vmatprep.subr.bf16.mxu1 %v4215_v37 }
 0x19e   : > { %v991_v51 = vmax.f32 %v959_v46, 0.0  ;;  %v922_v52 = vmul.f32 %v4456_v50, %v5401_v5  ;;  %v827_v53 = vpop.f32.mrb[19].mxu0 }
 0x19f   : > { %4496 = vmatmul.mubr.msk.bf16.gmra.mrb[12].mxu1 %vm1054_vm2, %v1013_v48  ;;  %v990_v54 = vmax.f32 %v958_v49, 0.0  ;;  %v921_v39 = vmul.f32 %v5401_v5, %v827_v53 }
 0x1a0   : > { %v961_v42 = vadd.f32 %v5406_v7, %v922_v52  ;;  %1980 = vmatpush1.bf16.msra.mxu1 %v4214_v47 }
 0x1a1   : > { %v1014_v45 = vpack.c.bf16 %v991_v51, %v990_v54  ;;  %v960_v55 = vadd.f32 %v5406_v7, %v921_v39  ;;  %v4459_v56 = vpop.f32.mrb[20].mxu0  ;;  %v1446_v54 = vld [vmem:[%s6563_s7 + $0x1c0] sm:$0xff]  ;;  %v1447_v39 = vld [vmem:[%s6563_s7 + $0x1c8] sm:$0xff] }
 0x1a2   : > { %v993_v57 = vmax.f32 %v961_v42, 0.0  ;;  %v924_v58 = vmul.f32 %v4459_v56, %v5401_v5  ;;  %v837_v59 = vpop.f32.mrb[21].mxu0  ;;  %v1451_v42 = vld [vmem:[%s6563_s7 + $0x1e8] sm:$0xff] }
 0x1a3   : > { %v992_v60 = vmax.f32 %v960_v55, 0.0  ;;  %4499 = vmatprep.mubr.msk.bf16.mxu1 %vm1054_vm2, %v1014_v45  ;;  %v923_v61 = vmul.f32 %v5401_v5, %v837_v59  ;;  %v4222_v55 = vcombine.low %v1447_v39, %v1451_v42  ;;  %v4223_v56 = vcombine.high %v1447_v39, %v1451_v42  ;;  %v1393_v59 = vld [vmem:[%s6563_s7 + $0x18] sm:$0xff]  ;;  %v1416_v39 = vld [vmem:[%s6563_s7 + $0xd0] sm:$0xff] }
 0x1a4   : > { %v963_v62 = vadd.f32 %v5406_v7, %v924_v58  ;;  %v1396_v58 = vld [vmem:[%s6563_s7 + $0x30] sm:$0xff] }
 0x1a5   : > { %v1015_v63 = vpack.c.bf16 %v993_v57, %v992_v60  ;;  %v962_v0 = vadd.f32 %v5406_v7, %v923_v61  ;;  %v4462_v1 = vpop.f32.mrb[22].mxu0  ;;  %1981 = vmatprep.subr.bf16.mxu1 %v4223_v56  ;;  %v1392_v57 = vld [vmem:[%s6563_s7 + $0x10] sm:$0xff]  ;;  %v4998_v60 = vmov 0   ;;  %v1421_v56 = vld [vmem:[%s6563_s7 + $0xf8] sm:$0xff] }
 0x1a6   : > { %v995_v2 = vmax.f32 %v963_v62, 0.0  ;;  %v926_v3 = vmul.f32 %v4462_v1, %v5401_v5  ;;  %v847_v4 = vpop.f32.mrb[23].mxu0  ;;  %1982 = vmatpush1.bf16.msra.mxu1 %v4222_v55  ;;  %1806 = vmatprep.mubr.bf16.mxu0 %v4998_v60  ;;  %v4168_v61 = vcombine.low %v1392_v57, %v1396_v58  ;;  %v4169_v62 = vcombine.high %v1392_v57, %v1396_v58  ;;  %v1417_v55 = vld [vmem:[%s6563_s7 + $0xd8] sm:$0xff] }
 0x1a7   : > { %4500 = vmatmul.mubr.msk.bf16.gmra.mrb[16].mxu1 %vm1054_vm2, %v1015_v63  ;;  %v994_v6 = vmax.f32 %v962_v0, 0.0  ;;  %v925_v8 = vmul.f32 %v5401_v5, %v847_v4  ;;  %v1397_v63 = vld [vmem:[%s6563_s7 + $0x38] sm:$0xff]  ;;  %v5555_v4 = vld [vmem:[#allocation8] ss:$0 sm:$0xff] }
 0x1a8   : > { %v965_v9 = vadd.f32 %v5406_v7, %v926_v3  ;;  %v4170_v0 = vcombine.low %v1393_v59, %v1397_v63  ;;  %v4171_v1 = vcombine.high %v1393_v59, %v1397_v63 }
 0x1a9   : > { %v1016_v10 = vpack.c.bf16 %v995_v2, %v994_v6  ;;  %v964_v11 = vadd.f32 %v5406_v7, %v925_v8  ;;  %v4465_v12 = vpop.f32.mrb[24].mxu0  ;;  %v5553_v2 = vld [vmem:[#allocation6] ss:$0 sm:$0xff] }
 0x1aa   : > { %v997_v13 = vmax.f32 %v965_v9, 0.0  ;;  %v928_v14 = vmul.f32 %v4465_v12, %v5401_v5  ;;  %v857_v15 = vpop.f32.mrb[25].mxu0  ;;  %2353 = vmatprep.subr.bf16.mxu1 %v4171_v1 }
 0x1ab   : > { %v996_v16 = vmax.f32 %v964_v11, 0.0  ;;  %4503 = vmatprep.mubr.msk.bf16.mxu1 %vm1054_vm2, %v1016_v10  ;;  %v927_v17 = vmul.f32 %v5401_v5, %v857_v15 }
 0x1ac   : > { %v967_v18 = vadd.f32 %v5406_v7, %v928_v14 }
 0x1ad   : > { %v1017_v19 = vpack.c.bf16 %v997_v13, %v996_v16  ;;  %v966_v20 = vadd.f32 %v5406_v7, %v927_v17  ;;  %v4468_v21 = vpop.f32.mrb[26].mxu0 }
 0x1ae   : > { %v999_v22 = vmax.f32 %v967_v18, 0.0  ;;  %v930_v23 = vmul.f32 %v4468_v21, %v5401_v5  ;;  %v867_v24 = vpop.f32.mrb[27].mxu0 }
 0x1af   : > { %4504 = vmatmul.mubr.msk.bf16.gmra.mrb[20].mxu1 %vm1054_vm2, %v1017_v19  ;;  %v998_v25 = vmax.f32 %v966_v20, 0.0  ;;  %v929_v26 = vmul.f32 %v5401_v5, %v867_v24  ;;  %v1400_v20 = vld [vmem:[%s6563_s7 + $0x50] sm:$0xff] }
 0x1b0   : > { %v969_v27 = vadd.f32 %v5406_v7, %v930_v23  ;;  %v1404_v24 = vld [vmem:[%s6563_s7 + $0x70] sm:$0xff] }
 0x1b1   : > { %v1018_v28 = vpack.c.bf16 %v999_v22, %v998_v25  ;;  %v968_v29 = vadd.f32 %v5406_v7, %v929_v26  ;;  %v4471_v30 = vpop.f32.mrb[28].mxu0  ;;  %v1401_v25 = vld [vmem:[%s6563_s7 + $0x58] sm:$0xff] }
 0x1b2   : > { %v1001_v31 = vmax.f32 %v969_v27, 0.0  ;;  %v932_v32 = vmul.f32 %v4471_v30, %v5401_v5  ;;  %v877_v33 = vpop.f32.mrb[29].mxu0  ;;  %v1405_v26 = vld [vmem:[%s6563_s7 + $0x78] sm:$0xff] }
 0x1b3   : > { %v1000_v34 = vmax.f32 %v968_v29, 0.0  ;;  %4507 = vmatprep.mubr.msk.bf16.mxu1 %vm1054_vm2, %v1018_v28  ;;  %v931_v35 = vmul.f32 %v5401_v5, %v877_v33  ;;  %v5586_v33 = vld [vmem:[%s6563_s7 + $0x90] sm:$0xff] }
 0x1b4   : > { %v971_v36 = vadd.f32 %v5406_v7, %v932_v32 }
 0x1b5   : > { %v1019_v37 = vpack.c.bf16 %v1001_v31, %v1000_v34  ;;  %v970_v38 = vadd.f32 %v5406_v7, %v931_v35  ;;  %v4474_v40 = vpop.f32.mrb[30].mxu0 }
 0x1b6   : > { %v1003_v41 = vmax.f32 %v971_v36, 0.0  ;;  %v934_v43 = vmul.f32 %v4474_v40, %v5401_v5  ;;  %v887_v44 = vpop.f32.mrb[31].mxu0  ;;  %v1412_v40 = vld [vmem:[%s6563_s7 + $0xb0] sm:$0xff] }
 0x1b7   : > { %4508 = vmatmul.mubr.msk.bf16.gmra.mrb[24].mxu1 %vm1054_vm2, %v1019_v37  ;;  %v1002_v46 = vmax.f32 %v970_v38, 0.0  ;;  %v933_v47 = vmul.f32 %v5401_v5, %v887_v44  ;;  %v1450_v5 = vld [vmem:[%s6563_s7 + $0x1e0] sm:$0xff]  ;;  %v4177_v37 = vcombine.high %v1400_v20, %v1404_v24  ;;  %v4179_v38 = vcombine.high %v1401_v25, %v1405_v26 }
 0x1b8   : > { %v973_v48 = vadd.f32 %v5406_v7, %v934_v43  ;;  %v4220_v45 = vcombine.low %v1446_v54, %v1450_v5  ;;  %v1413_v43 = vld [vmem:[%s6563_s7 + $0xb8] sm:$0xff] }
 0x1b9   : > { %v1020_v49 = vpack.c.bf16 %v1003_v41, %v1002_v46  ;;  %v972_v50 = vadd.f32 %v5406_v7, %v933_v47  ;;  %v4221_v7 = vcombine.high %v1446_v54, %v1450_v5  ;;  %v1409_v41 = vld [vmem:[%s6563_s7 + $0x98] sm:$0xff] }
 0x1ba   : > { %v1005_v51 = vmax.f32 %v973_v48, 0.0  ;;  %v4187_v54 = vcombine.high %v1409_v41, %v1413_v43  ;;  %v4186_v1 = vcombine.low %v1409_v41, %v1413_v43 }
 0x1bb   : > { %v1004_v52 = vmax.f32 %v972_v50, 0.0  ;;  %4511 = vmatprep.mubr.msk.bf16.mxu1 %vm1054_vm2, %v1020_v49  ;;  %1788 = vmatprep.subr.bf16.mxu0 %v4221_v7  ;;  %v4176_v49 = vcombine.low %v1400_v20, %v1404_v24  ;;  %v4178_v50 = vcombine.low %v1401_v25, %v1405_v26  ;;  %v1432_v26 = vld [vmem:[%s6563_s7 + $0x150] sm:$0xff] }
 0x1bc   : > { %1789 = vmatpush1.bf16.msra.mxu0 %v4220_v45  ;;  %v1420_v45 = vld [vmem:[%s6563_s7 + $0xf0] sm:$0xff] }
 0x1bd   : > { %v1021_v53 = vpack.c.bf16 %v1005_v51, %v1004_v52  ;;  %2160 = vmatprep.subr.bf16.mxu0 %v4169_v62 }
 0x1bf   : > { %4512 = vmatmul.mubr.msk.bf16.gmra.mrb[28].mxu1 %vm1054_vm2, %v1021_v53  ;;  %v4185_v53 = vcombine.high %v5586_v33, %v1412_v40 }
 0x1c0   : > { %1999 = vmatprep.mubr.bf16.mxu1 %v4998_v60 }
 0x25a   : > { %v4485_v3 = vpop.f32.mrb[0].mxu1 }
 0x25b   : > { %v1273_v6 = vmul.f32 %v4485_v3, %v5553_v2  ;;  %v1137_v8 = vpop.f32.mrb[1].mxu1 }
 0x25c   : > { %v1271_v9 = vmul.f32 %v5553_v2, %v1137_v8  ;;  %v4486_v10 = vpop.f32.mrb[2].mxu1 }
 0x25d   : > { %v1312_v11 = vadd.f32 %v5555_v4, %v1273_v6  ;;  %v1274_v12 = vmul.f32 %v4486_v10, %v5553_v2  ;;  %v1140_v13 = vpop.f32.mrb[3].mxu1  ;;  %v4195_v10 = vcombine.high %v1417_v55, %v1421_v56 }
 0x25e   : > { %v1310_v14 = vadd.f32 %v5555_v4, %v1271_v9  ;;  %v1272_v15 = vmul.f32 %v5553_v2, %v1140_v13  ;;  %v4193_v9 = vcombine.high %v1416_v39, %v1420_v45 }
 0x25f   : > { %v1313_v16 = vadd.f32 %v5555_v4, %v1274_v12  ;;  %v1344_v18 = vmax.f32 %v1312_v11, 0.0  ;;  %v1424_v11 = vld [vmem:[%s6563_s7 + $0x110] sm:$0xff] }
 0x260   : > { %v1311_v17 = vadd.f32 %v5555_v4, %v1272_v15  ;;  %v1342_v21 = vmax.f32 %v1310_v14, 0.0  ;;  %v1428_v14 = vld [vmem:[%s6563_s7 + $0x130] sm:$0xff]  ;;  %v1425_v15 = vld [vmem:[%s6563_s7 + $0x118] sm:$0xff] }
 0x261   : > { %v1345_v19 = vmax.f32 %v1313_v16, 0.0  ;;  %v1429_v16 = vld [vmem:[%s6563_s7 + $0x138] sm:$0xff]  ;;  %v4201_v24 = vcombine.high %v1424_v11, %v1428_v14 }
 0x262   : > { %v1343_v22 = vmax.f32 %v1311_v17, 0.0  ;;  %v4489_v23 = vpop.f32.mrb[4].mxu1  ;;  %v4203_v25 = vcombine.high %v1425_v15, %v1429_v16 }
 0x263   : > { %v5577_v27 = vpack.c.bf16 %v1345_v19, %v1344_v18  ;;  %v1277_v28 = vmul.f32 %v4489_v23, %v5553_v2  ;;  %v1153_v29 = vpop.f32.mrb[5].mxu1 }
 0x264   : > { %v5580_v30 = vpack.c.bf16 %v1343_v22, %v1342_v21  ;;  %v1275_v31 = vmul.f32 %v5553_v2, %v1153_v29  ;;  %v4490_v32 = vpop.f32.mrb[6].mxu1  ;;  %v4192_v21 = vcombine.low %v1416_v39, %v1420_v45  ;;  %v4194_v22 = vcombine.low %v1417_v55, %v1421_v56 }
 0x265   : > { %v1316_v34 = vadd.f32 %v5555_v4, %v1277_v28  ;;  %v1278_v35 = vmul.f32 %v4490_v32, %v5553_v2  ;;  %v1156_v36 = vpop.f32.mrb[7].mxu1  ;;  %v1436_v28 = vld [vmem:[%s6563_s7 + $0x170] sm:$0xff]  ;;  %v1433_v32 = vld [vmem:[%s6563_s7 + $0x158] sm:$0xff] }
 0x266   : > { %1807 = vmatmul.mubr.bf16.vlgmr.msra.gmra.mrb[32].mxu0 %v5580_v30  ;;  %2000 = vmatmul.mubr.bf16.vlgmr.msra.gmra.mrb[32].mxu1 %v5580_v30  ;;  %v1314_v44 = vadd.f32 %v5555_v4, %v1275_v31  ;;  %v1276_v46 = vmul.f32 %v5553_v2, %v1156_v36  ;;  %v4208_v55 = vcombine.low %v1432_v26, %v1436_v28 }
 0x267   : > { %v1348_v47 = vmax.f32 %v1316_v34, 0.0  ;;  %2161 = vmatpush1.bf16.msra.mxu0 %v4168_v61  ;;  %2354 = vmatpush1.bf16.msra.mxu1 %v4170_v0  ;;  %v1317_v48 = vadd.f32 %v5555_v4, %v1278_v35  ;;  %v4184_v61 = vcombine.low %v5586_v33, %v1412_v40  ;;  %v1437_v33 = vld [vmem:[%s6563_s7 + $0x178] sm:$0xff] }
 0x268   : > { %v1346_v51 = vmax.f32 %v1314_v44, 0.0  ;;  %v1315_v52 = vadd.f32 %v5555_v4, %v1276_v46  ;;  %1816 = vmatprep.mubr.bf16.mxu0 %v4998_v60  ;;  %2009 = vmatprep.mubr.bf16.mxu1 %v4998_v60  ;;  %v4209_v44 = vcombine.high %v1432_v26, %v1436_v28  ;;  %v4210_v56 = vcombine.low %v1433_v32, %v1437_v33 }
 0x269   : > { %v1349_v5 = vmax.f32 %v1317_v48, 0.0  ;;  %2162 = vmatprep.subr.bf16.mxu0 %v4177_v37  ;;  %2355 = vmatprep.subr.bf16.mxu1 %v4179_v38  ;;  %v4200_v37 = vcombine.low %v1424_v11, %v1428_v14  ;;  %v4202_v38 = vcombine.low %v1425_v15, %v1429_v16 }
 0x26a   : > { %v1347_v7 = vmax.f32 %v1315_v52, 0.0  ;;  %v4493_v42 = vpop.f32.mrb[8].mxu1 }
 0x26b   : > { %v5620_v57 = vpack.c.bf16 %v1349_v5, %v1348_v47  ;;  %v1281_v58 = vmul.f32 %v4493_v42, %v5553_v2  ;;  %2163 = vmatpush1.bf16.msra.mxu0 %v4176_v49  ;;  %2356 = vmatpush1.bf16.msra.mxu1 %v4178_v50  ;;  %v1169_v59 = vpop.f32.mrb[9].mxu1  ;;  %v4211_v49 = vcombine.high %v1433_v32, %v1437_v33  ;;  %v1440_v50 = vld [vmem:[%s6563_s7 + $0x190] sm:$0xff]  ;;  %v1445_v5 = vld [vmem:[%s6563_s7 + $0x1b8] sm:$0xff] }
 0x26c   : > { %v5624_v62 = vpack.c.bf16 %v1347_v7, %v1346_v51  ;;  %v1279_v63 = vmul.f32 %v5553_v2, %v1169_v59  ;;  %v4494_v0 = vpop.f32.mrb[10].mxu1  ;;  %2164 = vmatprep.subr.bf16.mxu0 %v4185_v53  ;;  %2357 = vmatprep.subr.bf16.mxu1 %v4187_v54  ;;  %v1444_v53 = vld [vmem:[%s6563_s7 + $0x1b0] sm:$0xff]  ;;  %v1441_v54 = vld [vmem:[%s6563_s7 + $0x198] sm:$0xff] }
 0x26d   : > { %v1320_v3 = vadd.f32 %v5555_v4, %v1281_v58  ;;  %v1282_v6 = vmul.f32 %v4494_v0, %v5553_v2  ;;  %v1172_v8 = vpop.f32.mrb[11].mxu1  ;;  %v4217_v59 = vcombine.high %v1440_v50, %v1444_v53  ;;  %v1452_v0 = vld [vmem:[%s6563_s7 + $0x1f0] sm:$0xff] }
 0x26e   : > { %1817 = vmatmul.mubr.bf16.gmra.mrb[36].mxu0 %v5577_v27  ;;  %2010 = vmatmul.mubr.bf16.gmra.mrb[36].mxu1 %v5577_v27  ;;  %v1318_v12 = vadd.f32 %v5555_v4, %v1279_v63  ;;  %v1280_v13 = vmul.f32 %v5553_v2, %v1172_v8  ;;  %v1448_v63 = vld [vmem:[%s6563_s7 + $0x1d0] sm:$0xff]  ;;  %v1453_v8 = vld [vmem:[%s6563_s7 + $0x1f8] sm:$0xff] }
 0x26f   : > { %1826 = vmatprep.mubr.bf16.mxu0 %v4998_v60  ;;  %2019 = vmatprep.mubr.bf16.mxu1 %v4998_v60  ;;  %v1352_v17 = vmax.f32 %v1320_v3, 0.0  ;;  %v1321_v18 = vadd.f32 %v5555_v4, %v1282_v6  ;;  %v1449_v6 = vld [vmem:[%s6563_s7 + $0x1d8] sm:$0xff] }
 0x270   : > { %v1350_v19 = vmax.f32 %v1318_v12, 0.0  ;;  %v1319_v20 = vadd.f32 %v5555_v4, %v1280_v13  ;;  %2165 = vmatpush1.bf16.msra.mxu0 %v4184_v61  ;;  %2358 = vmatpush1.bf16.msra.mxu1 %v4186_v1  ;;  %v4219_v61 = vcombine.high %v1441_v54, %v1445_v5  ;;  %v4216_v12 = vcombine.low %v1440_v50, %v1444_v53 }
 0x271   : > { %v1353_v23 = vmax.f32 %v1321_v18, 0.0  ;;  %2166 = vmatprep.subr.bf16.mxu0 %v4193_v9  ;;  %2359 = vmatprep.subr.bf16.mxu1 %v4195_v10  ;;  %v4218_v13 = vcombine.low %v1441_v54, %v1445_v5 }
 0x272   : > { %v1351_v29 = vmax.f32 %v1319_v20, 0.0  ;;  %v4497_v31 = vpop.f32.mrb[12].mxu1 }
 0x273   : > { %v5661_v34 = vpack.c.bf16 %v1353_v23, %v1352_v17  ;;  %v1285_v35 = vmul.f32 %v4497_v31, %v5553_v2  ;;  %v1185_v36 = vpop.f32.mrb[13].mxu1  ;;  %v4225_v17 = vcombine.high %v1448_v63, %v1452_v0  ;;  %v4226_v31 = vcombine.low %v1449_v6, %v1453_v8 }
 0x274   : > { %v5664_v40 = vpack.c.bf16 %v1351_v29, %v1350_v19  ;;  %v1283_v41 = vmul.f32 %v5553_v2, %v1185_v36  ;;  %v4498_v43 = vpop.f32.mrb[14].mxu1  ;;  %2167 = vmatpush1.bf16.msra.mxu0 %v4192_v21  ;;  %2360 = vmatpush1.bf16.msra.mxu1 %v4194_v22  ;;  %v4227_v21 = vcombine.high %v1449_v6, %v1453_v8 }
 0x275   : > { %v1324_v46 = vadd.f32 %v5555_v4, %v1285_v35  ;;  %v1286_v47 = vmul.f32 %v4498_v43, %v5553_v2  ;;  %v1188_v48 = vpop.f32.mrb[15].mxu1  ;;  %2168 = vmatprep.subr.bf16.mxu0 %v4201_v24  ;;  %2361 = vmatprep.subr.bf16.mxu1 %v4203_v25  ;;  %v4224_v29 = vcombine.low %v1448_v63, %v1452_v0 }
 0x276   : > { %1827 = vmatmul.mubr.bf16.gmra.mrb[40].mxu0 %v5624_v62  ;;  %2020 = vmatmul.mubr.bf16.gmra.mrb[40].mxu1 %v5624_v62  ;;  %v1322_v51 = vadd.f32 %v5555_v4, %v1283_v41  ;;  %v1284_v52 = vmul.f32 %v5553_v2, %v1188_v48 }
 0x277   : > { %1836 = vmatprep.mubr.bf16.mxu0 %v4998_v60  ;;  %2029 = vmatprep.mubr.bf16.mxu1 %v4998_v60  ;;  %v1356_v39 = vmax.f32 %v1324_v46, 0.0  ;;  %v1325_v7 = vadd.f32 %v5555_v4, %v1286_v47 }
 0x278   : > { %v1354_v42 = vmax.f32 %v1322_v51, 0.0  ;;  %v1323_v45 = vadd.f32 %v5555_v4, %v1284_v52  ;;  %2169 = vmatpush1.bf16.msra.mxu0 %v4200_v37  ;;  %2362 = vmatpush1.bf16.msra.mxu1 %v4202_v38 }
 0x279   : > { %v1357_v58 = vmax.f32 %v1325_v7, 0.0  ;;  %2170 = vmatprep.subr.bf16.mxu0 %v4209_v44  ;;  %2363 = vmatprep.subr.bf16.mxu1 %v4211_v49 }
 0x27a   : > { %v1355_v1 = vmax.f32 %v1323_v45, 0.0  ;;  %v4501_v3 = vpop.f32.mrb[16].mxu1 }
 0x27b   : > { %v5701_v9 = vpack.c.bf16 %v1357_v58, %v1356_v39  ;;  %v1289_v10 = vmul.f32 %v4501_v3, %v5553_v2  ;;  %v1201_v11 = vpop.f32.mrb[17].mxu1 }
 0x27c   : > { %v5704_v14 = vpack.c.bf16 %v1355_v1, %v1354_v42  ;;  %v1287_v15 = vmul.f32 %v5553_v2, %v1201_v11  ;;  %v4502_v16 = vpop.f32.mrb[18].mxu1  ;;  %2171 = vmatpush1.bf16.msra.mxu0 %v4208_v55  ;;  %2364 = vmatpush1.bf16.msra.mxu1 %v4210_v56 }
 0x27d   : > { %v1328_v18 = vadd.f32 %v5555_v4, %v1289_v10  ;;  %v1290_v19 = vmul.f32 %v4502_v16, %v5553_v2  ;;  %v1204_v20 = vpop.f32.mrb[19].mxu1  ;;  %2172 = vmatprep.subr.bf16.mxu0 %v4217_v59  ;;  %2365 = vmatprep.subr.bf16.mxu1 %v4219_v61 }
 0x27e   : > { %1837 = vmatmul.mubr.bf16.gmra.mrb[44].mxu0 %v5620_v57  ;;  %2030 = vmatmul.mubr.bf16.gmra.mrb[44].mxu1 %v5620_v57  ;;  %v1326_v22 = vadd.f32 %v5555_v4, %v1287_v15  ;;  %v1288_v23 = vmul.f32 %v5553_v2, %v1204_v20 }
 0x27f   : > { %1846 = vmatprep.mubr.bf16.mxu0 %v4998_v60  ;;  %2039 = vmatprep.mubr.bf16.mxu1 %v4998_v60  ;;  %v1360_v24 = vmax.f32 %v1328_v18, 0.0  ;;  %v1329_v25 = vadd.f32 %v5555_v4, %v1290_v19 }
 0x280   : > { %v1358_v26 = vmax.f32 %v1326_v22, 0.0  ;;  %v1327_v28 = vadd.f32 %v5555_v4, %v1288_v23  ;;  %2173 = vmatpush1.bf16.msra.mxu0 %v4216_v12  ;;  %2366 = vmatpush1.bf16.msra.mxu1 %v4218_v13 }
 0x281   : > { %v1361_v32 = vmax.f32 %v1329_v25, 0.0  ;;  %2174 = vmatprep.subr.bf16.mxu0 %v4225_v17  ;;  %2367 = vmatprep.subr.bf16.mxu1 %v4227_v21 }
 0x282   : > { %v1359_v33 = vmax.f32 %v1327_v28, 0.0  ;;  %v4505_v35 = vpop.f32.mrb[20].mxu1 }
 0x283   : > { %v5717_v36 = vpack.c.bf16 %v1361_v32, %v1360_v24  ;;  %v1293_v37 = vmul.f32 %v4505_v35, %v5553_v2  ;;  %v1217_v38 = vpop.f32.mrb[21].mxu1 }
 0x284   : > { %v5720_v41 = vpack.c.bf16 %v1359_v33, %v1358_v26  ;;  %v1291_v43 = vmul.f32 %v5553_v2, %v1217_v38  ;;  %v4506_v44 = vpop.f32.mrb[22].mxu1  ;;  %2175 = vmatpush1.bf16.msra.mxu0 %v4224_v29  ;;  %2368 = vmatpush1.bf16.msra.mxu1 %v4226_v31 }
 0x285   : > { %v1332_v46 = vadd.f32 %v5555_v4, %v1293_v37  ;;  %v1294_v47 = vmul.f32 %v4506_v44, %v5553_v2  ;;  %v1220_v48 = vpop.f32.mrb[23].mxu1 }
 0x286   : > { %1847 = vmatmul.mubr.bf16.gmra.mrb[48].mxu0 %v5664_v40  ;;  %2040 = vmatmul.mubr.bf16.gmra.mrb[48].mxu1 %v5664_v40  ;;  %v1330_v49 = vadd.f32 %v5555_v4, %v1291_v43  ;;  %v1292_v50 = vmul.f32 %v5553_v2, %v1220_v48 }
 0x287   : > { %1856 = vmatprep.mubr.bf16.mxu0 %v4998_v60  ;;  %2049 = vmatprep.mubr.bf16.mxu1 %v4998_v60  ;;  %v1364_v51 = vmax.f32 %v1332_v46, 0.0  ;;  %v1333_v52 = vadd.f32 %v5555_v4, %v1294_v47 }
 0x288   : > { %v1362_v53 = vmax.f32 %v1330_v49, 0.0  ;;  %v1331_v54 = vadd.f32 %v5555_v4, %v1292_v50 }
 0x289   : > { %v1365_v5 = vmax.f32 %v1333_v52, 0.0 }
 0x28a   : > { %v1363_v39 = vmax.f32 %v1331_v54, 0.0  ;;  %v4509_v7 = vpop.f32.mrb[24].mxu1 }
 0x28b   : > { %v5733_v42 = vpack.c.bf16 %v1365_v5, %v1364_v51  ;;  %v1297_v45 = vmul.f32 %v4509_v7, %v5553_v2  ;;  %v1233_v55 = vpop.f32.mrb[25].mxu1 }
 0x28c   : > { %v5736_v56 = vpack.c.bf16 %v1363_v39, %v1362_v53  ;;  %v1295_v58 = vmul.f32 %v5553_v2, %v1233_v55  ;;  %v4510_v59 = vpop.f32.mrb[26].mxu1 }
 0x28d   : > { %v1336_v61 = vadd.f32 %v5555_v4, %v1297_v45  ;;  %v1298_v63 = vmul.f32 %v4510_v59, %v5553_v2  ;;  %v1236_v0 = vpop.f32.mrb[27].mxu1 }
 0x28e   : > { %1857 = vmatmul.mubr.bf16.gmra.mrb[52].mxu0 %v5661_v34  ;;  %2050 = vmatmul.mubr.bf16.gmra.mrb[52].mxu1 %v5661_v34  ;;  %v1334_v1 = vadd.f32 %v5555_v4, %v1295_v58  ;;  %v1296_v3 = vmul.f32 %v5553_v2, %v1236_v0 }
 0x28f   : > { %1866 = vmatprep.mubr.bf16.mxu0 %v4998_v60  ;;  %2059 = vmatprep.mubr.bf16.mxu1 %v4998_v60  ;;  %v1368_v6 = vmax.f32 %v1336_v61, 0.0  ;;  %v1337_v8 = vadd.f32 %v5555_v4, %v1298_v63 }
 0x290   : > { %v1366_v10 = vmax.f32 %v1334_v1, 0.0  ;;  %v1335_v11 = vadd.f32 %v5555_v4, %v1296_v3 }
 0x291   : > { %v1369_v12 = vmax.f32 %v1337_v8, 0.0 }
 0x292   : > { %v1367_v13 = vmax.f32 %v1335_v11, 0.0  ;;  %v4513_v15 = vpop.f32.mrb[28].mxu1 }
 0x293   : > { %v5749_v16 = vpack.c.bf16 %v1369_v12, %v1368_v6  ;;  %v1301_v17 = vmul.f32 %v4513_v15, %v5553_v2  ;;  %v1249_v18 = vpop.f32.mrb[29].mxu1 }
 0x294   : > { %v5752_v19 = vpack.c.bf16 %v1367_v13, %v1366_v10  ;;  %v1299_v20 = vmul.f32 %v5553_v2, %v1249_v18  ;;  %v4514_v21 = vpop.f32.mrb[30].mxu1 }
 0x295   : > { %v1340_v22 = vadd.f32 %v5555_v4, %v1301_v17  ;;  %v1302_v23 = vmul.f32 %v4514_v21, %v5553_v2  ;;  %v1252_v24 = vpop.f32.mrb[31].mxu1 }
 0x296   : > { %1867 = vmatmul.mubr.bf16.gmra.mrb[56].mxu0 %v5704_v14  ;;  %2060 = vmatmul.mubr.bf16.gmra.mrb[56].mxu1 %v5704_v14  ;;  %v1338_v25 = vadd.f32 %v5555_v4, %v1299_v20  ;;  %v1300_v26 = vmul.f32 %v5553_v2, %v1252_v24  ;;  %v2548_v2 = vlaneseq }
 0x297   : > { %1876 = vmatprep.mubr.bf16.mxu0 %v4998_v60  ;;  %2069 = vmatprep.mubr.bf16.mxu1 %v4998_v60  ;;  %v1372_v28 = vmax.f32 %v1340_v22, 0.0  ;;  %v1341_v29 = vadd.f32 %v5555_v4, %v1302_v23 }
 0x298   : > { %v1370_v31 = vmax.f32 %v1338_v25, 0.0  ;;  %v1339_v32 = vadd.f32 %v5555_v4, %v1300_v26  ;;  %v5843_v4 = vshrl.u32 %v2548_v2, 7 }
 0x299   : > { %v1373_v33 = vmax.f32 %v1341_v29, 0.0 }
 0x29a   : > { %v1371_v35 = vmax.f32 %v1339_v32, 0.0 }
 0x29b   : > { %v5765_v37 = vpack.c.bf16 %v1373_v33, %v1372_v28 }
 0x29c   : > { %v5767_v38 = vpack.c.bf16 %v1371_v35, %v1370_v31 }
 0x29e   : > { %1877 = vmatmul.mubr.bf16.gmra.mrb[60].mxu0 %v5701_v9  ;;  %2070 = vmatmul.mubr.bf16.gmra.mrb[60].mxu1 %v5701_v9 }
 0x29f   : > { %1886 = vmatprep.mubr.bf16.mxu0 %v4998_v60  ;;  %2079 = vmatprep.mubr.bf16.mxu1 %v4998_v60 }
 0x2a6   : > { %1887 = vmatmul.mubr.bf16.gmra.mrb[64].mxu0 %v5720_v41  ;;  %2080 = vmatmul.mubr.bf16.gmra.mrb[64].mxu1 %v5720_v41 }
 0x2a7   : > { %1896 = vmatprep.mubr.bf16.mxu0 %v4998_v60  ;;  %2089 = vmatprep.mubr.bf16.mxu1 %v4998_v60 }
 0x2ae   : > { %1897 = vmatmul.mubr.bf16.gmra.mrb[68].mxu0 %v5717_v36  ;;  %2090 = vmatmul.mubr.bf16.gmra.mrb[68].mxu1 %v5717_v36 }
 0x2af   : > { %1906 = vmatprep.mubr.bf16.mxu0 %v4998_v60  ;;  %2099 = vmatprep.mubr.bf16.mxu1 %v4998_v60 }
 0x2b6   : > { %1907 = vmatmul.mubr.bf16.gmra.mrb[72].mxu0 %v5736_v56  ;;  %2100 = vmatmul.mubr.bf16.gmra.mrb[72].mxu1 %v5736_v56 }
 0x2b7   : > { %1916 = vmatprep.mubr.bf16.mxu0 %v4998_v60  ;;  %2109 = vmatprep.mubr.bf16.mxu1 %v4998_v60 }
 0x2be   : > { %1917 = vmatmul.mubr.bf16.gmra.mrb[76].mxu0 %v5733_v42  ;;  %2110 = vmatmul.mubr.bf16.gmra.mrb[76].mxu1 %v5733_v42 }
 0x2bf   : > { %1926 = vmatprep.mubr.bf16.mxu0 %v4998_v60  ;;  %2119 = vmatprep.mubr.bf16.mxu1 %v4998_v60 }
 0x2c6   : > { %1927 = vmatmul.mubr.bf16.gmra.mrb[80].mxu0 %v5752_v19  ;;  %2120 = vmatmul.mubr.bf16.gmra.mrb[80].mxu1 %v5752_v19 }
 0x2c7   : > { %1936 = vmatprep.mubr.bf16.mxu0 %v4998_v60  ;;  %2129 = vmatprep.mubr.bf16.mxu1 %v4998_v60 }
 0x2ce   : > { %1937 = vmatmul.mubr.bf16.gmra.mrb[84].mxu0 %v5749_v16  ;;  %2130 = vmatmul.mubr.bf16.gmra.mrb[84].mxu1 %v5749_v16 }
 0x2cf   : > { %1946 = vmatprep.mubr.bf16.mxu0 %v4998_v60  ;;  %2139 = vmatprep.mubr.bf16.mxu1 %v4998_v60 }
 0x2d6   : > { %1947 = vmatmul.mubr.bf16.gmra.mrb[88].mxu0 %v5767_v38  ;;  %2140 = vmatmul.mubr.bf16.gmra.mrb[88].mxu1 %v5767_v38 }
 0x2d7   : > { %1956 = vmatprep.mubr.bf16.mxu0 %v4998_v60  ;;  %2149 = vmatprep.mubr.bf16.mxu1 %v4998_v60 }
 0x2de   : > { %1957 = vmatmul.mubr.bf16.gmra.mrb[92].mxu0 %v5765_v37  ;;  %2150 = vmatmul.mubr.bf16.gmra.mrb[92].mxu1 %v5765_v37 }
 0x2df   : > { %2192 = vmatprep.mubr.bf16.mxu0 %v4998_v60  ;;  %2385 = vmatprep.mubr.bf16.mxu1 %v4998_v60 }
 0x2e6   : > { %2193 = vmatmul.mubr.bf16.vlgmr.msra.gmra.mrb[96].mxu0 %v5580_v30  ;;  %2386 = vmatmul.mubr.bf16.vlgmr.msra.gmra.mrb[96].mxu1 %v5580_v30  ;;  %v5851_v30 = vsub.s32 2, %v5843_v4 }
 0x2e7   : > { %2202 = vmatprep.mubr.bf16.mxu0 %v4998_v60  ;;  %2395 = vmatprep.mubr.bf16.mxu1 %v4998_v60 }
 0x2ee   : > { %2203 = vmatmul.mubr.bf16.gmra.mrb[100].mxu0 %v5577_v27  ;;  %2396 = vmatmul.mubr.bf16.gmra.mrb[100].mxu1 %v5577_v27  ;;  %v5848_v27 = vsub.s32 0, %v5843_v4 }
 0x2ef   : > { %2212 = vmatprep.mubr.bf16.mxu0 %v4998_v60  ;;  %2405 = vmatprep.mubr.bf16.mxu1 %v4998_v60 }
 0x2f6   : > { %2213 = vmatmul.mubr.bf16.gmra.mrb[104].mxu0 %v5624_v62  ;;  %2406 = vmatmul.mubr.bf16.gmra.mrb[104].mxu1 %v5624_v62  ;;  %v5857_v62 = vsub.s32 1, %v5843_v4 }
 0x2f7   : > { %2222 = vmatprep.mubr.bf16.mxu0 %v4998_v60  ;;  %2415 = vmatprep.mubr.bf16.mxu1 %v4998_v60 }
 0x2fe   : > { %2223 = vmatmul.mubr.bf16.gmra.mrb[108].mxu0 %v5620_v57  ;;  %2416 = vmatmul.mubr.bf16.gmra.mrb[108].mxu1 %v5620_v57  ;;  %v2546_v57 = vld [vmem:[%s6564_s8] sm:$0xff] }
 0x2ff   : > { %2232 = vmatprep.mubr.bf16.mxu0 %v4998_v60  ;;  %2425 = vmatprep.mubr.bf16.mxu1 %v4998_v60 }
 0x306   : > { %2233 = vmatmul.mubr.bf16.gmra.mrb[112].mxu0 %v5664_v40  ;;  %2426 = vmatmul.mubr.bf16.gmra.mrb[112].mxu1 %v5664_v40  ;;  %v5865_v40 = vrot.slane %v2546_v57, %v5848_v27 }
 0x307   : > { %2242 = vmatprep.mubr.bf16.mxu0 %v4998_v60  ;;  %2435 = vmatprep.mubr.bf16.mxu1 %v4998_v60 }
 0x30e   : > { %2243 = vmatmul.mubr.bf16.gmra.mrb[116].mxu0 %v5661_v34  ;;  %2436 = vmatmul.mubr.bf16.gmra.mrb[116].mxu1 %v5661_v34  ;;  %v5860_v34 = vsub.s32 3, %v5843_v4 }
 0x30f   : > { %2252 = vmatprep.mubr.bf16.mxu0 %v4998_v60  ;;  %2445 = vmatprep.mubr.bf16.mxu1 %v4998_v60 }
 0x316   : > { %2253 = vmatmul.mubr.bf16.gmra.mrb[120].mxu0 %v5704_v14  ;;  %2446 = vmatmul.mubr.bf16.gmra.mrb[120].mxu1 %v5704_v14  ;;  %v5868_v14 = vrot.slane %v2546_v57, %v5851_v30 }
 0x317   : > { %2262 = vmatprep.mubr.bf16.mxu0 %v4998_v60  ;;  %2455 = vmatprep.mubr.bf16.mxu1 %v4998_v60 }
 0x31e   : > { %2263 = vmatmul.mubr.bf16.gmra.mrb[124].mxu0 %v5701_v9  ;;  %2456 = vmatmul.mubr.bf16.gmra.mrb[124].mxu1 %v5701_v9  ;;  %v2844_v9 = vld [vmem:[#allocation9] sm:$0xff] }
 0x31f   : > { %2272 = vmatprep.mubr.bf16.mxu0 %v4998_v60  ;;  %2465 = vmatprep.mubr.bf16.mxu1 %v4998_v60  ;;  %v5879_v44 = vrot.slane %v2844_v9, %v5848_v27  ;;  %v5882_v47 = vrot.slane %v2844_v9, %v5851_v30  ;;  %v5887_v51 = vrot.slane %v2844_v9, %v5857_v62 }
 0x320   : > { %v5892_v5 = vrot.slane %v2844_v9, %v5860_v34 }
 0x326   : > { %2273 = vmatmul.mubr.bf16.gmra.mrb[128].mxu0 %v5720_v41  ;;  %2466 = vmatmul.mubr.bf16.gmra.mrb[128].mxu1 %v5720_v41  ;;  %v5874_v41 = vrot.slane %v2546_v57, %v5860_v34 }
 0x327   : > { %2282 = vmatprep.mubr.bf16.mxu0 %v4998_v60  ;;  %2475 = vmatprep.mubr.bf16.mxu1 %v4998_v60 }
 0x32e   : > { %2283 = vmatmul.mubr.bf16.gmra.mrb[132].mxu0 %v5717_v36  ;;  %2476 = vmatmul.mubr.bf16.gmra.mrb[132].mxu1 %v5717_v36  ;;  %v5871_v36 = vrot.slane %v2546_v57, %v5857_v62 }
 0x32f   : > { %2292 = vmatprep.mubr.bf16.mxu0 %v4998_v60  ;;  %2485 = vmatprep.mubr.bf16.mxu1 %v4998_v60 }
 0x336   : > { %2293 = vmatmul.mubr.bf16.gmra.mrb[136].mxu0 %v5736_v56  ;;  %2486 = vmatmul.mubr.bf16.gmra.mrb[136].mxu1 %v5736_v56 }
 0x337   : > { %2302 = vmatprep.mubr.bf16.mxu0 %v4998_v60  ;;  %2495 = vmatprep.mubr.bf16.mxu1 %v4998_v60 }
 0x339   : > { %v1808_v43 = vpop.f32.mrb[32].mxu0  ;;  %v2001_v46 = vpop.f32.mrb[32].mxu1 }
 0x33a   : > { %v2588_v48 = vmul.f32 %v5865_v40, %v1808_v43  ;;  %v2590_v49 = vmul.f32 %v5868_v14, %v2001_v46  ;;  %v1810_v50 = vpop.f32.mrb[33].mxu0  ;;  %v2003_v52 = vpop.f32.mrb[33].mxu1 }
 0x33b   : > { %v2589_v53 = vmul.f32 %v5871_v36, %v1810_v50  ;;  %v2591_v54 = vmul.f32 %v5874_v41, %v2003_v52  ;;  %v1812_v39 = vpop.f32.mrb[34].mxu0  ;;  %v2005_v7 = vpop.f32.mrb[34].mxu1 }
 0x33c   : > { %v2596_v45 = vmul.f32 %v5865_v40, %v1812_v39  ;;  %v2598_v55 = vmul.f32 %v5868_v14, %v2005_v7  ;;  %v1814_v56 = vpop.f32.mrb[35].mxu0  ;;  %v2007_v58 = vpop.f32.mrb[35].mxu1  ;;  %v2886_v59 = vadd.f32 %v5879_v44, %v2588_v48  ;;  %v2888_v61 = vadd.f32 %v5882_v47, %v2590_v49 }
 0x33d   : > { %v2597_v63 = vmul.f32 %v5871_v36, %v1814_v56  ;;  %v2599_v0 = vmul.f32 %v5874_v41, %v2007_v58  ;;  %v2887_v1 = vadd.f32 %v5887_v51, %v2589_v53  ;;  %v2889_v8 = vadd.f32 %v5892_v5, %v2591_v54 }
 0x33e   : > { %v2894_v3 = vadd.f32 %v5879_v44, %v2596_v45  ;;  %v2896_v6 = vadd.f32 %v5882_v47, %v2598_v55  ;;  %2303 = vmatmul.mubr.bf16.gmra.mrb[140].mxu0 %v5733_v42  ;;  %2496 = vmatmul.mubr.bf16.gmra.mrb[140].mxu1 %v5733_v42 }
 0x33f   : > { %v2895_v10 = vadd.f32 %v5887_v51, %v2597_v63  ;;  %v2897_v11 = vadd.f32 %v5892_v5, %v2599_v0  ;;  %2312 = vmatprep.mubr.bf16.mxu0 %v4998_v60  ;;  %2505 = vmatprep.mubr.bf16.mxu1 %v4998_v60 }
 0x340   : > { %v3143_v12 = vmax.f32 %v2886_v59, %v2894_v3  ;;  %v3217_v13 = vmax.f32 %v2888_v61, %v2896_v6 }
 0x341   : > { %v3180_v15 = vmax.f32 %v2887_v1, %v2895_v10  ;;  %v3254_v17 = vmax.f32 %v2889_v8, %v2897_v11  ;;  %v1818_v18 = vpop.f32.mrb[36].mxu0  ;;  %v2011_v20 = vpop.f32.mrb[36].mxu1 }
 0x342   : > { %v2604_v21 = vmul.f32 %v5865_v40, %v1818_v18  ;;  %v2606_v42 = vmul.f32 %v5868_v14, %v2011_v20  ;;  %v1820_v22 = vpop.f32.mrb[37].mxu0  ;;  %v2013_v23 = vpop.f32.mrb[37].mxu1 }
 0x343   : > { %v2605_v24 = vmul.f32 %v5871_v36, %v1820_v22  ;;  %v2607_v25 = vmul.f32 %v5874_v41, %v2013_v23  ;;  %v1822_v26 = vpop.f32.mrb[38].mxu0  ;;  %v2015_v28 = vpop.f32.mrb[38].mxu1 }
 0x344   : > { %v2902_v29 = vadd.f32 %v5879_v44, %v2604_v21  ;;  %v2904_v31 = vadd.f32 %v5882_v47, %v2606_v42  ;;  %v2612_v32 = vmul.f32 %v5865_v40, %v1822_v26  ;;  %v2614_v33 = vmul.f32 %v5868_v14, %v2015_v28  ;;  %v1824_v35 = vpop.f32.mrb[39].mxu0  ;;  %v2017_v2 = vpop.f32.mrb[39].mxu1 }
 0x345   : > { %v2903_v57 = vadd.f32 %v5887_v51, %v2605_v24  ;;  %v2905_v9 = vadd.f32 %v5892_v5, %v2607_v25  ;;  %v2613_v43 = vmul.f32 %v5871_v36, %v1824_v35  ;;  %v2615_v46 = vmul.f32 %v5874_v41, %v2017_v2 }
 0x346   : > { %v3144_v48 = vmax.f32 %v3143_v12, %v2902_v29  ;;  %v3218_v49 = vmax.f32 %v3217_v13, %v2904_v31  ;;  %v2910_v50 = vadd.f32 %v5879_v44, %v2612_v32  ;;  %v2912_v52 = vadd.f32 %v5882_v47, %v2614_v33  ;;  %2313 = vmatmul.mubr.bf16.gmra.mrb[144].mxu0 %v5752_v19 }
 0x347   : > { %v3181_v53 = vmax.f32 %v3180_v15, %v2903_v57  ;;  %v3255_v54 = vmax.f32 %v3254_v17, %v2905_v9  ;;  %v2911_v39 = vadd.f32 %v5887_v51, %v2613_v43  ;;  %v2913_v7 = vadd.f32 %v5892_v5, %v2615_v46  ;;  %2506 = vmatmul.mubr.bf16.gmra.mrb[144].mxu1 %v5752_v19 }
 0x348   : > { %v3145_v45 = vmax.f32 %v3144_v48, %v2910_v50  ;;  %v3219_v55 = vmax.f32 %v3218_v49, %v2912_v52  ;;  %2322 = vmatprep.mubr.bf16.mxu0 %v4998_v60  ;;  %2515 = vmatprep.mubr.bf16.mxu1 %v4998_v60 }
 0x349   : > { %v3182_v56 = vmax.f32 %v3181_v53, %v2911_v39  ;;  %v3256_v58 = vmax.f32 %v3255_v54, %v2913_v7  ;;  %v1828_v59 = vpop.f32.mrb[40].mxu0  ;;  %v2021_v61 = vpop.f32.mrb[40].mxu1 }
 0x34a   : > { %v2620_v63 = vmul.f32 %v5865_v40, %v1828_v59  ;;  %v2622_v0 = vmul.f32 %v5868_v14, %v2021_v61  ;;  %v1830_v1 = vpop.f32.mrb[41].mxu0  ;;  %v2023_v3 = vpop.f32.mrb[41].mxu1 }
 0x34b   : > { %v2621_v6 = vmul.f32 %v5871_v36, %v1830_v1  ;;  %v2623_v19 = vmul.f32 %v5874_v41, %v2023_v3  ;;  %v1832_v8 = vpop.f32.mrb[42].mxu0  ;;  %v2025_v10 = vpop.f32.mrb[42].mxu1 }
 0x34c   : > { %v2918_v11 = vadd.f32 %v5879_v44, %v2620_v63  ;;  %v2920_v12 = vadd.f32 %v5882_v47, %v2622_v0  ;;  %v2628_v13 = vmul.f32 %v5865_v40, %v1832_v8  ;;  %v2630_v15 = vmul.f32 %v5868_v14, %v2025_v10  ;;  %v1834_v17 = vpop.f32.mrb[43].mxu0  ;;  %v2027_v18 = vpop.f32.mrb[43].mxu1 }
 0x34d   : > { %v2919_v20 = vadd.f32 %v5887_v51, %v2621_v6  ;;  %v2921_v21 = vadd.f32 %v5892_v5, %v2623_v19  ;;  %v2629_v42 = vmul.f32 %v5871_v36, %v1834_v17  ;;  %v2631_v22 = vmul.f32 %v5874_v41, %v2027_v18 }
 0x34e   : > { %v3146_v23 = vmax.f32 %v3145_v45, %v2918_v11  ;;  %v3220_v24 = vmax.f32 %v3219_v55, %v2920_v12  ;;  %v2926_v25 = vadd.f32 %v5879_v44, %v2628_v13  ;;  %v2928_v26 = vadd.f32 %v5882_v47, %v2630_v15  ;;  %2323 = vmatmul.mubr.bf16.gmra.mrb[148].mxu0 %v5749_v16 }
 0x34f   : > { %v3183_v28 = vmax.f32 %v3182_v56, %v2919_v20  ;;  %v3257_v29 = vmax.f32 %v3256_v58, %v2921_v21  ;;  %v2927_v31 = vadd.f32 %v5887_v51, %v2629_v42  ;;  %v2929_v32 = vadd.f32 %v5892_v5, %v2631_v22  ;;  %2516 = vmatmul.mubr.bf16.gmra.mrb[148].mxu1 %v5749_v16  ;;  %v3519_v42 = vld [vmem:[#allocation11 + $0x80] sm:$0xff]  ;;  %v3520_v22 = vld [vmem:[#allocation11 + $0x88] sm:$0xff] }
 0x350   : > { %v3147_v33 = vmax.f32 %v3146_v23, %v2926_v25  ;;  %v3221_v35 = vmax.f32 %v3220_v24, %v2928_v26  ;;  %2332 = vmatprep.mubr.bf16.mxu0 %v4998_v60  ;;  %2525 = vmatprep.mubr.bf16.mxu1 %v4998_v60 }
 0x351   : > { %v3184_v2 = vmax.f32 %v3183_v28, %v2927_v31  ;;  %v3258_v57 = vmax.f32 %v3257_v29, %v2929_v32  ;;  %v1838_v9 = vpop.f32.mrb[44].mxu0  ;;  %v2031_v43 = vpop.f32.mrb[44].mxu1  ;;  %v4515_v28 = vpack.c.bf16 %v3520_v22, %v3519_v42  ;;  %v3504_v29 = vld [vmem:[#allocation11 + $0x8] sm:$0xff] }
 0x352   : > { %v2636_v46 = vmul.f32 %v5865_v40, %v1838_v9  ;;  %v2638_v48 = vmul.f32 %v5868_v14, %v2031_v43  ;;  %v1840_v49 = vpop.f32.mrb[45].mxu0  ;;  %v2033_v50 = vpop.f32.mrb[45].mxu1 }
 0x353   : > { %v2637_v52 = vmul.f32 %v5871_v36, %v1840_v49  ;;  %v2639_v16 = vmul.f32 %v5874_v41, %v2033_v50  ;;  %v1842_v53 = vpop.f32.mrb[46].mxu0  ;;  %v2035_v54 = vpop.f32.mrb[46].mxu1  ;;  %4516 = vmatprep.subr.bf16.mxu0 %v4515_v28  ;;  %v3551_v49 = vld [vmem:[#allocation11 + $0x180] sm:$0xff] }
 0x354   : > { %v2934_v39 = vadd.f32 %v5879_v44, %v2636_v46  ;;  %v2936_v7 = vadd.f32 %v5882_v47, %v2638_v48  ;;  %v2644_v45 = vmul.f32 %v5865_v40, %v1842_v53  ;;  %v2646_v55 = vmul.f32 %v5868_v14, %v2035_v54  ;;  %v1844_v56 = vpop.f32.mrb[47].mxu0  ;;  %v2037_v58 = vpop.f32.mrb[47].mxu1  ;;  %v3552_v54 = vld [vmem:[#allocation11 + $0x188] sm:$0xff] }
 0x355   : > { %v2935_v59 = vadd.f32 %v5887_v51, %v2637_v52  ;;  %v2937_v61 = vadd.f32 %v5892_v5, %v2639_v16  ;;  %v2645_v63 = vmul.f32 %v5871_v36, %v1844_v56  ;;  %v2647_v0 = vmul.f32 %v5874_v41, %v2037_v58 }
 0x356   : > { %v3148_v1 = vmax.f32 %v3147_v33, %v2934_v39  ;;  %v3222_v3 = vmax.f32 %v3221_v35, %v2936_v7  ;;  %v2942_v6 = vadd.f32 %v5879_v44, %v2644_v45  ;;  %v2944_v19 = vadd.f32 %v5882_v47, %v2646_v55  ;;  %2333 = vmatmul.mubr.bf16.gmra.mrb[152].mxu0 %v5767_v38  ;;  %v3535_v39 = vld [vmem:[#allocation11 + $0x100] sm:$0xff]  ;;  %v3536_v7 = vld [vmem:[#allocation11 + $0x108] sm:$0xff] }
 0x357   : > { %v3185_v8 = vmax.f32 %v3184_v2, %v2935_v59  ;;  %v3259_v10 = vmax.f32 %v3258_v57, %v2937_v61  ;;  %v2943_v11 = vadd.f32 %v5887_v51, %v2645_v63  ;;  %v2945_v12 = vadd.f32 %v5892_v5, %v2647_v0  ;;  %2526 = vmatmul.mubr.bf16.gmra.mrb[152].mxu1 %v5767_v38  ;;  %v3503_v38 = vld [vmem:[#allocation11] sm:$0xff] }
 0x358   : > { %v3149_v13 = vmax.f32 %v3148_v1, %v2942_v6  ;;  %v3223_v15 = vmax.f32 %v3222_v3, %v2944_v19  ;;  %2342 = vmatprep.mubr.bf16.mxu0 %v4998_v60  ;;  %2535 = vmatprep.mubr.bf16.mxu1 %v4998_v60  ;;  %v4517_v35 = vpack.c.bf16 %v3504_v29, %v3503_v38 }
 0x359   : > { %v3186_v17 = vmax.f32 %v3185_v8, %v2943_v11  ;;  %v3260_v18 = vmax.f32 %v3259_v10, %v2945_v12  ;;  %v1848_v20 = vpop.f32.mrb[48].mxu0  ;;  %v2041_v21 = vpop.f32.mrb[48].mxu1  ;;  %v4547_v6 = vpack.c.bf16 %v3552_v54, %v3551_v49  ;;  %v4549_v19 = vpack.c.bf16 %v3536_v7, %v3535_v39 }
 0x35a   : > { %v2652_v23 = vmul.f32 %v5865_v40, %v1848_v20  ;;  %v2654_v24 = vmul.f32 %v5868_v14, %v2041_v21  ;;  %v1850_v25 = vpop.f32.mrb[49].mxu0  ;;  %v2043_v26 = vpop.f32.mrb[49].mxu1  ;;  %4518 = vmatpush3.bf16.msra.mxu0 %v4517_v35 }
 0x35b   : > { %v2653_v31 = vmul.f32 %v5871_v36, %v1850_v25  ;;  %v2655_v32 = vmul.f32 %v5874_v41, %v2043_v26  ;;  %v1852_v60 = vpop.f32.mrb[50].mxu0  ;;  %v2045_v33 = vpop.f32.mrb[50].mxu1  ;;  %4548 = vmatprep.subr.bf16.mxu1 %v4547_v6  ;;  %v3538_v6 = vld [vmem:[#allocation11 + $0x118] sm:$0xff] }
 0x35c   : > { %v2950_v2 = vadd.f32 %v5879_v44, %v2652_v23  ;;  %v2952_v57 = vadd.f32 %v5882_v47, %v2654_v24  ;;  %v2660_v9 = vmul.f32 %v5865_v40, %v1852_v60  ;;  %v2662_v43 = vmul.f32 %v5868_v14, %v2045_v33  ;;  %v1854_v46 = vpop.f32.mrb[51].mxu0  ;;  %v2047_v48 = vpop.f32.mrb[51].mxu1  ;;  %4550 = vmatpush3.bf16.msra.mxu1 %v4549_v19 }
 0x35d   : > { %v2951_v50 = vadd.f32 %v5887_v51, %v2653_v31  ;;  %v2953_v52 = vadd.f32 %v5892_v5, %v2655_v32  ;;  %v2661_v16 = vmul.f32 %v5871_v36, %v1854_v46  ;;  %v2663_v53 = vmul.f32 %v5874_v41, %v2047_v48 }
 0x35e   : > { %v3150_v45 = vmax.f32 %v3149_v13, %v2950_v2  ;;  %v3224_v55 = vmax.f32 %v3223_v15, %v2952_v57  ;;  %v2958_v56 = vadd.f32 %v5879_v44, %v2660_v9  ;;  %v2960_v58 = vadd.f32 %v5882_v47, %v2662_v43  ;;  %2343 = vmatmul.mubr.bf16.gmra.mrb[156].mxu0 %v5765_v37 }
 0x35f   : > { %v3187_v59 = vmax.f32 %v3186_v17, %v2951_v50  ;;  %v3261_v61 = vmax.f32 %v3260_v18, %v2953_v52  ;;  %v2959_v63 = vadd.f32 %v5887_v51, %v2661_v16  ;;  %v2961_v0 = vadd.f32 %v5892_v5, %v2663_v53  ;;  %2536 = vmatmul.mubr.bf16.gmra.mrb[156].mxu1 %v5765_v37  ;;  %v3521_v50 = vld [vmem:[#allocation11 + $0x90] sm:$0xff]  ;;  %v3522_v52 = vld [vmem:[#allocation11 + $0x98] sm:$0xff] }
 0x360   : > { %v3151_v1 = vmax.f32 %v3150_v45, %v2958_v56  ;;  %v3225_v3 = vmax.f32 %v3224_v55, %v2960_v58  ;;  %v4519_v7 = vpack.c.bf16 %v3522_v52, %v3521_v50  ;;  %v3505_v45 = vld [vmem:[#allocation11 + $0x10] sm:$0xff]  ;;  %v3506_v55 = vld [vmem:[#allocation11 + $0x18] sm:$0xff] }
 0x361   : > { %v3188_v8 = vmax.f32 %v3187_v59, %v2959_v63  ;;  %v3262_v10 = vmax.f32 %v3261_v61, %v2961_v0  ;;  %v1858_v11 = vpop.f32.mrb[52].mxu0  ;;  %v2051_v12 = vpop.f32.mrb[52].mxu1  ;;  %v3553_v56 = vld [vmem:[#allocation11 + $0x190] sm:$0xff]  ;;  %v4521_v0 = vpack.c.bf16 %v3506_v55, %v3505_v45 }
 0x362   : > { %v2668_v13 = vmul.f32 %v5865_v40, %v1858_v11  ;;  %v2670_v15 = vmul.f32 %v5868_v14, %v2051_v12  ;;  %v1860_v17 = vpop.f32.mrb[53].mxu0  ;;  %v2053_v18 = vpop.f32.mrb[53].mxu1  ;;  %4520 = vmatprep.subr.bf16.mxu0 %v4519_v7 }
 0x363   : > { %v2669_v20 = vmul.f32 %v5871_v36, %v1860_v17  ;;  %v2671_v21 = vmul.f32 %v5874_v41, %v2053_v18  ;;  %v1862_v37 = vpop.f32.mrb[54].mxu0  ;;  %v2055_v42 = vpop.f32.mrb[54].mxu1  ;;  %4522 = vmatpush3.bf16.msra.mxu0 %v4521_v0 }
 0x364   : > { %v2966_v22 = vadd.f32 %v5879_v44, %v2668_v13  ;;  %v2968_v23 = vadd.f32 %v5882_v47, %v2670_v15  ;;  %v2676_v24 = vmul.f32 %v5865_v40, %v1862_v37  ;;  %v2678_v25 = vmul.f32 %v5868_v14, %v2055_v42  ;;  %v1864_v26 = vpop.f32.mrb[55].mxu0  ;;  %v2057_v28 = vpop.f32.mrb[55].mxu1 }
 0x365   : > { %v2967_v38 = vadd.f32 %v5887_v51, %v2669_v20  ;;  %v2969_v29 = vadd.f32 %v5892_v5, %v2671_v21  ;;  %v2677_v31 = vmul.f32 %v5871_v36, %v1864_v26  ;;  %v2679_v32 = vmul.f32 %v5874_v41, %v2057_v28 }
 0x366   : > { %v3152_v60 = vmax.f32 %v3151_v1, %v2966_v22  ;;  %v3226_v33 = vmax.f32 %v3225_v3, %v2968_v23  ;;  %v2974_v35 = vadd.f32 %v5879_v44, %v2676_v24  ;;  %v2976_v2 = vadd.f32 %v5882_v47, %v2678_v25  ;;  %v3554_v1 = vld [vmem:[#allocation11 + $0x198] sm:$0xff]  ;;  %v3537_v3 = vld [vmem:[#allocation11 + $0x110] sm:$0xff] }
 0x367   : > { %v3189_v57 = vmax.f32 %v3188_v8, %v2967_v38  ;;  %v3263_v9 = vmax.f32 %v3262_v10, %v2969_v29  ;;  %v2975_v43 = vadd.f32 %v5887_v51, %v2677_v31  ;;  %v2977_v46 = vadd.f32 %v5892_v5, %v2679_v32 }
 0x368   : > { %v3153_v48 = vmax.f32 %v3152_v60, %v2974_v35  ;;  %v3227_v49 = vmax.f32 %v3226_v33, %v2976_v2  ;;  %v4551_v12 = vpack.c.bf16 %v3554_v1, %v3553_v56  ;;  %v4553_v13 = vpack.c.bf16 %v3538_v6, %v3537_v3 }
 0x369   : > { %v3190_v16 = vmax.f32 %v3189_v57, %v2975_v43  ;;  %v3264_v53 = vmax.f32 %v3263_v9, %v2977_v46  ;;  %v1868_v54 = vpop.f32.mrb[56].mxu0  ;;  %v2061_v39 = vpop.f32.mrb[56].mxu1 }
 0x36a   : > { %v2684_v58 = vmul.f32 %v5865_v40, %v1868_v54  ;;  %v2686_v59 = vmul.f32 %v5868_v14, %v2061_v39  ;;  %v1870_v61 = vpop.f32.mrb[57].mxu0  ;;  %v2063_v63 = vpop.f32.mrb[57].mxu1  ;;  %4552 = vmatprep.subr.bf16.mxu1 %v4551_v12 }
 0x36b   : > { %v2685_v19 = vmul.f32 %v5871_v36, %v1870_v61  ;;  %v2687_v8 = vmul.f32 %v5874_v41, %v2063_v63  ;;  %v1872_v10 = vpop.f32.mrb[58].mxu0  ;;  %v2065_v11 = vpop.f32.mrb[58].mxu1  ;;  %4554 = vmatpush3.bf16.msra.mxu1 %v4553_v13 }
 0x36c   : > { %v2982_v15 = vadd.f32 %v5879_v44, %v2684_v58  ;;  %v2984_v17 = vadd.f32 %v5882_v47, %v2686_v59  ;;  %v2692_v18 = vmul.f32 %v5865_v40, %v1872_v10  ;;  %v2694_v20 = vmul.f32 %v5868_v14, %v2065_v11  ;;  %v1874_v21 = vpop.f32.mrb[59].mxu0  ;;  %v2067_v37 = vpop.f32.mrb[59].mxu1 }
 0x36d   : > { %v2983_v42 = vadd.f32 %v5887_v51, %v2685_v19  ;;  %v2985_v22 = vadd.f32 %v5892_v5, %v2687_v8  ;;  %v2693_v23 = vmul.f32 %v5871_v36, %v1874_v21  ;;  %v2695_v24 = vmul.f32 %v5874_v41, %v2067_v37 }
 0x36e   : > { %v3154_v25 = vmax.f32 %v3153_v48, %v2982_v15  ;;  %v3228_v26 = vmax.f32 %v3227_v49, %v2984_v17  ;;  %v2990_v28 = vadd.f32 %v5879_v44, %v2692_v18  ;;  %v2992_v38 = vadd.f32 %v5882_v47, %v2694_v20  ;;  %v3523_v17 = vld [vmem:[#allocation11 + $0xa0] sm:$0xff]  ;;  %v3524_v18 = vld [vmem:[#allocation11 + $0xa8] sm:$0xff] }
 0x36f   : > { %v3191_v29 = vmax.f32 %v3190_v16, %v2983_v42  ;;  %v3265_v31 = vmax.f32 %v3264_v53, %v2985_v22  ;;  %v2991_v32 = vadd.f32 %v5887_v51, %v2693_v23  ;;  %v2993_v60 = vadd.f32 %v5892_v5, %v2695_v24  ;;  %v3507_v23 = vld [vmem:[#allocation11 + $0x20] sm:$0xff]  ;;  %v3508_v24 = vld [vmem:[#allocation11 + $0x28] sm:$0xff] }
 0x370   : > { %v3155_v33 = vmax.f32 %v3154_v25, %v2990_v28  ;;  %v3229_v35 = vmax.f32 %v3228_v26, %v2992_v38  ;;  %v4523_v22 = vpack.c.bf16 %v3524_v18, %v3523_v17  ;;  %v3555_v25 = vld [vmem:[#allocation11 + $0x1a0] sm:$0xff] }
 0x371   : > { %v3192_v2 = vmax.f32 %v3191_v29, %v2991_v32  ;;  %v3266_v57 = vmax.f32 %v3265_v31, %v2993_v60  ;;  %v1878_v9 = vpop.f32.mrb[60].mxu0  ;;  %v2071_v43 = vpop.f32.mrb[60].mxu1  ;;  %v4525_v31 = vpack.c.bf16 %v3508_v24, %v3507_v23  ;;  %v3556_v32 = vld [vmem:[#allocation11 + $0x1a8] sm:$0xff]  ;;  %v3539_v60 = vld [vmem:[#allocation11 + $0x120] sm:$0xff] }
 0x372   : > { %v2700_v46 = vmul.f32 %v5865_v40, %v1878_v9  ;;  %v2702_v48 = vmul.f32 %v5868_v14, %v2071_v43  ;;  %v1880_v49 = vpop.f32.mrb[61].mxu0  ;;  %v2073_v50 = vpop.f32.mrb[61].mxu1  ;;  %4524 = vmatprep.subr.bf16.mxu0 %v4523_v22  ;;  %v4555_v43 = vpack.c.bf16 %v3556_v32, %v3555_v25 }
 0x373   : > { %v2701_v52 = vmul.f32 %v5871_v36, %v1880_v49  ;;  %v2703_v16 = vmul.f32 %v5874_v41, %v2073_v50  ;;  %v1882_v53 = vpop.f32.mrb[62].mxu0  ;;  %v2075_v54 = vpop.f32.mrb[62].mxu1  ;;  %4526 = vmatpush3.bf16.msra.mxu0 %v4525_v31 }
 0x374   : > { %v2998_v39 = vadd.f32 %v5879_v44, %v2700_v46  ;;  %v3000_v7 = vadd.f32 %v5882_v47, %v2702_v48  ;;  %v2708_v45 = vmul.f32 %v5865_v40, %v1882_v53  ;;  %v2710_v55 = vmul.f32 %v5868_v14, %v2075_v54  ;;  %v1884_v56 = vpop.f32.mrb[63].mxu0  ;;  %v2077_v58 = vpop.f32.mrb[63].mxu1  ;;  %4556 = vmatprep.subr.bf16.mxu1 %v4555_v43 }
 0x375   : > { %v2999_v59 = vadd.f32 %v5887_v51, %v2701_v52  ;;  %v3001_v61 = vadd.f32 %v5892_v5, %v2703_v16  ;;  %v2709_v63 = vmul.f32 %v5871_v36, %v1884_v56  ;;  %v2711_v0 = vmul.f32 %v5874_v41, %v2077_v58 }
 0x376   : > { %v3156_v1 = vmax.f32 %v3155_v33, %v2998_v39  ;;  %v3230_v3 = vmax.f32 %v3229_v35, %v3000_v7  ;;  %v3006_v6 = vadd.f32 %v5879_v44, %v2708_v45  ;;  %v3008_v19 = vadd.f32 %v5882_v47, %v2710_v55  ;;  %v3540_v33 = vld [vmem:[#allocation11 + $0x128] sm:$0xff] }
 0x377   : > { %v3193_v8 = vmax.f32 %v3192_v2, %v2999_v59  ;;  %v3267_v10 = vmax.f32 %v3266_v57, %v3001_v61  ;;  %v3007_v11 = vadd.f32 %v5887_v51, %v2709_v63  ;;  %v3009_v12 = vadd.f32 %v5892_v5, %v2711_v0 }
 0x378   : > { %v3157_v13 = vmax.f32 %v3156_v1, %v3006_v6  ;;  %v3231_v15 = vmax.f32 %v3230_v3, %v3008_v19  ;;  %v4557_v46 = vpack.c.bf16 %v3540_v33, %v3539_v60 }
 0x379   : > { %v3194_v20 = vmax.f32 %v3193_v8, %v3007_v11  ;;  %v3268_v21 = vmax.f32 %v3267_v10, %v3009_v12  ;;  %v1888_v37 = vpop.f32.mrb[64].mxu0  ;;  %v2081_v42 = vpop.f32.mrb[64].mxu1 }
 0x37a   : > { %v2716_v26 = vmul.f32 %v5865_v40, %v1888_v37  ;;  %v2718_v28 = vmul.f32 %v5868_v14, %v2081_v42  ;;  %v1890_v38 = vpop.f32.mrb[65].mxu0  ;;  %v2083_v29 = vpop.f32.mrb[65].mxu1  ;;  %4558 = vmatpush3.bf16.msra.mxu1 %v4557_v46 }
 0x37b   : > { %v2717_v35 = vmul.f32 %v5871_v36, %v1890_v38  ;;  %v2719_v2 = vmul.f32 %v5874_v41, %v2083_v29  ;;  %v1892_v57 = vpop.f32.mrb[66].mxu0  ;;  %v2085_v9 = vpop.f32.mrb[66].mxu1 }
 0x37c   : > { %v3014_v48 = vadd.f32 %v5879_v44, %v2716_v26  ;;  %v3016_v49 = vadd.f32 %v5882_v47, %v2718_v28  ;;  %v2724_v50 = vmul.f32 %v5865_v40, %v1892_v57  ;;  %v2726_v52 = vmul.f32 %v5868_v14, %v2085_v9  ;;  %v1894_v16 = vpop.f32.mrb[67].mxu0  ;;  %v2087_v53 = vpop.f32.mrb[67].mxu1 }
 0x37d   : > { %v3015_v54 = vadd.f32 %v5887_v51, %v2717_v35  ;;  %v3017_v39 = vadd.f32 %v5892_v5, %v2719_v2  ;;  %v2725_v7 = vmul.f32 %v5871_v36, %v1894_v16  ;;  %v2727_v45 = vmul.f32 %v5874_v41, %v2087_v53 }
 0x37e   : > { %v3158_v55 = vmax.f32 %v3157_v13, %v3014_v48  ;;  %v3232_v56 = vmax.f32 %v3231_v15, %v3016_v49  ;;  %v3022_v58 = vadd.f32 %v5879_v44, %v2724_v50  ;;  %v3024_v59 = vadd.f32 %v5882_v47, %v2726_v52  ;;  %v3525_v49 = vld [vmem:[#allocation11 + $0xb0] sm:$0xff]  ;;  %v3526_v50 = vld [vmem:[#allocation11 + $0xb8] sm:$0xff] }
 0x37f   : > { %v3195_v61 = vmax.f32 %v3194_v20, %v3015_v54  ;;  %v3269_v63 = vmax.f32 %v3268_v21, %v3017_v39  ;;  %v3023_v0 = vadd.f32 %v5887_v51, %v2725_v7  ;;  %v3025_v1 = vadd.f32 %v5892_v5, %v2727_v45  ;;  %v3509_v7 = vld [vmem:[#allocation11 + $0x30] sm:$0xff]  ;;  %v3510_v45 = vld [vmem:[#allocation11 + $0x38] sm:$0xff] }
 0x380   : > { %v3159_v3 = vmax.f32 %v3158_v55, %v3022_v58  ;;  %v3233_v6 = vmax.f32 %v3232_v56, %v3024_v59  ;;  %v4527_v39 = vpack.c.bf16 %v3526_v50, %v3525_v49  ;;  %v3557_v55 = vld [vmem:[#allocation11 + $0x1b0] sm:$0xff] }
 0x381   : > { %v3196_v19 = vmax.f32 %v3195_v61, %v3023_v0  ;;  %v3270_v8 = vmax.f32 %v3269_v63, %v3025_v1  ;;  %v1898_v10 = vpop.f32.mrb[68].mxu0  ;;  %v2091_v11 = vpop.f32.mrb[68].mxu1  ;;  %v4529_v63 = vpack.c.bf16 %v3510_v45, %v3509_v7  ;;  %v3558_v0 = vld [vmem:[#allocation11 + $0x1b8] sm:$0xff]  ;;  %v3541_v1 = vld [vmem:[#allocation11 + $0x130] sm:$0xff] }
 0x382   : > { %v2732_v12 = vmul.f32 %v5865_v40, %v1898_v10  ;;  %v2734_v13 = vmul.f32 %v5868_v14, %v2091_v11  ;;  %v1900_v15 = vpop.f32.mrb[69].mxu0  ;;  %v2093_v17 = vpop.f32.mrb[69].mxu1  ;;  %4528 = vmatprep.subr.bf16.mxu0 %v4527_v39  ;;  %v4559_v11 = vpack.c.bf16 %v3558_v0, %v3557_v55 }
 0x383   : > { %v2733_v18 = vmul.f32 %v5871_v36, %v1900_v15  ;;  %v2735_v20 = vmul.f32 %v5874_v41, %v2093_v17  ;;  %v1902_v21 = vpop.f32.mrb[70].mxu0  ;;  %v2095_v37 = vpop.f32.mrb[70].mxu1  ;;  %4530 = vmatpush3.bf16.msra.mxu0 %v4529_v63 }
 0x384   : > { %v3030_v42 = vadd.f32 %v5879_v44, %v2732_v12  ;;  %v3032_v22 = vadd.f32 %v5882_v47, %v2734_v13  ;;  %v2740_v23 = vmul.f32 %v5865_v40, %v1902_v21  ;;  %v2742_v24 = vmul.f32 %v5868_v14, %v2095_v37  ;;  %v1904_v25 = vpop.f32.mrb[71].mxu0  ;;  %v2097_v26 = vpop.f32.mrb[71].mxu1  ;;  %4560 = vmatprep.subr.bf16.mxu1 %v4559_v11 }
 0x385   : > { %v3031_v28 = vadd.f32 %v5887_v51, %v2733_v18  ;;  %v3033_v38 = vadd.f32 %v5892_v5, %v2735_v20  ;;  %v2741_v29 = vmul.f32 %v5871_v36, %v1904_v25  ;;  %v2743_v31 = vmul.f32 %v5874_v41, %v2097_v26 }
 0x386   : > { %v3160_v32 = vmax.f32 %v3159_v3, %v3030_v42  ;;  %v3234_v60 = vmax.f32 %v3233_v6, %v3032_v22  ;;  %v3038_v33 = vadd.f32 %v5879_v44, %v2740_v23  ;;  %v3040_v35 = vadd.f32 %v5882_v47, %v2742_v24  ;;  %v3542_v3 = vld [vmem:[#allocation11 + $0x138] sm:$0xff] }
 0x387   : > { %v3197_v2 = vmax.f32 %v3196_v19, %v3031_v28  ;;  %v3271_v57 = vmax.f32 %v3270_v8, %v3033_v38  ;;  %v3039_v9 = vadd.f32 %v5887_v51, %v2741_v29  ;;  %v3041_v43 = vadd.f32 %v5892_v5, %v2743_v31 }
 0x388   : > { %v3161_v46 = vmax.f32 %v3160_v32, %v3038_v33  ;;  %v3235_v48 = vmax.f32 %v3234_v60, %v3040_v35  ;;  %v4561_v12 = vpack.c.bf16 %v3542_v3, %v3541_v1 }
 0x389   : > { %v3198_v52 = vmax.f32 %v3197_v2, %v3039_v9  ;;  %v3272_v16 = vmax.f32 %v3271_v57, %v3041_v43  ;;  %v1908_v53 = vpop.f32.mrb[72].mxu0  ;;  %v2101_v54 = vpop.f32.mrb[72].mxu1 }
 0x38a   : > { %v2748_v56 = vmul.f32 %v5865_v40, %v1908_v53  ;;  %v2750_v58 = vmul.f32 %v5868_v14, %v2101_v54  ;;  %v1910_v59 = vpop.f32.mrb[73].mxu0  ;;  %v2103_v61 = vpop.f32.mrb[73].mxu1  ;;  %4562 = vmatpush3.bf16.msra.mxu1 %v4561_v12 }
 0x38b   : > { %v2749_v6 = vmul.f32 %v5871_v36, %v1910_v59  ;;  %v2751_v19 = vmul.f32 %v5874_v41, %v2103_v61  ;;  %v1912_v8 = vpop.f32.mrb[74].mxu0  ;;  %v2105_v10 = vpop.f32.mrb[74].mxu1 }
 0x38c   : > { %v3046_v13 = vadd.f32 %v5879_v44, %v2748_v56  ;;  %v3048_v15 = vadd.f32 %v5882_v47, %v2750_v58  ;;  %v2756_v17 = vmul.f32 %v5865_v40, %v1912_v8  ;;  %v2758_v18 = vmul.f32 %v5868_v14, %v2105_v10  ;;  %v1914_v20 = vpop.f32.mrb[75].mxu0  ;;  %v2107_v21 = vpop.f32.mrb[75].mxu1 }
 0x38d   : > { %v3047_v37 = vadd.f32 %v5887_v51, %v2749_v6  ;;  %v3049_v42 = vadd.f32 %v5892_v5, %v2751_v19  ;;  %v2757_v22 = vmul.f32 %v5871_v36, %v1914_v20  ;;  %v2759_v23 = vmul.f32 %v5874_v41, %v2107_v21 }
 0x38e   : > { %v3162_v24 = vmax.f32 %v3161_v46, %v3046_v13  ;;  %v3236_v25 = vmax.f32 %v3235_v48, %v3048_v15  ;;  %v3054_v26 = vadd.f32 %v5879_v44, %v2756_v17  ;;  %v3056_v28 = vadd.f32 %v5882_v47, %v2758_v18  ;;  %v3527_v15 = vld [vmem:[#allocation11 + $0xc0] sm:$0xff]  ;;  %v3528_v17 = vld [vmem:[#allocation11 + $0xc8] sm:$0xff] }
 0x38f   : > { %v3199_v38 = vmax.f32 %v3198_v52, %v3047_v37  ;;  %v3273_v29 = vmax.f32 %v3272_v16, %v3049_v42  ;;  %v3055_v31 = vadd.f32 %v5887_v51, %v2757_v22  ;;  %v3057_v32 = vadd.f32 %v5892_v5, %v2759_v23  ;;  %v3511_v22 = vld [vmem:[#allocation11 + $0x40] sm:$0xff]  ;;  %v3512_v23 = vld [vmem:[#allocation11 + $0x48] sm:$0xff] }
 0x390   : > { %v3163_v60 = vmax.f32 %v3162_v24, %v3054_v26  ;;  %v3237_v33 = vmax.f32 %v3236_v25, %v3056_v28  ;;  %v4531_v42 = vpack.c.bf16 %v3528_v17, %v3527_v15  ;;  %v3559_v24 = vld [vmem:[#allocation11 + $0x1c0] sm:$0xff] }
 0x391   : > { %v3200_v35 = vmax.f32 %v3199_v38, %v3055_v31  ;;  %v3274_v2 = vmax.f32 %v3273_v29, %v3057_v32  ;;  %v1918_v57 = vpop.f32.mrb[76].mxu0  ;;  %v2111_v9 = vpop.f32.mrb[76].mxu1  ;;  %v4533_v29 = vpack.c.bf16 %v3512_v23, %v3511_v22  ;;  %v3560_v31 = vld [vmem:[#allocation11 + $0x1c8] sm:$0xff]  ;;  %v3543_v32 = vld [vmem:[#allocation11 + $0x140] sm:$0xff] }
 0x392   : > { %v2764_v43 = vmul.f32 %v5865_v40, %v1918_v57  ;;  %v2766_v46 = vmul.f32 %v5868_v14, %v2111_v9  ;;  %v1920_v48 = vpop.f32.mrb[77].mxu0  ;;  %v2113_v49 = vpop.f32.mrb[77].mxu1  ;;  %4532 = vmatprep.subr.bf16.mxu0 %v4531_v42  ;;  %v4563_v9 = vpack.c.bf16 %v3560_v31, %v3559_v24 }
 0x393   : > { %v2765_v50 = vmul.f32 %v5871_v36, %v1920_v48  ;;  %v2767_v52 = vmul.f32 %v5874_v41, %v2113_v49  ;;  %v1922_v16 = vpop.f32.mrb[78].mxu0  ;;  %v2115_v53 = vpop.f32.mrb[78].mxu1  ;;  %4534 = vmatpush3.bf16.msra.mxu0 %v4533_v29 }
 0x394   : > { %v3062_v54 = vadd.f32 %v5879_v44, %v2764_v43  ;;  %v3064_v39 = vadd.f32 %v5882_v47, %v2766_v46  ;;  %v2772_v7 = vmul.f32 %v5865_v40, %v1922_v16  ;;  %v2774_v45 = vmul.f32 %v5868_v14, %v2115_v53  ;;  %v1924_v55 = vpop.f32.mrb[79].mxu0  ;;  %v2117_v56 = vpop.f32.mrb[79].mxu1  ;;  %4564 = vmatprep.subr.bf16.mxu1 %v4563_v9 }
 0x395   : > { %v3063_v58 = vadd.f32 %v5887_v51, %v2765_v50  ;;  %v3065_v59 = vadd.f32 %v5892_v5, %v2767_v52  ;;  %v2773_v61 = vmul.f32 %v5871_v36, %v1924_v55  ;;  %v2775_v63 = vmul.f32 %v5874_v41, %v2117_v56 }
 0x396   : > { %v3164_v0 = vmax.f32 %v3163_v60, %v3062_v54  ;;  %v3238_v1 = vmax.f32 %v3237_v33, %v3064_v39  ;;  %v3070_v3 = vadd.f32 %v5879_v44, %v2772_v7  ;;  %v3072_v6 = vadd.f32 %v5882_v47, %v2774_v45  ;;  %v3544_v60 = vld [vmem:[#allocation11 + $0x148] sm:$0xff] }
 0x397   : > { %v3201_v19 = vmax.f32 %v3200_v35, %v3063_v58  ;;  %v3275_v8 = vmax.f32 %v3274_v2, %v3065_v59  ;;  %v3071_v10 = vadd.f32 %v5887_v51, %v2773_v61  ;;  %v3073_v11 = vadd.f32 %v5892_v5, %v2775_v63 }
 0x398   : > { %v3165_v12 = vmax.f32 %v3164_v0, %v3070_v3  ;;  %v3239_v13 = vmax.f32 %v3238_v1, %v3072_v6  ;;  %v4565_v43 = vpack.c.bf16 %v3544_v60, %v3543_v32 }
 0x399   : > { %v3202_v18 = vmax.f32 %v3201_v19, %v3071_v10  ;;  %v3276_v20 = vmax.f32 %v3275_v8, %v3073_v11  ;;  %v1928_v21 = vpop.f32.mrb[80].mxu0  ;;  %v2121_v37 = vpop.f32.mrb[80].mxu1 }
 0x39a   : > { %v2780_v25 = vmul.f32 %v5865_v40, %v1928_v21  ;;  %v2782_v26 = vmul.f32 %v5868_v14, %v2121_v37  ;;  %v1930_v28 = vpop.f32.mrb[81].mxu0  ;;  %v2123_v38 = vpop.f32.mrb[81].mxu1  ;;  %4566 = vmatpush3.bf16.msra.mxu1 %v4565_v43 }
 0x39b   : > { %v2781_v33 = vmul.f32 %v5871_v36, %v1930_v28  ;;  %v2783_v35 = vmul.f32 %v5874_v41, %v2123_v38  ;;  %v1932_v2 = vpop.f32.mrb[82].mxu0  ;;  %v2125_v57 = vpop.f32.mrb[82].mxu1 }
 0x39c   : > { %v3078_v46 = vadd.f32 %v5879_v44, %v2780_v25  ;;  %v3080_v48 = vadd.f32 %v5882_v47, %v2782_v26  ;;  %v2788_v49 = vmul.f32 %v5865_v40, %v1932_v2  ;;  %v2790_v50 = vmul.f32 %v5868_v14, %v2125_v57  ;;  %v1934_v52 = vpop.f32.mrb[83].mxu0  ;;  %v2127_v16 = vpop.f32.mrb[83].mxu1 }
 0x39d   : > { %v3079_v53 = vadd.f32 %v5887_v51, %v2781_v33  ;;  %v3081_v54 = vadd.f32 %v5892_v5, %v2783_v35  ;;  %v2789_v39 = vmul.f32 %v5871_v36, %v1934_v52  ;;  %v2791_v7 = vmul.f32 %v5874_v41, %v2127_v16 }
 0x39e   : > { %v3166_v45 = vmax.f32 %v3165_v12, %v3078_v46  ;;  %v3240_v55 = vmax.f32 %v3239_v13, %v3080_v48  ;;  %v3086_v56 = vadd.f32 %v5879_v44, %v2788_v49  ;;  %v3088_v58 = vadd.f32 %v5882_v47, %v2790_v50 }
 0x39f   : > { %v3203_v59 = vmax.f32 %v3202_v18, %v3079_v53  ;;  %v3277_v61 = vmax.f32 %v3276_v20, %v3081_v54  ;;  %v3087_v63 = vadd.f32 %v5887_v51, %v2789_v39  ;;  %v3089_v0 = vadd.f32 %v5892_v5, %v2791_v7  ;;  %v3529_v39 = vld [vmem:[#allocation11 + $0xd0] sm:$0xff]  ;;  %v3530_v7 = vld [vmem:[#allocation11 + $0xd8] sm:$0xff] }
 0x3a0   : > { %v3167_v1 = vmax.f32 %v3166_v45, %v3086_v56  ;;  %v3241_v3 = vmax.f32 %v3240_v55, %v3088_v58  ;;  %v6133_v48 = vsub.s32 4, %v5843_v4  ;;  %v6136_v53 = vsub.s32 5, %v5843_v4 }
 0x3a1   : > { %v3204_v6 = vmax.f32 %v3203_v59, %v3087_v63  ;;  %v3278_v19 = vmax.f32 %v3277_v61, %v3089_v0  ;;  %v1938_v8 = vpop.f32.mrb[84].mxu0  ;;  %v2131_v10 = vpop.f32.mrb[84].mxu1  ;;  %v6139_v54 = vsub.s32 6, %v5843_v4  ;;  %v6144_v59 = vsub.s32 7, %v5843_v4  ;;  %v3513_v63 = vld [vmem:[#allocation11 + $0x50] sm:$0xff]  ;;  %v3514_v0 = vld [vmem:[#allocation11 + $0x58] sm:$0xff] }
 0x3a2   : > { %v2796_v11 = vmul.f32 %v5865_v40, %v1938_v8  ;;  %v2798_v12 = vmul.f32 %v5868_v14, %v2131_v10  ;;  %v1940_v13 = vpop.f32.mrb[85].mxu0  ;;  %v2133_v15 = vpop.f32.mrb[85].mxu1  ;;  %v4535_v61 = vpack.c.bf16 %v3530_v7, %v3529_v39  ;;  %v4999_v8 = vmov 1966171168  }
 0x3a3   : > { %v2797_v17 = vmul.f32 %v5871_v36, %v1940_v13  ;;  %v2799_v18 = vmul.f32 %v5874_v41, %v2133_v15  ;;  %v1942_v20 = vpop.f32.mrb[86].mxu0  ;;  %v2135_v21 = vpop.f32.mrb[86].mxu1  ;;  %v6148_v10 = vunpack.c.l.s4 %v4999_v8 }
 0x3a4   : > { %v3094_v37 = vadd.f32 %v5879_v44, %v2796_v11  ;;  %v3096_v42 = vadd.f32 %v5882_v47, %v2798_v12  ;;  %v2804_v22 = vmul.f32 %v5865_v40, %v1942_v20  ;;  %v2806_v23 = vmul.f32 %v5868_v14, %v2135_v21  ;;  %v1944_v24 = vpop.f32.mrb[87].mxu0  ;;  %v2137_v25 = vpop.f32.mrb[87].mxu1  ;;  %4536 = vmatprep.subr.bf16.mxu0 %v4535_v61  ;;  %v3561_v21 = vld [vmem:[#allocation11 + $0x1d0] sm:$0xff] }
 0x3a5   : > { %v3095_v26 = vadd.f32 %v5887_v51, %v2797_v17  ;;  %v3097_v28 = vadd.f32 %v5892_v5, %v2799_v18  ;;  %v2805_v38 = vmul.f32 %v5871_v36, %v1944_v24  ;;  %v2807_v29 = vmul.f32 %v5874_v41, %v2137_v25  ;;  %v3562_v24 = vld [vmem:[#allocation11 + $0x1d8] sm:$0xff]  ;;  %v3545_v25 = vld [vmem:[#allocation11 + $0x150] sm:$0xff] }
 0x3a6   : > { %v3168_v31 = vmax.f32 %v3167_v1, %v3094_v37  ;;  %v3242_v32 = vmax.f32 %v3241_v3, %v3096_v42  ;;  %v3102_v60 = vadd.f32 %v5879_v44, %v2804_v22  ;;  %v3104_v33 = vadd.f32 %v5882_v47, %v2806_v23 }
 0x3a7   : > { %v3205_v35 = vmax.f32 %v3204_v6, %v3095_v26  ;;  %v3279_v2 = vmax.f32 %v3278_v19, %v3097_v28  ;;  %v3103_v57 = vadd.f32 %v5887_v51, %v2805_v38  ;;  %v3105_v9 = vadd.f32 %v5892_v5, %v2807_v29  ;;  %v3546_v26 = vld [vmem:[#allocation11 + $0x158] sm:$0xff] }
 0x3a8   : > { %v3169_v43 = vmax.f32 %v3168_v31, %v3102_v60  ;;  %v3243_v46 = vmax.f32 %v3242_v32, %v3104_v33  ;;  %v4537_v11 = vpack.c.bf16 %v3514_v0, %v3513_v63 }
 0x3a9   : > { %v3206_v49 = vmax.f32 %v3205_v35, %v3103_v57  ;;  %v3280_v50 = vmax.f32 %v3279_v2, %v3105_v9  ;;  %v1948_v52 = vpop.f32.mrb[88].mxu0  ;;  %v2141_v16 = vpop.f32.mrb[88].mxu1  ;;  %v4567_v9 = vpack.c.bf16 %v3562_v24, %v3561_v21 }
 0x3aa   : > { %v2812_v45 = vmul.f32 %v5865_v40, %v1948_v52  ;;  %v2814_v55 = vmul.f32 %v5868_v14, %v2141_v16  ;;  %v1950_v56 = vpop.f32.mrb[89].mxu0  ;;  %v2143_v58 = vpop.f32.mrb[89].mxu1  ;;  %4538 = vmatpush3.bf16.msra.mxu0 %v4537_v11  ;;  %v4569_v52 = vpack.c.bf16 %v3546_v26, %v3545_v25  ;;  %v3453_v11 = vunpack.c.0.s8 %v6148_v10 }
 0x3ab   : > { %v2813_v1 = vmul.f32 %v5871_v36, %v1950_v56  ;;  %v2815_v3 = vmul.f32 %v5874_v41, %v2143_v58  ;;  %v1952_v6 = vpop.f32.mrb[90].mxu0  ;;  %v2145_v19 = vpop.f32.mrb[90].mxu1  ;;  %4568 = vmatprep.subr.bf16.mxu1 %v4567_v9 }
 0x3ac   : > { %v3110_v12 = vadd.f32 %v5879_v44, %v2812_v45  ;;  %v3112_v13 = vadd.f32 %v5882_v47, %v2814_v55  ;;  %v2820_v15 = vmul.f32 %v5865_v40, %v1952_v6  ;;  %v2822_v17 = vmul.f32 %v5868_v14, %v2145_v19  ;;  %v1954_v18 = vpop.f32.mrb[91].mxu0  ;;  %v2147_v20 = vpop.f32.mrb[91].mxu1  ;;  %v4758_v19 = vld [vmem:[#allocation9] sm:$0xff]  ;;  %4570 = vmatpush3.bf16.msra.mxu1 %v4569_v52 }
 0x3ad   : > { %v3111_v37 = vadd.f32 %v5887_v51, %v2813_v1  ;;  %v3113_v42 = vadd.f32 %v5892_v5, %v2815_v3  ;;  %v2821_v22 = vmul.f32 %v5871_v36, %v1954_v18  ;;  %v2823_v23 = vmul.f32 %v5874_v41, %v2147_v20 }
 0x3ae   : > { %v3170_v28 = vmax.f32 %v3169_v43, %v3110_v12  ;;  %v3244_v38 = vmax.f32 %v3243_v46, %v3112_v13  ;;  %v3118_v29 = vadd.f32 %v5879_v44, %v2820_v15  ;;  %v3120_v31 = vadd.f32 %v5882_v47, %v2822_v17  ;;  %v4757_v43 = vld [vmem:[%s6564_s8] sm:$0xff] }
 0x3af   : > { %v3207_v32 = vmax.f32 %v3206_v49, %v3111_v37  ;;  %v3281_v60 = vmax.f32 %v3280_v50, %v3113_v42  ;;  %v3119_v33 = vadd.f32 %v5887_v51, %v2821_v22  ;;  %v3121_v35 = vadd.f32 %v5892_v5, %v2823_v23 }
 0x3b0   : > { %v3171_v2 = vmax.f32 %v3170_v28, %v3118_v29  ;;  %v3245_v57 = vmax.f32 %v3244_v38, %v3120_v31  ;;  %v6166_v46 = vrot.slane %v4757_v43, %v6133_v48  ;;  %v6169_v49 = vrot.slane %v4757_v43, %v6139_v54 }
 0x3b1   : > { %v3208_v16 = vmax.f32 %v3207_v32, %v3119_v33  ;;  %v3282_v39 = vmax.f32 %v3281_v60, %v3121_v35  ;;  %v1958_v7 = vpop.f32.mrb[92].mxu0  ;;  %v2151_v45 = vpop.f32.mrb[92].mxu1  ;;  %v6174_v61 = vrot.slane %v4757_v43, %v6136_v53  ;;  %v6177_v63 = vrot.slane %v4757_v43, %v6144_v59 }
 0x3b2   : > { %v2828_v50 = vmul.f32 %v5865_v40, %v1958_v7  ;;  %v2830_v55 = vmul.f32 %v5868_v14, %v2151_v45  ;;  %v1960_v56 = vpop.f32.mrb[93].mxu0  ;;  %v2153_v58 = vpop.f32.mrb[93].mxu1  ;;  %v6182_v8 = vrot.slane %v4758_v19, %v6133_v48  ;;  %v6198_v31 = vrot.slane %v4758_v19, %v6136_v53 }
 0x3b3   : > { %v2829_v0 = vmul.f32 %v5871_v36, %v1960_v56  ;;  %v2831_v1 = vmul.f32 %v5874_v41, %v2153_v58  ;;  %v1962_v3 = vpop.f32.mrb[94].mxu0  ;;  %v2155_v6 = vpop.f32.mrb[94].mxu1 }
 0x3b4   : > { %v3126_v12 = vadd.f32 %v5879_v44, %v2828_v50  ;;  %v3128_v13 = vadd.f32 %v5882_v47, %v2830_v55  ;;  %v2836_v15 = vmul.f32 %v5865_v40, %v1962_v3  ;;  %v2838_v17 = vmul.f32 %v5868_v14, %v2155_v6  ;;  %v1964_v18 = vpop.f32.mrb[95].mxu0  ;;  %v2157_v20 = vpop.f32.mrb[95].mxu1 }
 0x3b5   : > { %v3127_v21 = vadd.f32 %v5887_v51, %v2829_v0  ;;  %v3129_v37 = vadd.f32 %v5892_v5, %v2831_v1  ;;  %v2837_v42 = vmul.f32 %v5871_v36, %v1964_v18  ;;  %v2839_v22 = vmul.f32 %v5874_v41, %v2157_v20 }
 0x3b6   : > { %v3172_v10 = vmax.f32 %v3171_v2, %v3126_v12  ;;  %v3246_v23 = vmax.f32 %v3245_v57, %v3128_v13  ;;  %v3134_v24 = vadd.f32 %v5879_v44, %v2836_v15  ;;  %v3136_v25 = vadd.f32 %v5882_v47, %v2838_v17 }
 0x3b7   : > { %v3209_v26 = vmax.f32 %v3208_v16, %v3127_v21  ;;  %v3283_v40 = vmax.f32 %v3282_v39, %v3129_v37  ;;  %v3135_v14 = vadd.f32 %v5887_v51, %v2837_v42  ;;  %v3137_v28 = vadd.f32 %v5892_v5, %v2839_v22 }
 0x3b8   : > { %v3173_v38 = vmax.f32 %v3172_v10, %v3134_v24  ;;  %v3247_v29 = vmax.f32 %v3246_v23, %v3136_v25  ;;  %v6201_v36 = vrot.slane %v4758_v19, %v6139_v54  ;;  %v6204_v41 = vrot.slane %v4758_v19, %v6144_v59 }
 0x3b9   : > { %v3210_v44 = vmax.f32 %v3209_v26, %v3135_v14  ;;  %v6207_v47 = vsub.s32 %v3453_v11, %v5843_v4  ;;  %v3284_v32 = vmax.f32 %v3283_v40, %v3137_v28  ;;  %v2194_v60 = vpop.f32.mrb[96].mxu0  ;;  %v2387_v51 = vpop.f32.mrb[96].mxu1 }
 0x3ba   : > { %v3174_v33 = vrot.slane %v3173_v38, 4  ;;  %v3248_v5 = vrot.slane %v3247_v29, 4  ;;  %v2592_v35 = vmul.f32 %v6166_v46, %v2194_v60  ;;  %v2594_v2 = vmul.f32 %v6169_v49, %v2387_v51  ;;  %v2196_v57 = vpop.f32.mrb[97].mxu0  ;;  %v2389_v9 = vpop.f32.mrb[97].mxu1 }
 0x3bb   : > { %v3211_v52 = vrot.slane %v3210_v44, 4  ;;  %v3285_v16 = vrot.slane %v3284_v32, 4  ;;  %v2593_v39 = vmul.f32 %v6174_v61, %v2196_v57  ;;  %v2595_v7 = vmul.f32 %v6177_v63, %v2389_v9  ;;  %v2198_v45 = vpop.f32.mrb[98].mxu0  ;;  %v2391_v4 = vpop.f32.mrb[98].mxu1 }
 0x3bc   : > { %v3175_v43 = vmax.f32 %v3173_v38, %v3174_v33  ;;  %v3249_v50 = vmax.f32 %v3247_v29, %v3248_v5  ;;  %v2890_v55 = vadd.f32 %v6182_v8, %v2592_v35  ;;  %v2892_v56 = vadd.f32 %v6201_v36, %v2594_v2  ;;  %v2200_v58 = vpop.f32.mrb[99].mxu0  ;;  %v2393_v0 = vpop.f32.mrb[99].mxu1 }
 0x3bd   : > { %v3212_v1 = vmax.f32 %v3210_v44, %v3211_v52  ;;  %v3286_v3 = vmax.f32 %v3284_v32, %v3285_v16  ;;  %v2891_v6 = vadd.f32 %v6198_v31, %v2593_v39  ;;  %v2893_v19 = vadd.f32 %v6204_v41, %v2595_v7 }
 0x3be   : > { %v3176_v11 = vrot.slane %v3175_v43, 2  ;;  %v3250_v12 = vrot.slane %v3249_v50, 2  ;;  %v2600_v13 = vmul.f32 %v6166_v46, %v2198_v45  ;;  %v2602_v15 = vmul.f32 %v6169_v49, %v2391_v4 }
 0x3bf   : > { %v3213_v17 = vrot.slane %v3212_v1, 2  ;;  %v3287_v18 = vrot.slane %v3286_v3, 2  ;;  %v2601_v20 = vmul.f32 %v6174_v61, %v2200_v58  ;;  %v2603_v21 = vmul.f32 %v6177_v63, %v2393_v0 }
 0x3c0   : > { %v3177_v37 = vmax.f32 %v3175_v43, %v3176_v11  ;;  %v3251_v42 = vmax.f32 %v3249_v50, %v3250_v12  ;;  %v2898_v22 = vadd.f32 %v6182_v8, %v2600_v13  ;;  %v2900_v10 = vadd.f32 %v6201_v36, %v2602_v15 }
 0x3c1   : > { %v3214_v23 = vmax.f32 %v3212_v1, %v3213_v17  ;;  %v3288_v24 = vmax.f32 %v3286_v3, %v3287_v18  ;;  %v2899_v25 = vadd.f32 %v6198_v31, %v2601_v20  ;;  %v2901_v26 = vadd.f32 %v6204_v41, %v2603_v21  ;;  %v2204_v40 = vpop.f32.mrb[100].mxu0  ;;  %v2397_v14 = vpop.f32.mrb[100].mxu1 }
 0x3c2   : > { %v3178_v28 = vrot.slane %v3177_v37, 1  ;;  %v3252_v38 = vrot.slane %v3251_v42, 1  ;;  %v3291_v29 = vmax.f32 %v2890_v55, %v2898_v22  ;;  %v3365_v44 = vmax.f32 %v2892_v56, %v2900_v10  ;;  %v2206_v32 = vpop.f32.mrb[101].mxu0  ;;  %v2399_v60 = vpop.f32.mrb[101].mxu1 }
 0x3c3   : > { %v3215_v51 = vrot.slane %v3214_v23, 1  ;;  %v3289_v33 = vrot.slane %v3288_v24, 1  ;;  %v3328_v5 = vmax.f32 %v2891_v6, %v2899_v25  ;;  %v3402_v35 = vmax.f32 %v2893_v19, %v2901_v26  ;;  %v2208_v2 = vpop.f32.mrb[102].mxu0  ;;  %v2401_v57 = vpop.f32.mrb[102].mxu1 }
 0x3c4   : > { %v3179_v9 = vmax.f32 %v3177_v37, %v3178_v28  ;;  %v3253_v52 = vmax.f32 %v3251_v42, %v3252_v38  ;;  %v2608_v16 = vmul.f32 %v6166_v46, %v2204_v40  ;;  %v2610_v39 = vmul.f32 %v6169_v49, %v2397_v14  ;;  %v2210_v7 = vpop.f32.mrb[103].mxu0  ;;  %v2403_v45 = vpop.f32.mrb[103].mxu1 }
 0x3c5   : > { %v3216_v4 = vmax.f32 %v3214_v23, %v3215_v51  ;;  %v3290_v43 = vmax.f32 %v3288_v24, %v3289_v33  ;;  %v2609_v50 = vmul.f32 %v6174_v61, %v2206_v32  ;;  %v2611_v55 = vmul.f32 %v6177_v63, %v2399_v60 }
 0x3c6   : > { %v2906_v56 = vadd.f32 %v6182_v8, %v2608_v16  ;;  %v2908_v58 = vadd.f32 %v6201_v36, %v2610_v39  ;;  %v2616_v0 = vmul.f32 %v6166_v46, %v2208_v2  ;;  %v2618_v1 = vmul.f32 %v6169_v49, %v2401_v57  ;;  %v3531_v16 = vld [vmem:[#allocation11 + $0xe0] sm:$0xff]  ;;  %v3532_v39 = vld [vmem:[#allocation11 + $0xe8] sm:$0xff] }
 0x3c7   : > { %v3447_v3 = vcombine.low %v3179_v9, %v3216_v4  ;;  %v3448_v6 = vcombine.low %v3253_v52, %v3290_v43  ;;  %v2907_v19 = vadd.f32 %v6198_v31, %v2609_v50  ;;  %v2909_v11 = vadd.f32 %v6204_v41, %v2611_v55  ;;  %v3515_v50 = vld [vmem:[#allocation11 + $0x60] sm:$0xff]  ;;  %v3516_v55 = vld [vmem:[#allocation11 + $0x68] sm:$0xff] }
 0x3c8   : > { %v3292_v12 = vmax.f32 %v3291_v29, %v2906_v56  ;;  %v3366_v13 = vmax.f32 %v3365_v44, %v2908_v58  ;;  %v2914_v15 = vadd.f32 %v6182_v8, %v2616_v0  ;;  %v2916_v17 = vadd.f32 %v6201_v36, %v2618_v1 }
 0x3c9   : > { %v6238_v18 = vrot.slane %v3447_v3, %v6207_v47  ;;  %v6241_v20 = vrot.slane %v3448_v6, %v6207_v47  ;;  %v3329_v21 = vmax.f32 %v3328_v5, %v2907_v19  ;;  %v3403_v37 = vmax.f32 %v3402_v35, %v2909_v11  ;;  %v2214_v42 = vpop.f32.mrb[104].mxu0  ;;  %v2407_v22 = vpop.f32.mrb[104].mxu1  ;;  %v3563_v3 = vld [vmem:[#allocation11 + $0x1e0] sm:$0xff]  ;;  %v3564_v6 = vld [vmem:[#allocation11 + $0x1e8] sm:$0xff] }
 0x3ca   : > { %v3293_v10 = vmax.f32 %v3292_v12, %v2914_v15  ;;  %v3367_v23 = vmax.f32 %v3366_v13, %v2916_v17  ;;  %v2617_v24 = vmul.f32 %v6174_v61, %v2210_v7  ;;  %v2619_v25 = vmul.f32 %v6177_v63, %v2403_v45  ;;  %v2216_v26 = vpop.f32.mrb[105].mxu0  ;;  %v2409_v40 = vpop.f32.mrb[105].mxu1 }
 0x3cb   : > { %v3479_v14 = vcombine.low %v6238_v18, %v6241_v20  ;;  %v2624_v28 = vmul.f32 %v6166_v46, %v2214_v42  ;;  %v2626_v38 = vmul.f32 %v6169_v49, %v2407_v22  ;;  %v2625_v29 = vmul.f32 %v6174_v61, %v2216_v26  ;;  %v2218_v44 = vpop.f32.mrb[106].mxu0  ;;  %v2411_v32 = vpop.f32.mrb[106].mxu1 }
 0x3cc   : > { %v2915_v60 = vadd.f32 %v6198_v31, %v2617_v24  ;;  %v2917_v51 = vadd.f32 %v6204_v41, %v2619_v25  ;;  %v2627_v33 = vmul.f32 %v6177_v63, %v2409_v40  ;;  %v2632_v5 = vmul.f32 %v6166_v46, %v2218_v44  ;;  %v2220_v35 = vpop.f32.mrb[107].mxu0  ;;  %v2413_v2 = vpop.f32.mrb[107].mxu1 }
 0x3cd   : > { %v2922_v57 = vadd.f32 %v6182_v8, %v2624_v28  ;;  %v2924_v9 = vadd.f32 %v6201_v36, %v2626_v38  ;;  %v2923_v52 = vadd.f32 %v6198_v31, %v2625_v29  ;;  %v2634_v0 = vmul.f32 %v6169_v49, %v2411_v32 }
 0x3ce   : > { %v3330_v7 = vmax.f32 %v3329_v21, %v2915_v60  ;;  %v3404_v45 = vmax.f32 %v3403_v37, %v2917_v51  ;;  %v2925_v4 = vadd.f32 %v6204_v41, %v2627_v33  ;;  %v2930_v43 = vadd.f32 %v6182_v8, %v2632_v5 }
 0x3cf   : > { %v3294_v56 = vmax.f32 %v3293_v10, %v2922_v57  ;;  %v3368_v58 = vmax.f32 %v3367_v23, %v2924_v9  ;;  %v2633_v1 = vmul.f32 %v6174_v61, %v2220_v35  ;;  %v2635_v12 = vmul.f32 %v6177_v63, %v2413_v2  ;;  %v3547_v9 = vld [vmem:[#allocation11 + $0x160] sm:$0xff] }
 0x3d0   : > { %v3331_v19 = vmax.f32 %v3330_v7, %v2923_v52  ;;  %v3405_v11 = vmax.f32 %v3404_v45, %v2925_v4  ;;  %v4539_v13 = vpack.c.bf16 %v3532_v39, %v3531_v16  ;;  %v2932_v17 = vadd.f32 %v6201_v36, %v2634_v0  ;;  %v3548_v52 = vld [vmem:[#allocation11 + $0x168] sm:$0xff]  ;;  %v3533_v4 = vld [vmem:[#allocation11 + $0xf0] sm:$0xff] }
 0x3d1   : > { %v3295_v15 = vmax.f32 %v3294_v56, %v2930_v43  ;;  %v2931_v21 = vadd.f32 %v6198_v31, %v2633_v1  ;;  %v2224_v37 = vpop.f32.mrb[108].mxu0  ;;  %v2417_v42 = vpop.f32.mrb[108].mxu1  ;;  %v4541_v22 = vpack.c.bf16 %v3516_v55, %v3515_v50  ;;  %v2933_v10 = vadd.f32 %v6204_v41, %v2635_v12  ;;  %v3534_v43 = vld [vmem:[#allocation11 + $0xf8] sm:$0xff]  ;;  %v3517_v50 = vld [vmem:[#allocation11 + $0x70] sm:$0xff] }
 0x3d2   : > { %v2640_v23 = vmul.f32 %v6166_v46, %v2224_v37  ;;  %v2642_v24 = vmul.f32 %v6169_v49, %v2417_v42  ;;  %v2226_v25 = vpop.f32.mrb[109].mxu0  ;;  %v2419_v26 = vpop.f32.mrb[109].mxu1  ;;  %4540 = vmatprep.subr.bf16.mxu0 %v4539_v13  ;;  %v4571_v40 = vpack.c.bf16 %v3564_v6, %v3563_v3  ;;  %v3369_v28 = vmax.f32 %v3368_v58, %v2932_v17  ;;  %v3518_v1 = vld [vmem:[#allocation11 + $0x78] sm:$0xff]  ;;  %v3565_v3 = vld [vmem:[#allocation11 + $0x1f0] sm:$0xff] }
 0x3d3   : > { %v3332_v38 = vmax.f32 %v3331_v19, %v2931_v21  ;;  %v2641_v29 = vmul.f32 %v6174_v61, %v2226_v25  ;;  %v2643_v44 = vmul.f32 %v6177_v63, %v2419_v26  ;;  %v2228_v32 = vpop.f32.mrb[110].mxu0  ;;  %v2421_v60 = vpop.f32.mrb[110].mxu1  ;;  %4542 = vmatpush3.bf16.msra.mxu0 %v4541_v22  ;;  %v3406_v51 = vmax.f32 %v3405_v11, %v2933_v10  ;;  %v3566_v6 = vld [vmem:[#allocation11 + $0x1f8] sm:$0xff] }
 0x3d4   : > { %v2938_v33 = vadd.f32 %v6182_v8, %v2640_v23  ;;  %v2940_v5 = vadd.f32 %v6201_v36, %v2642_v24  ;;  %v2648_v35 = vmul.f32 %v6166_v46, %v2228_v32  ;;  %v2230_v2 = vpop.f32.mrb[111].mxu0  ;;  %v2423_v57 = vpop.f32.mrb[111].mxu1  ;;  %4572 = vmatprep.subr.bf16.mxu1 %v4571_v40  ;;  %v2650_v7 = vmul.f32 %v6169_v49, %v2421_v60  ;;  %v3550_v22 = vld [vmem:[#allocation11 + $0x178] sm:$0xff] }
 0x3d5   : > { %v2939_v16 = vadd.f32 %v6198_v31, %v2641_v29  ;;  %v2941_v39 = vadd.f32 %v6204_v41, %v2643_v44  ;;  %v2649_v45 = vmul.f32 %v6174_v61, %v2230_v2  ;;  %v2651_v0 = vmul.f32 %v6177_v63, %v2423_v57 }
 0x3d6   : > { %v3296_v55 = vmax.f32 %v3295_v15, %v2938_v33  ;;  %v3370_v56 = vmax.f32 %v3369_v28, %v2940_v5  ;;  %v2946_v58 = vadd.f32 %v6182_v8, %v2648_v35  ;;  %v2948_v12 = vadd.f32 %v6201_v36, %v2650_v7  ;;  %v3549_v15 = vld [vmem:[#allocation11 + $0x170] sm:$0xff]  ;;  %v3583_v7 = vld [vmem:[#allocation11 + $0x280] sm:$0xff] }
 0x3d7   : > { %v3333_v19 = vmax.f32 %v3332_v38, %v2939_v16  ;;  %v3407_v11 = vmax.f32 %v3406_v51, %v2941_v39  ;;  %v2947_v13 = vadd.f32 %v6198_v31, %v2649_v45  ;;  %v2949_v21 = vadd.f32 %v6204_v41, %v2651_v0 }
 0x3d8   : > { %v3297_v17 = vmax.f32 %v3296_v55, %v2946_v58  ;;  %v4573_v37 = vpack.c.bf16 %v3548_v52, %v3547_v9  ;;  %v4543_v42 = vpack.c.bf16 %v3534_v43, %v3533_v4  ;;  %v3371_v10 = vmax.f32 %v3370_v56, %v2948_v12  ;;  %v3584_v55 = vld [vmem:[#allocation11 + $0x288] sm:$0xff]  ;;  %v3615_v56 = vld [vmem:[#allocation11 + $0x380] sm:$0xff] }
 0x3d9   : > { %v3334_v23 = vmax.f32 %v3333_v19, %v2947_v13  ;;  %v2234_v24 = vpop.f32.mrb[112].mxu0  ;;  %v2427_v25 = vpop.f32.mrb[112].mxu1  ;;  %v4545_v26 = vpack.c.bf16 %v3518_v1, %v3517_v50  ;;  %v4575_v40 = vpack.c.bf16 %v3566_v6, %v3565_v3  ;;  %v3408_v28 = vmax.f32 %v3407_v11, %v2949_v21  ;;  %v3616_v58 = vld [vmem:[#allocation11 + $0x388] sm:$0xff] }
 0x3da   : > { %v2656_v38 = vmul.f32 %v6166_v46, %v2234_v24  ;;  %v2658_v29 = vmul.f32 %v6169_v49, %v2427_v25  ;;  %v2236_v44 = vpop.f32.mrb[113].mxu0  ;;  %v2429_v32 = vpop.f32.mrb[113].mxu1  ;;  %4574 = vmatpush3.bf16.msra.mxu1 %v4573_v37  ;;  %4544 = vmatprep.subr.bf16.mxu0 %v4543_v42  ;;  %v4577_v35 = vpack.c.bf16 %v3550_v22, %v3549_v15 }
 0x3db   : > { %v2657_v60 = vmul.f32 %v6174_v61, %v2236_v44  ;;  %v2659_v51 = vmul.f32 %v6177_v63, %v2429_v32  ;;  %v2238_v33 = vpop.f32.mrb[114].mxu0  ;;  %v2431_v5 = vpop.f32.mrb[114].mxu1  ;;  %4546 = vmatpush3.bf16.msra.mxu0 %v4545_v26  ;;  %4576 = vmatprep.subr.bf16.mxu1 %v4575_v40  ;;  %v4579_v42 = vpack.c.bf16 %v3584_v55, %v3583_v7 }
 0x3dc   : > { %v2954_v2 = vadd.f32 %v6182_v8, %v2656_v38  ;;  %v2956_v57 = vadd.f32 %v6201_v36, %v2658_v29  ;;  %v2664_v9 = vmul.f32 %v6166_v46, %v2238_v33  ;;  %v2666_v52 = vmul.f32 %v6169_v49, %v2431_v5  ;;  %v2240_v16 = vpop.f32.mrb[115].mxu0  ;;  %v2433_v39 = vpop.f32.mrb[115].mxu1 }
 0x3dd   : > { %v2955_v45 = vadd.f32 %v6198_v31, %v2657_v60  ;;  %v2957_v4 = vadd.f32 %v6204_v41, %v2659_v51  ;;  %v2665_v43 = vmul.f32 %v6174_v61, %v2240_v16  ;;  %v2667_v50 = vmul.f32 %v6177_v63, %v2433_v39  ;;  %4580 = vmatprep.subr.bf16.mxu0 %v4579_v42 }
 0x3de   : > { %v3298_v0 = vmax.f32 %v3297_v17, %v2954_v2  ;;  %v3372_v1 = vmax.f32 %v3371_v10, %v2956_v57  ;;  %v2962_v3 = vadd.f32 %v6182_v8, %v2664_v9  ;;  %v2964_v6 = vadd.f32 %v6201_v36, %v2666_v52  ;;  %4578 = vmatpush3.bf16.msra.mxu1 %v4577_v35 }
 0x3df   : > { %v3335_v19 = vmax.f32 %v3334_v23, %v2955_v45  ;;  %v3409_v11 = vmax.f32 %v3408_v28, %v2957_v4  ;;  %v2963_v12 = vadd.f32 %v6198_v31, %v2665_v43  ;;  %v2965_v13 = vadd.f32 %v6204_v41, %v2667_v50 }
 0x3e0   : > { %v3299_v21 = vmax.f32 %v3298_v0, %v2962_v3  ;;  %v3373_v37 = vmax.f32 %v3372_v1, %v2964_v6  ;;  %v4611_v15 = vpack.c.bf16 %v3616_v58, %v3615_v56 }
 0x3e1   : > { %v3336_v22 = vmax.f32 %v3335_v19, %v2963_v12  ;;  %v3410_v24 = vmax.f32 %v3409_v11, %v2965_v13  ;;  %v2244_v25 = vpop.f32.mrb[116].mxu0  ;;  %v2437_v17 = vpop.f32.mrb[116].mxu1 }
 0x3e2   : > { %v2672_v10 = vmul.f32 %v6166_v46, %v2244_v25  ;;  %v2674_v26 = vmul.f32 %v6169_v49, %v2437_v17  ;;  %v2246_v40 = vpop.f32.mrb[117].mxu0  ;;  %v2439_v38 = vpop.f32.mrb[117].mxu1  ;;  %4612 = vmatprep.subr.bf16.mxu1 %v4611_v15 }
 0x3e3   : > { %v2673_v23 = vmul.f32 %v6174_v61, %v2246_v40  ;;  %v2675_v28 = vmul.f32 %v6177_v63, %v2439_v38  ;;  %v2248_v29 = vpop.f32.mrb[118].mxu0  ;;  %v2441_v44 = vpop.f32.mrb[118].mxu1 }
 0x3e4   : > { %v2970_v32 = vadd.f32 %v6182_v8, %v2672_v10  ;;  %v2972_v60 = vadd.f32 %v6201_v36, %v2674_v26  ;;  %v2680_v51 = vmul.f32 %v6166_v46, %v2248_v29  ;;  %v2682_v33 = vmul.f32 %v6169_v49, %v2441_v44  ;;  %v2250_v5 = vpop.f32.mrb[119].mxu0  ;;  %v2443_v35 = vpop.f32.mrb[119].mxu1 }
 0x3e5   : > { %v2971_v2 = vadd.f32 %v6198_v31, %v2673_v23  ;;  %v2973_v57 = vadd.f32 %v6204_v41, %v2675_v28  ;;  %v2681_v9 = vmul.f32 %v6174_v61, %v2250_v5  ;;  %v2683_v52 = vmul.f32 %v6177_v63, %v2443_v35 }
 0x3e6   : > { %v3300_v16 = vmax.f32 %v3299_v21, %v2970_v32  ;;  %v3374_v39 = vmax.f32 %v3373_v37, %v2972_v60  ;;  %v2978_v7 = vadd.f32 %v6182_v8, %v2680_v51  ;;  %v2980_v45 = vadd.f32 %v6201_v36, %v2682_v33 }
 0x3e7   : > { %v3337_v4 = vmax.f32 %v3336_v22, %v2971_v2  ;;  %v3411_v43 = vmax.f32 %v3410_v24, %v2973_v57  ;;  %v2979_v50 = vadd.f32 %v6198_v31, %v2681_v9  ;;  %v2981_v55 = vadd.f32 %v6204_v41, %v2683_v52 }
 0x3e8   : > { %v3301_v56 = vmax.f32 %v3300_v16, %v2978_v7  ;;  %v3375_v58 = vmax.f32 %v3374_v39, %v2980_v45 }
 0x3e9   : > { %v3338_v0 = vmax.f32 %v3337_v4, %v2979_v50  ;;  %v3412_v1 = vmax.f32 %v3411_v43, %v2981_v55  ;;  %v2254_v3 = vpop.f32.mrb[120].mxu0  ;;  %v2447_v6 = vpop.f32.mrb[120].mxu1 }
 0x3ea   : > { %v2688_v19 = vmul.f32 %v6166_v46, %v2254_v3  ;;  %v2690_v11 = vmul.f32 %v6169_v49, %v2447_v6  ;;  %v2256_v12 = vpop.f32.mrb[121].mxu0  ;;  %v2449_v13 = vpop.f32.mrb[121].mxu1 }
 0x3eb   : > { %v2689_v21 = vmul.f32 %v6174_v61, %v2256_v12  ;;  %v2691_v37 = vmul.f32 %v6177_v63, %v2449_v13  ;;  %v2258_v42 = vpop.f32.mrb[122].mxu0  ;;  %v2451_v15 = vpop.f32.mrb[122].mxu1 }
 0x3ec   : > { %v2986_v22 = vadd.f32 %v6182_v8, %v2688_v19  ;;  %v2988_v24 = vadd.f32 %v6201_v36, %v2690_v11  ;;  %v2696_v25 = vmul.f32 %v6166_v46, %v2258_v42  ;;  %v2698_v17 = vmul.f32 %v6169_v49, %v2451_v15  ;;  %v2260_v10 = vpop.f32.mrb[123].mxu0  ;;  %v2453_v26 = vpop.f32.mrb[123].mxu1 }
 0x3ed   : > { %v2987_v40 = vadd.f32 %v6198_v31, %v2689_v21  ;;  %v2989_v38 = vadd.f32 %v6204_v41, %v2691_v37  ;;  %v2697_v23 = vmul.f32 %v6174_v61, %v2260_v10  ;;  %v2699_v28 = vmul.f32 %v6177_v63, %v2453_v26 }
 0x3ee   : > { %v3302_v29 = vmax.f32 %v3301_v56, %v2986_v22  ;;  %v3376_v44 = vmax.f32 %v3375_v58, %v2988_v24  ;;  %v2994_v32 = vadd.f32 %v6182_v8, %v2696_v25  ;;  %v2996_v60 = vadd.f32 %v6201_v36, %v2698_v17 }
 0x3ef   : > { %v3339_v51 = vmax.f32 %v3338_v0, %v2987_v40  ;;  %v3413_v33 = vmax.f32 %v3412_v1, %v2989_v38  ;;  %v2995_v5 = vadd.f32 %v6198_v31, %v2697_v23  ;;  %v2997_v35 = vadd.f32 %v6204_v41, %v2699_v28 }
 0x3f0   : > { %v3303_v2 = vmax.f32 %v3302_v29, %v2994_v32  ;;  %v3377_v57 = vmax.f32 %v3376_v44, %v2996_v60 }
 0x3f1   : > { %v3340_v9 = vmax.f32 %v3339_v51, %v2995_v5  ;;  %v3414_v52 = vmax.f32 %v3413_v33, %v2997_v35  ;;  %v2264_v16 = vpop.f32.mrb[124].mxu0  ;;  %v2457_v39 = vpop.f32.mrb[124].mxu1 }
 0x3f2   : > { %v2704_v7 = vmul.f32 %v6166_v46, %v2264_v16  ;;  %v2706_v45 = vmul.f32 %v6169_v49, %v2457_v39  ;;  %v2266_v4 = vpop.f32.mrb[125].mxu0  ;;  %v2459_v43 = vpop.f32.mrb[125].mxu1 }
 0x3f3   : > { %v2705_v50 = vmul.f32 %v6174_v61, %v2266_v4  ;;  %v2707_v55 = vmul.f32 %v6177_v63, %v2459_v43  ;;  %v2268_v56 = vpop.f32.mrb[126].mxu0  ;;  %v2461_v58 = vpop.f32.mrb[126].mxu1 }
 0x3f4   : > { %v3002_v0 = vadd.f32 %v6182_v8, %v2704_v7  ;;  %v3004_v1 = vadd.f32 %v6201_v36, %v2706_v45  ;;  %v2712_v3 = vmul.f32 %v6166_v46, %v2268_v56  ;;  %v2714_v6 = vmul.f32 %v6169_v49, %v2461_v58  ;;  %v2270_v19 = vpop.f32.mrb[127].mxu0  ;;  %v2463_v11 = vpop.f32.mrb[127].mxu1 }
 0x3f5   : > { %v3003_v12 = vadd.f32 %v6198_v31, %v2705_v50  ;;  %v3005_v13 = vadd.f32 %v6204_v41, %v2707_v55  ;;  %v2713_v21 = vmul.f32 %v6174_v61, %v2270_v19  ;;  %v2715_v37 = vmul.f32 %v6177_v63, %v2463_v11 }
 0x3f6   : > { %v3304_v42 = vmax.f32 %v3303_v2, %v3002_v0  ;;  %v3378_v15 = vmax.f32 %v3377_v57, %v3004_v1  ;;  %v3010_v22 = vadd.f32 %v6182_v8, %v2712_v3  ;;  %v3012_v24 = vadd.f32 %v6201_v36, %v2714_v6 }
 0x3f7   : > { %v3341_v25 = vmax.f32 %v3340_v9, %v3003_v12  ;;  %v3415_v17 = vmax.f32 %v3414_v52, %v3005_v13  ;;  %v3011_v10 = vadd.f32 %v6198_v31, %v2713_v21  ;;  %v3013_v26 = vadd.f32 %v6204_v41, %v2715_v37 }
 0x3f8   : > { %v3305_v40 = vmax.f32 %v3304_v42, %v3010_v22  ;;  %v3379_v38 = vmax.f32 %v3378_v15, %v3012_v24 }
 0x3f9   : > { %v3342_v23 = vmax.f32 %v3341_v25, %v3011_v10  ;;  %v3416_v28 = vmax.f32 %v3415_v17, %v3013_v26  ;;  %v2274_v29 = vpop.f32.mrb[128].mxu0  ;;  %v2467_v44 = vpop.f32.mrb[128].mxu1 }
 0x3fa   : > { %v2720_v32 = vmul.f32 %v6166_v46, %v2274_v29  ;;  %v2722_v60 = vmul.f32 %v6169_v49, %v2467_v44  ;;  %v2276_v51 = vpop.f32.mrb[129].mxu0  ;;  %v2469_v33 = vpop.f32.mrb[129].mxu1 }
 0x3fb   : > { %v2721_v5 = vmul.f32 %v6174_v61, %v2276_v51  ;;  %v2723_v35 = vmul.f32 %v6177_v63, %v2469_v33  ;;  %v2278_v2 = vpop.f32.mrb[130].mxu0  ;;  %v2471_v57 = vpop.f32.mrb[130].mxu1 }
 0x3fc   : > { %v3018_v9 = vadd.f32 %v6182_v8, %v2720_v32  ;;  %v3020_v52 = vadd.f32 %v6201_v36, %v2722_v60  ;;  %v2728_v16 = vmul.f32 %v6166_v46, %v2278_v2  ;;  %v2730_v39 = vmul.f32 %v6169_v49, %v2471_v57  ;;  %v2280_v7 = vpop.f32.mrb[131].mxu0  ;;  %v2473_v45 = vpop.f32.mrb[131].mxu1 }
 0x3fd   : > { %v3019_v4 = vadd.f32 %v6198_v31, %v2721_v5  ;;  %v3021_v43 = vadd.f32 %v6204_v41, %v2723_v35  ;;  %v2729_v50 = vmul.f32 %v6174_v61, %v2280_v7  ;;  %v2731_v55 = vmul.f32 %v6177_v63, %v2473_v45 }
 0x3fe   : > { %v3306_v56 = vmax.f32 %v3305_v40, %v3018_v9  ;;  %v3380_v58 = vmax.f32 %v3379_v38, %v3020_v52  ;;  %v3026_v0 = vadd.f32 %v6182_v8, %v2728_v16  ;;  %v3028_v1 = vadd.f32 %v6201_v36, %v2730_v39 }
 0x3ff   : > { %v3343_v3 = vmax.f32 %v3342_v23, %v3019_v4  ;;  %v3417_v6 = vmax.f32 %v3416_v28, %v3021_v43  ;;  %v3027_v19 = vadd.f32 %v6198_v31, %v2729_v50  ;;  %v3029_v11 = vadd.f32 %v6204_v41, %v2731_v55 }
 0x400   : > { %v3307_v12 = vmax.f32 %v3306_v56, %v3026_v0  ;;  %v3381_v13 = vmax.f32 %v3380_v58, %v3028_v1 }
 0x401   : > { %v3344_v21 = vmax.f32 %v3343_v3, %v3027_v19  ;;  %v3418_v37 = vmax.f32 %v3417_v6, %v3029_v11  ;;  %v2284_v42 = vpop.f32.mrb[132].mxu0  ;;  %v2477_v15 = vpop.f32.mrb[132].mxu1 }
 0x402   : > { %v2736_v22 = vmul.f32 %v6166_v46, %v2284_v42  ;;  %v2738_v24 = vmul.f32 %v6169_v49, %v2477_v15  ;;  %v2286_v25 = vpop.f32.mrb[133].mxu0  ;;  %v2479_v17 = vpop.f32.mrb[133].mxu1 }
 0x403   : > { %v2737_v10 = vmul.f32 %v6174_v61, %v2286_v25  ;;  %v2739_v26 = vmul.f32 %v6177_v63, %v2479_v17  ;;  %v2288_v40 = vpop.f32.mrb[134].mxu0  ;;  %v2481_v38 = vpop.f32.mrb[134].mxu1 }
 0x404   : > { %v3034_v23 = vadd.f32 %v6182_v8, %v2736_v22  ;;  %v3036_v28 = vadd.f32 %v6201_v36, %v2738_v24  ;;  %v2744_v29 = vmul.f32 %v6166_v46, %v2288_v40  ;;  %v2746_v44 = vmul.f32 %v6169_v49, %v2481_v38  ;;  %v2290_v32 = vpop.f32.mrb[135].mxu0  ;;  %v2483_v60 = vpop.f32.mrb[135].mxu1 }
 0x405   : > { %v3035_v51 = vadd.f32 %v6198_v31, %v2737_v10  ;;  %v3037_v33 = vadd.f32 %v6204_v41, %v2739_v26  ;;  %v2745_v5 = vmul.f32 %v6174_v61, %v2290_v32  ;;  %v2747_v35 = vmul.f32 %v6177_v63, %v2483_v60 }
 0x406   : > { %v3308_v2 = vmax.f32 %v3307_v12, %v3034_v23  ;;  %v3382_v57 = vmax.f32 %v3381_v13, %v3036_v28  ;;  %v3042_v9 = vadd.f32 %v6182_v8, %v2744_v29  ;;  %v3044_v52 = vadd.f32 %v6201_v36, %v2746_v44 }
 0x407   : > { %v3345_v16 = vmax.f32 %v3344_v21, %v3035_v51  ;;  %v3419_v39 = vmax.f32 %v3418_v37, %v3037_v33  ;;  %v3043_v7 = vadd.f32 %v6198_v31, %v2745_v5  ;;  %v3045_v45 = vadd.f32 %v6204_v41, %v2747_v35 }
 0x408   : > { %v3309_v4 = vmax.f32 %v3308_v2, %v3042_v9  ;;  %v3383_v43 = vmax.f32 %v3382_v57, %v3044_v52 }
 0x409   : > { %v3346_v50 = vmax.f32 %v3345_v16, %v3043_v7  ;;  %v3420_v55 = vmax.f32 %v3419_v39, %v3045_v45  ;;  %v2294_v56 = vpop.f32.mrb[136].mxu0  ;;  %v2487_v58 = vpop.f32.mrb[136].mxu1 }
 0x40a   : > { %v2752_v0 = vmul.f32 %v6166_v46, %v2294_v56  ;;  %v2754_v1 = vmul.f32 %v6169_v49, %v2487_v58  ;;  %v2296_v3 = vpop.f32.mrb[137].mxu0  ;;  %v2489_v6 = vpop.f32.mrb[137].mxu1 }
 0x40b   : > { %v2753_v19 = vmul.f32 %v6174_v61, %v2296_v3  ;;  %v2755_v11 = vmul.f32 %v6177_v63, %v2489_v6  ;;  %v2298_v12 = vpop.f32.mrb[138].mxu0  ;;  %v2491_v13 = vpop.f32.mrb[138].mxu1 }
 0x40c   : > { %v3050_v21 = vadd.f32 %v6182_v8, %v2752_v0  ;;  %v3052_v37 = vadd.f32 %v6201_v36, %v2754_v1  ;;  %v2760_v42 = vmul.f32 %v6166_v46, %v2298_v12  ;;  %v2762_v15 = vmul.f32 %v6169_v49, %v2491_v13  ;;  %v2300_v22 = vpop.f32.mrb[139].mxu0  ;;  %v2493_v24 = vpop.f32.mrb[139].mxu1 }
 0x40d   : > { %v3051_v25 = vadd.f32 %v6198_v31, %v2753_v19  ;;  %v3053_v17 = vadd.f32 %v6204_v41, %v2755_v11  ;;  %v2761_v10 = vmul.f32 %v6174_v61, %v2300_v22  ;;  %v2763_v26 = vmul.f32 %v6177_v63, %v2493_v24 }
 0x40e   : > { %v3310_v40 = vmax.f32 %v3309_v4, %v3050_v21  ;;  %v3384_v38 = vmax.f32 %v3383_v43, %v3052_v37  ;;  %v3058_v23 = vadd.f32 %v6182_v8, %v2760_v42  ;;  %v3060_v28 = vadd.f32 %v6201_v36, %v2762_v15 }
 0x40f   : > { %v3347_v29 = vmax.f32 %v3346_v50, %v3051_v25  ;;  %v3421_v44 = vmax.f32 %v3420_v55, %v3053_v17  ;;  %v3059_v32 = vadd.f32 %v6198_v31, %v2761_v10  ;;  %v3061_v60 = vadd.f32 %v6204_v41, %v2763_v26 }
 0x410   : > { %v3311_v51 = vmax.f32 %v3310_v40, %v3058_v23  ;;  %v3385_v33 = vmax.f32 %v3384_v38, %v3060_v28 }
 0x411   : > { %v3348_v5 = vmax.f32 %v3347_v29, %v3059_v32  ;;  %v3422_v35 = vmax.f32 %v3421_v44, %v3061_v60  ;;  %v2304_v2 = vpop.f32.mrb[140].mxu0  ;;  %v2497_v57 = vpop.f32.mrb[140].mxu1 }
 0x412   : > { %v2768_v9 = vmul.f32 %v6166_v46, %v2304_v2  ;;  %v2770_v52 = vmul.f32 %v6169_v49, %v2497_v57  ;;  %v2306_v16 = vpop.f32.mrb[141].mxu0  ;;  %v2499_v39 = vpop.f32.mrb[141].mxu1 }
 0x413   : > { %v2769_v7 = vmul.f32 %v6174_v61, %v2306_v16  ;;  %v2771_v45 = vmul.f32 %v6177_v63, %v2499_v39  ;;  %v2308_v4 = vpop.f32.mrb[142].mxu0  ;;  %v2501_v43 = vpop.f32.mrb[142].mxu1 }
 0x414   : > { %v3066_v50 = vadd.f32 %v6182_v8, %v2768_v9  ;;  %v3068_v55 = vadd.f32 %v6201_v36, %v2770_v52  ;;  %v2776_v56 = vmul.f32 %v6166_v46, %v2308_v4  ;;  %v2778_v58 = vmul.f32 %v6169_v49, %v2501_v43  ;;  %v2310_v0 = vpop.f32.mrb[143].mxu0  ;;  %v2503_v1 = vpop.f32.mrb[143].mxu1 }
 0x415   : > { %v3067_v3 = vadd.f32 %v6198_v31, %v2769_v7  ;;  %v3069_v6 = vadd.f32 %v6204_v41, %v2771_v45  ;;  %v2777_v19 = vmul.f32 %v6174_v61, %v2310_v0  ;;  %v2779_v11 = vmul.f32 %v6177_v63, %v2503_v1 }
 0x416   : > { %v3312_v12 = vmax.f32 %v3311_v51, %v3066_v50  ;;  %v3386_v13 = vmax.f32 %v3385_v33, %v3068_v55  ;;  %v3074_v21 = vadd.f32 %v6182_v8, %v2776_v56  ;;  %v3076_v37 = vadd.f32 %v6201_v36, %v2778_v58 }
 0x417   : > { %v3349_v42 = vmax.f32 %v3348_v5, %v3067_v3  ;;  %v3423_v15 = vmax.f32 %v3422_v35, %v3069_v6  ;;  %v3075_v22 = vadd.f32 %v6198_v31, %v2777_v19  ;;  %v3077_v24 = vadd.f32 %v6204_v41, %v2779_v11 }
 0x418   : > { %v3313_v25 = vmax.f32 %v3312_v12, %v3074_v21  ;;  %v3387_v17 = vmax.f32 %v3386_v13, %v3076_v37 }
 0x419   : > { %v3350_v10 = vmax.f32 %v3349_v42, %v3075_v22  ;;  %v3424_v26 = vmax.f32 %v3423_v15, %v3077_v24  ;;  %v2314_v40 = vpop.f32.mrb[144].mxu0 }
 0x41a   : > { %v2784_v38 = vmul.f32 %v6166_v46, %v2314_v40  ;;  %v2507_v23 = vpop.f32.mrb[144].mxu1  ;;  %v2316_v28 = vpop.f32.mrb[145].mxu0 }
 0x41b   : > { %v2786_v29 = vmul.f32 %v6169_v49, %v2507_v23  ;;  %v2785_v44 = vmul.f32 %v6174_v61, %v2316_v28  ;;  %v2509_v32 = vpop.f32.mrb[145].mxu1  ;;  %v2318_v60 = vpop.f32.mrb[146].mxu0 }
 0x41c   : > { %v3082_v51 = vadd.f32 %v6182_v8, %v2784_v38  ;;  %v2787_v33 = vmul.f32 %v6177_v63, %v2509_v32  ;;  %v2792_v5 = vmul.f32 %v6166_v46, %v2318_v60  ;;  %v2511_v35 = vpop.f32.mrb[146].mxu1  ;;  %v2320_v2 = vpop.f32.mrb[147].mxu0 }
 0x41d   : > { %v3084_v57 = vadd.f32 %v6201_v36, %v2786_v29  ;;  %v3083_v9 = vadd.f32 %v6198_v31, %v2785_v44  ;;  %v2794_v52 = vmul.f32 %v6169_v49, %v2511_v35  ;;  %v2793_v16 = vmul.f32 %v6174_v61, %v2320_v2  ;;  %v2513_v39 = vpop.f32.mrb[147].mxu1 }
 0x41e   : > { %v3314_v7 = vmax.f32 %v3313_v25, %v3082_v51  ;;  %v3085_v45 = vadd.f32 %v6204_v41, %v2787_v33  ;;  %v3090_v4 = vadd.f32 %v6182_v8, %v2792_v5  ;;  %v2795_v43 = vmul.f32 %v6177_v63, %v2513_v39 }
 0x41f   : > { %v3388_v50 = vmax.f32 %v3387_v17, %v3084_v57  ;;  %v3351_v55 = vmax.f32 %v3350_v10, %v3083_v9  ;;  %v3092_v56 = vadd.f32 %v6201_v36, %v2794_v52  ;;  %v3091_v58 = vadd.f32 %v6198_v31, %v2793_v16 }
 0x420   : > { %v3425_v0 = vmax.f32 %v3424_v26, %v3085_v45  ;;  %v3315_v1 = vmax.f32 %v3314_v7, %v3090_v4  ;;  %v3093_v3 = vadd.f32 %v6204_v41, %v2795_v43 }
 0x421   : > { %v3389_v6 = vmax.f32 %v3388_v50, %v3092_v56  ;;  %v3352_v19 = vmax.f32 %v3351_v55, %v3091_v58  ;;  %v2324_v11 = vpop.f32.mrb[148].mxu0 }
 0x422   : > { %v3426_v12 = vmax.f32 %v3425_v0, %v3093_v3  ;;  %v2800_v13 = vmul.f32 %v6166_v46, %v2324_v11  ;;  %v2517_v21 = vpop.f32.mrb[148].mxu1  ;;  %v2326_v37 = vpop.f32.mrb[149].mxu0 }
 0x423   : > { %v2802_v42 = vmul.f32 %v6169_v49, %v2517_v21  ;;  %v2801_v15 = vmul.f32 %v6174_v61, %v2326_v37  ;;  %v2519_v22 = vpop.f32.mrb[149].mxu1  ;;  %v2328_v24 = vpop.f32.mrb[150].mxu0 }
 0x424   : > { %v3098_v25 = vadd.f32 %v6182_v8, %v2800_v13  ;;  %v2803_v17 = vmul.f32 %v6177_v63, %v2519_v22  ;;  %v2808_v10 = vmul.f32 %v6166_v46, %v2328_v24  ;;  %v2521_v26 = vpop.f32.mrb[150].mxu1  ;;  %v2330_v40 = vpop.f32.mrb[151].mxu0 }
 0x425   : > { %v3100_v38 = vadd.f32 %v6201_v36, %v2802_v42  ;;  %v3099_v23 = vadd.f32 %v6198_v31, %v2801_v15  ;;  %v2810_v28 = vmul.f32 %v6169_v49, %v2521_v26  ;;  %v2809_v29 = vmul.f32 %v6174_v61, %v2330_v40  ;;  %v2523_v44 = vpop.f32.mrb[151].mxu1 }
 0x426   : > { %v3316_v32 = vmax.f32 %v3315_v1, %v3098_v25  ;;  %v3101_v60 = vadd.f32 %v6204_v41, %v2803_v17  ;;  %v3106_v51 = vadd.f32 %v6182_v8, %v2808_v10  ;;  %v2811_v33 = vmul.f32 %v6177_v63, %v2523_v44 }
 0x427   : > { %v3390_v5 = vmax.f32 %v3389_v6, %v3100_v38  ;;  %v3353_v35 = vmax.f32 %v3352_v19, %v3099_v23  ;;  %v3108_v2 = vadd.f32 %v6201_v36, %v2810_v28  ;;  %v3107_v57 = vadd.f32 %v6198_v31, %v2809_v29 }
 0x428   : > { %v3427_v9 = vmax.f32 %v3426_v12, %v3101_v60  ;;  %v3317_v52 = vmax.f32 %v3316_v32, %v3106_v51  ;;  %v3109_v16 = vadd.f32 %v6204_v41, %v2811_v33 }
 0x429   : > { %v3391_v39 = vmax.f32 %v3390_v5, %v3108_v2  ;;  %v3354_v7 = vmax.f32 %v3353_v35, %v3107_v57  ;;  %v2334_v45 = vpop.f32.mrb[152].mxu0 }
 0x42a   : > { %v3428_v4 = vmax.f32 %v3427_v9, %v3109_v16  ;;  %v2816_v43 = vmul.f32 %v6166_v46, %v2334_v45  ;;  %v2527_v50 = vpop.f32.mrb[152].mxu1  ;;  %v2336_v55 = vpop.f32.mrb[153].mxu0 }
 0x42b   : > { %v2818_v56 = vmul.f32 %v6169_v49, %v2527_v50  ;;  %v2817_v58 = vmul.f32 %v6174_v61, %v2336_v55  ;;  %v2529_v0 = vpop.f32.mrb[153].mxu1  ;;  %v2338_v1 = vpop.f32.mrb[154].mxu0 }
 0x42c   : > { %v3114_v3 = vadd.f32 %v6182_v8, %v2816_v43  ;;  %v2819_v6 = vmul.f32 %v6177_v63, %v2529_v0  ;;  %v2824_v19 = vmul.f32 %v6166_v46, %v2338_v1  ;;  %v2531_v11 = vpop.f32.mrb[154].mxu1  ;;  %v2340_v12 = vpop.f32.mrb[155].mxu0 }
 0x42d   : > { %v3116_v13 = vadd.f32 %v6201_v36, %v2818_v56  ;;  %v3115_v21 = vadd.f32 %v6198_v31, %v2817_v58  ;;  %v2826_v37 = vmul.f32 %v6169_v49, %v2531_v11  ;;  %v2825_v42 = vmul.f32 %v6174_v61, %v2340_v12  ;;  %v2533_v15 = vpop.f32.mrb[155].mxu1 }
 0x42e   : > { %v3318_v22 = vmax.f32 %v3317_v52, %v3114_v3  ;;  %v3117_v24 = vadd.f32 %v6204_v41, %v2819_v6  ;;  %v3122_v25 = vadd.f32 %v6182_v8, %v2824_v19  ;;  %v2827_v17 = vmul.f32 %v6177_v63, %v2533_v15 }
 0x42f   : > { %v3392_v10 = vmax.f32 %v3391_v39, %v3116_v13  ;;  %v3355_v26 = vmax.f32 %v3354_v7, %v3115_v21  ;;  %v3124_v40 = vadd.f32 %v6201_v36, %v2826_v37  ;;  %v3123_v38 = vadd.f32 %v6198_v31, %v2825_v42 }
 0x430   : > { %v3429_v23 = vmax.f32 %v3428_v4, %v3117_v24  ;;  %v3319_v28 = vmax.f32 %v3318_v22, %v3122_v25  ;;  %v3125_v29 = vadd.f32 %v6204_v41, %v2827_v17 }
 0x431   : > { %v3393_v44 = vmax.f32 %v3392_v10, %v3124_v40  ;;  %v3356_v32 = vmax.f32 %v3355_v26, %v3123_v38  ;;  %v2344_v60 = vpop.f32.mrb[156].mxu0 }
 0x432   : > { %v3430_v51 = vmax.f32 %v3429_v23, %v3125_v29  ;;  %v2832_v33 = vmul.f32 %v6166_v46, %v2344_v60  ;;  %v2537_v5 = vpop.f32.mrb[156].mxu1  ;;  %v2346_v35 = vpop.f32.mrb[157].mxu0 }
 0x433   : > { %v2834_v2 = vmul.f32 %v6169_v49, %v2537_v5  ;;  %v2833_v57 = vmul.f32 %v6174_v61, %v2346_v35  ;;  %v2539_v9 = vpop.f32.mrb[157].mxu1  ;;  %v2348_v52 = vpop.f32.mrb[158].mxu0 }
 0x434   : > { %v3130_v16 = vadd.f32 %v6182_v8, %v2832_v33  ;;  %v2835_v39 = vmul.f32 %v6177_v63, %v2539_v9  ;;  %v2840_v7 = vmul.f32 %v6166_v46, %v2348_v52  ;;  %v2541_v45 = vpop.f32.mrb[158].mxu1  ;;  %v2350_v4 = vpop.f32.mrb[159].mxu0 }
 0x435   : > { %v3132_v43 = vadd.f32 %v6201_v36, %v2834_v2  ;;  %v3131_v50 = vadd.f32 %v6198_v31, %v2833_v57  ;;  %v2842_v55 = vmul.f32 %v6169_v49, %v2541_v45  ;;  %v2841_v56 = vmul.f32 %v6174_v61, %v2350_v4  ;;  %v2543_v58 = vpop.f32.mrb[159].mxu1  ;;  %v3568_v4 = vld [vmem:[#allocation11 + $0x208] sm:$0xff] }
 0x436   : > { %v3320_v0 = vmax.f32 %v3319_v28, %v3130_v16  ;;  %v3133_v1 = vadd.f32 %v6204_v41, %v2835_v39  ;;  %v3138_v3 = vadd.f32 %v6182_v8, %v2840_v7  ;;  %v2843_v6 = vmul.f32 %v6177_v63, %v2543_v58  ;;  %v3567_v39 = vld [vmem:[#allocation11 + $0x200] sm:$0xff] }
 0x437   : > { %v3394_v19 = vmax.f32 %v3393_v44, %v3132_v43  ;;  %v3357_v46 = vmax.f32 %v3356_v32, %v3131_v50  ;;  %v3140_v11 = vadd.f32 %v6201_v36, %v2842_v55  ;;  %v3139_v12 = vadd.f32 %v6198_v31, %v2841_v56  ;;  %v3599_v43 = vld [vmem:[#allocation11 + $0x300] sm:$0xff]  ;;  %v3600_v50 = vld [vmem:[#allocation11 + $0x308] sm:$0xff]  ;;  %v3585_v56 = vld [vmem:[#allocation11 + $0x290] sm:$0xff] }
 0x438   : > { %v3431_v13 = vmax.f32 %v3430_v51, %v3133_v1  ;;  %v3321_v21 = vmax.f32 %v3320_v0, %v3138_v3  ;;  %v3141_v49 = vadd.f32 %v6204_v41, %v2843_v6  ;;  %v3487_v7 = vrot.slane %v3479_v14, %v6207_v47  ;;  %v3586_v1 = vld [vmem:[#allocation11 + $0x298] sm:$0xff]  ;;  %v3617_v3 = vld [vmem:[#allocation11 + $0x390] sm:$0xff] }
 0x439   : > { %v3395_v37 = vmax.f32 %v3394_v19, %v3140_v11  ;;  %v3358_v61 = vmax.f32 %v3357_v46, %v3139_v12  ;;  %v4581_v58 = vpack.c.bf16 %v3568_v4, %v3567_v39  ;;  %v4613_v0 = vpack.c.bf16 %v3600_v50, %v3599_v43  ;;  %v3618_v6 = vld [vmem:[#allocation11 + $0x398] sm:$0xff]  ;;  %v3569_v14 = vld [vmem:[#allocation11 + $0x210] sm:$0xff] }
 0x43a   : > { %v3322_v42 = vrot.slane %v3321_v21, 4  ;;  %v3432_v15 = vmax.f32 %v3431_v13, %v3141_v49  ;;  %v3570_v46 = vld [vmem:[#allocation11 + $0x218] sm:$0xff]  ;;  %v3601_v11 = vld [vmem:[#allocation11 + $0x310] sm:$0xff]  ;;  %v3587_v13 = vld [vmem:[#allocation11 + $0x2a0] sm:$0xff]  ;;  %v4615_v49 = vpack.c.bf16 %v3618_v6, %v3617_v3 }
 0x43b   : > { %v3396_v22 = vrot.slane %v3395_v37, 4  ;;  %v3359_v24 = vrot.slane %v3358_v61, 4  ;;  %v3602_v12 = vld [vmem:[#allocation11 + $0x318] sm:$0xff]  ;;  %v3577_v50 = vld [vmem:[#allocation11 + $0x250] sm:$0xff]  ;;  %v3595_v6 = vld [vmem:[#allocation11 + $0x2e0] sm:$0xff] }
 0x43c   : > { %v3323_v25 = vmax.f32 %v3321_v21, %v3322_v42  ;;  %v3433_v8 = vrot.slane %v3432_v15, 4  ;;  %v4583_v21 = vpack.c.bf16 %v3586_v1, %v3585_v56  ;;  %v4617_v42 = vpack.c.bf16 %v3602_v12, %v3601_v11  ;;  %v3594_v39 = vld [vmem:[#allocation11 + $0x2d8] sm:$0xff]  ;;  %v3609_v1 = vld [vmem:[#allocation11 + $0x350] sm:$0xff]  ;;  %v3580_v11 = vld [vmem:[#allocation11 + $0x268] sm:$0xff] }
 0x43d   : > { %v3397_v17 = vmax.f32 %v3395_v37, %v3396_v22  ;;  %v3360_v63 = vmax.f32 %v3358_v61, %v3359_v24  ;;  %v3588_v37 = vld [vmem:[#allocation11 + $0x2a8] sm:$0xff]  ;;  %v3578_v56 = vld [vmem:[#allocation11 + $0x258] sm:$0xff] }
 0x43e   : > { %v3324_v10 = vrot.slane %v3323_v25, 2  ;;  %v3434_v26 = vmax.f32 %v3432_v15, %v3433_v8  ;;  %v3620_v61 = vld [vmem:[#allocation11 + $0x3a8] sm:$0xff]  ;;  %v3571_v15 = vld [vmem:[#allocation11 + $0x220] sm:$0xff]  ;;  %v4587_v24 = vpack.c.bf16 %v3588_v37, %v3587_v13  ;;  %v3610_v3 = vld [vmem:[#allocation11 + $0x358] sm:$0xff] }
 0x43f   : > { %v3398_v40 = vrot.slane %v3397_v17, 2  ;;  %v3361_v36 = vrot.slane %v3360_v63, 2  ;;  %v3572_v22 = vld [vmem:[#allocation11 + $0x228] sm:$0xff]  ;;  %v3603_v8 = vld [vmem:[#allocation11 + $0x320] sm:$0xff]  ;;  %v3597_v37 = vld [vmem:[#allocation11 + $0x2f0] sm:$0xff] }
 0x440   : > { %v3325_v38 = vmax.f32 %v3323_v25, %v3324_v10  ;;  %v3435_v31 = vrot.slane %v3434_v26, 2  ;;  %v3590_v10 = vld [vmem:[#allocation11 + $0x2b8] sm:$0xff] }
 0x441   : > { %v3399_v23 = vmax.f32 %v3397_v17, %v3398_v40  ;;  %v3362_v28 = vmax.f32 %v3360_v63, %v3361_v36  ;;  %v3604_v17 = vld [vmem:[#allocation11 + $0x328] sm:$0xff]  ;;  %v3589_v63 = vld [vmem:[#allocation11 + $0x2b0] sm:$0xff] }
 0x442   : > { %v3326_v29 = vrot.slane %v3325_v38, 1  ;;  %v3436_v41 = vmax.f32 %v3434_v26, %v3435_v31  ;;  %v3622_v26 = vld [vmem:[#allocation11 + $0x3b8] sm:$0xff]  ;;  %v4621_v40 = vpack.c.bf16 %v3604_v17, %v3603_v8  ;;  %v3573_v36 = vld [vmem:[#allocation11 + $0x230] sm:$0xff]  ;;  %v4591_v31 = vpack.c.bf16 %v3590_v10, %v3589_v63 }
 0x443   : > { %v3400_v44 = vrot.slane %v3399_v23, 1  ;;  %v3363_v32 = vrot.slane %v3362_v28, 1  ;;  %v3614_v8 = vld [vmem:[#allocation11 + $0x378] sm:$0xff] }
 0x444   : > { %v3327_v60 = vmax.f32 %v3325_v38, %v3326_v29  ;;  %v3437_v51 = vrot.slane %v3436_v41, 1  ;;  %v3574_v38 = vld [vmem:[#allocation11 + $0x238] sm:$0xff] }
 0x445   : > { %v3401_v33 = vmax.f32 %v3399_v23, %v3400_v44  ;;  %v3364_v5 = vmax.f32 %v3362_v28, %v3363_v32  ;;  %v3605_v28 = vld [vmem:[#allocation11 + $0x330] sm:$0xff]  ;;  %v3606_v29 = vld [vmem:[#allocation11 + $0x338] sm:$0xff]  ;;  %v3592_v44 = vld [vmem:[#allocation11 + $0x2c8] sm:$0xff] }
 0x446   : > { %v3438_v35 = vmax.f32 %v3436_v41, %v3437_v51  ;;  %v3591_v41 = vld [vmem:[#allocation11 + $0x2c0] sm:$0xff]  ;;  %v4593_v51 = vpack.c.bf16 %v3574_v38, %v3573_v36 }
 0x447   : > { %v3449_v2 = vcombine.low %v3327_v60, %v3364_v5  ;;  %v3623_v32 = vld [vmem:[#allocation11 + $0x3c0] sm:$0xff]  ;;  %v3624_v60 = vld [vmem:[#allocation11 + $0x3c8] sm:$0xff] }
 0x448   : > { %v3450_v57 = vcombine.low %v3401_v33, %v3438_v35  ;;  %v4625_v33 = vpack.c.bf16 %v3606_v29, %v3605_v28  ;;  %v3575_v5 = vld [vmem:[#allocation11 + $0x240] sm:$0xff]  ;;  %v3576_v35 = vld [vmem:[#allocation11 + $0x248] sm:$0xff] }
 0x449   : > { %v3471_v9 = vrot.slane %v3449_v2, %v6207_v47  ;;  %v4595_v2 = vpack.c.bf16 %v3592_v44, %v3591_v41  ;;  %v4597_v4 = vpack.c.bf16 %v3576_v35, %v3575_v5 }
 0x44a   : > { %v3478_v52 = vrot.slane %v3450_v57, %v6207_v47  ;;  %v4627_v57 = vpack.c.bf16 %v3624_v60, %v3623_v32 }
 0x44c   : > { %v3480_v16 = vcombine.low %v3471_v9, %v3478_v52  ;;  %v3607_v9 = vld [vmem:[#allocation11 + $0x340] sm:$0xff]  ;;  %v3608_v52 = vld [vmem:[#allocation11 + $0x348] sm:$0xff] }
 0x44d   : > { %v4629_v43 = vpack.c.bf16 %v3608_v52, %v3607_v9 }
 0x44e   : > { %v3494_v45 = vrot.slane %v3480_v16, %v6207_v47  ;;  %v3593_v16 = vld [vmem:[#allocation11 + $0x2d0] sm:$0xff] }
 0x450   : > { %v6480_v55 = vcombine.low %v3487_v7, %v3494_v45  ;;  %v3625_v7 = vld [vmem:[#allocation11 + $0x3d0] sm:$0xff]  ;;  %v3626_v45 = vld [vmem:[#allocation11 + $0x3d8] sm:$0xff] }
 0x452   : > { %v3639_v19 = vrot.slane %v6480_v55, %v5857_v62  ;;  %v3647_v18 = vrot.slane %v6480_v55, %v5860_v34  ;;  %v3635_v47 = vrot.slane %v6480_v55, %v5848_v27  ;;  %v3643_v20 = vrot.slane %v6480_v55, %v5851_v30  ;;  %v3619_v62 = vld [vmem:[#allocation11 + $0x3a0] sm:$0xff] }
 0x453   : > { %v3655_v27 = vrot.slane %v6480_v55, %v6136_v53  ;;  %v3663_v30 = vrot.slane %v6480_v55, %v6144_v59  ;;  %v4585_v34 = vpack.c.bf16 %v3570_v46, %v3569_v14  ;;  %v4619_v25 = vpack.c.bf16 %v3620_v61, %v3619_v62  ;;  %v3621_v53 = vld [vmem:[#allocation11 + $0x3b0] sm:$0xff]  ;;  %v3579_v46 = vld [vmem:[#allocation11 + $0x260] sm:$0xff]  ;;  %v3598_v62 = vld [vmem:[#allocation11 + $0x2f8] sm:$0xff] }
 0x454   : > { %3736 = vmatprep.mubr.f32.mxu0 %v3639_v19  ;;  %3806 = vmatprep.mubr.f32.mxu1 %v3647_v18  ;;  %v4589_v59 = vpack.c.bf16 %v3572_v22, %v3571_v15  ;;  %v4623_v23 = vpack.c.bf16 %v3622_v26, %v3621_v53  ;;  %v3596_v19 = vld [vmem:[#allocation11 + $0x2e8] sm:$0xff]  ;;  %v3627_v18 = vld [vmem:[#allocation11 + $0x3e0] sm:$0xff]  ;;  %v4633_v14 = vpack.c.bf16 %v3610_v3, %v3609_v1  ;;  %v3629_v61 = vld [vmem:[#allocation11 + $0x3f0] sm:$0xff] }
 0x455   : > { %3737 = vmatmul.mubr.f32.vlgmr.msra.gmra.mrb[160].mxu0 %v3635_v47  ;;  %3807 = vmatmul.mubr.f32.vlgmr.msra.gmra.mrb[160].mxu1 %v3643_v20  ;;  %v3628_v47 = vld [vmem:[#allocation11 + $0x3e8] sm:$0xff]  ;;  %v4601_v20 = vpack.c.bf16 %v3578_v56, %v3577_v50  ;;  %v4603_v12 = vpack.c.bf16 %v3596_v19, %v3595_v6  ;;  %v4607_v15 = vpack.c.bf16 %v3598_v62, %v3597_v37 }
 0x456   : > { %4582 = vmatpush3.bf16.msra.mxu0 %v4581_v58  ;;  %4614 = vmatpush3.bf16.msra.mxu1 %v4613_v0  ;;  %v4599_v58 = vpack.c.bf16 %v3594_v39, %v3593_v16  ;;  %v4631_v0 = vpack.c.bf16 %v3626_v45, %v3625_v7  ;;  %v4635_v13 = vpack.c.bf16 %v3628_v47, %v3627_v18 }
 0x457   : > { %3876 = vmatprep.mubr.f32.mxu0 %v3655_v27  ;;  %3946 = vmatprep.mubr.f32.mxu1 %v3663_v30  ;;  %v3630_v27 = vld [vmem:[#allocation11 + $0x3f8] sm:$0xff]  ;;  %v4605_v30 = vpack.c.bf16 %v3580_v11, %v3579_v46  ;;  %v3651_v10 = vrot.slane %v6480_v55, %v6133_v48  ;;  %v3659_v53 = vrot.slane %v6480_v55, %v6139_v54  ;;  %v3952_v54 = vld [vmem:[%s6567_s11] sm:$0x1] }
 0x458   : > { %4584 = vmatprep.subr.bf16.mxu0 %v4583_v21  ;;  %4616 = vmatprep.subr.bf16.mxu1 %v4615_v49  ;;  %v3611_v21 = vld [vmem:[#allocation11 + $0x360] sm:$0xff]  ;;  %v3612_v49 = vld [vmem:[#allocation11 + $0x368] sm:$0xff]  ;;  %v4639_v22 = vpack.c.bf16 %v3630_v27, %v3629_v61 }
 0x45a   : > { %4586 = vmatpush3.bf16.msra.mxu0 %v4585_v34  ;;  %4618 = vmatpush3.bf16.msra.mxu1 %v4617_v42  ;;  %v4637_v34 = vpack.c.bf16 %v3612_v49, %v3611_v21  ;;  %v3581_v42 = vld [vmem:[#allocation11 + $0x270] sm:$0xff] }
 0x45b   : > { %4588 = vmatprep.subr.bf16.mxu0 %v4587_v24  ;;  %4620 = vmatprep.subr.bf16.mxu1 %v4619_v25  ;;  %v3582_v24 = vld [vmem:[#allocation11 + $0x278] sm:$0xff]  ;;  %v3613_v25 = vld [vmem:[#allocation11 + $0x370] sm:$0xff] }
 0x45c   : > { %v4609_v17 = vpack.c.bf16 %v3582_v24, %v3581_v42  ;;  %v4641_v63 = vpack.c.bf16 %v3614_v8, %v3613_v25 }
 0x45e   : > { %4590 = vmatpush3.bf16.msra.mxu0 %v4589_v59  ;;  %4622 = vmatpush3.bf16.msra.mxu1 %v4621_v40 }
 0x45f   : > { %4592 = vmatprep.subr.bf16.mxu0 %v4591_v31  ;;  %4624 = vmatprep.subr.bf16.mxu1 %v4623_v23 }
 0x462   : > { %4594 = vmatpush3.bf16.msra.mxu0 %v4593_v51  ;;  %4626 = vmatpush3.bf16.msra.mxu1 %v4625_v33  ;;  %v3954_v51 = vld [vmem:[%s6601_s17] sm:$0x1] }
 0x463   : > { %4596 = vmatprep.subr.bf16.mxu0 %v4595_v2  ;;  %4628 = vmatprep.subr.bf16.mxu1 %v4627_v57 }
 0x466   : > { %4598 = vmatpush3.bf16.msra.mxu0 %v4597_v4  ;;  %4630 = vmatpush3.bf16.msra.mxu1 %v4629_v43 }
 0x467   : > { %4600 = vmatprep.subr.bf16.mxu0 %v4599_v58  ;;  %4632 = vmatprep.subr.bf16.mxu1 %v4631_v0 }
 0x46a   : > { %4602 = vmatpush3.bf16.msra.mxu0 %v4601_v20  ;;  %4634 = vmatpush3.bf16.msra.mxu1 %v4633_v14 }
 0x46b   : > { %4604 = vmatprep.subr.bf16.mxu0 %v4603_v12  ;;  %4636 = vmatprep.subr.bf16.mxu1 %v4635_v13 }
 0x46e   : > { %4606 = vmatpush3.bf16.msra.mxu0 %v4605_v30  ;;  %4638 = vmatpush3.bf16.msra.mxu1 %v4637_v34 }
 0x46f   : > { %4608 = vmatprep.subr.bf16.mxu0 %v4607_v15  ;;  %4640 = vmatprep.subr.bf16.mxu1 %v4639_v22 }
 0x472   : > { %4610 = vmatpush3.bf16.msra.mxu0 %v4609_v17  ;;  %4642 = vmatpush3.bf16.msra.mxu1 %v4641_v63 }
 0x475   : > { %3877 = vmatmul.mubr.f32.vlgmr.msra.gmra.mrb[162].mxu0 %v3651_v10  ;;  %3947 = vmatmul.mubr.f32.vlgmr.msra.gmra.mrb[162].mxu1 %v3659_v53 }
 0x528   : > { %v4317_v26 = vpop.f32.mrb[160].mxu0  ;;  %v4352_v59 = vpop.f32.mrb[160].mxu1 }
 0x529   : > { %v4318_v40 = vpop.f32.mrb[161].mxu0  ;;  %v4353_v36 = vpop.f32.mrb[161].mxu1 }
 0x52a   : > { %v4319_v38 = vadd.f32 %v4318_v40, %v4317_v26  ;;  %v4354_v31 = vadd.f32 %v4353_v36, %v4352_v59 }
 0x52c   : > { %v3809_v23 = vadd.f32 %v4354_v31, %v4319_v38 }
 0x548   : > { %v4387_v28 = vpop.f32.mrb[162].mxu0  ;;  %v4422_v29 = vpop.f32.mrb[162].mxu1 }
 0x549   : > { %v4388_v41 = vpop.f32.mrb[163].mxu0  ;;  %v4423_v44 = vpop.f32.mrb[163].mxu1 }
 0x54a   : > { %v4389_v32 = vadd.f32 %v4388_v41, %v4387_v28  ;;  %v4424_v48 = vadd.f32 %v4423_v44, %v4422_v29 }
 0x54c   : > { %v3879_v60 = vadd.f32 %v4389_v32, %v3809_v23 }
 0x54e   : > { %v3949_v55 = vadd.f32 %v4424_v48, %v3879_v60 }
 0x550   : > { %v3953_v33 = vmul.f32 %v3952_v54, %v3949_v55 }
 0x552   : > { %v3955_v5 = vadd.f32 %v3954_v51, %v3953_v33 }
 0x554   : > { %v3956_v35 = vmax.f32 %v3955_v5, 0.0 }
 0x556   : > { %3957 = vst [vmem:[%s520_s12] sm:$0x1] %v3956_v35 }
 0x557   : > { %4912 = shalt.err (!%p4909_p6)
}
 0x558   : > { %s4913_s14 = scalar_lea.hbm %s6509_s29, 16  ;;  %s4917_s30 = scalar_lea.hbm %s6602_s19, 32 }
 0x559   : > { %p4914_p7 = scmp.ne.s32.totalorder %s6509_s29, %s4913_s14  ;;  %p4918_p0 = scmp.lt.u32.totalorder %s6509_s29, %s6602_s19 }
 0x55a   : > { %p4919_p2 = scmp.lt.u32.totalorder %s4917_s30, %s4913_s14  ;;  %p4921_p1 = scmp.lt.u32.totalorder %s4913_s14, %s6509_s29 }
 0x55b   : > { %p4915_p9 = pnand %p4914_p7, %p6603_p4 }
 0x55c   : > { %p4920_p13 = por %p4919_p2, %p4918_p0 }
 0x55d   : > { %p4916_p12 = pneg %p4915_p9 }
 0x55e   : > { %p4922_p8 = por %p4921_p1, %p4920_p13 }
 0x560   : > { %p4923_p10 = pnand %p4922_p8, %p4916_p12 }
 0x562   : > { %4926 = shalt.err (!%p4923_p10)
}
 0x563   : > { %4663 = dma.vmem_to_hbm [thread:$0]  (%p6603_p4), %s6511_s20, 16, %s6509_s29, %s3959_s27  }
 0x564 PF: > { %s6604_s24 = sld [smem:[#allocation20_spill]]  ;;  %s6605_s12 = sld [smem:[#allocation17_spill]] }
 0x565   : > { %s6606_s23 = sld [smem:[#allocation22_spill]] }
 0x56a   : > { %p4695_p11 = scmp.ge.s32.totalorder %s6604_s24, 2  ;;  %s3983_s25 = sand.u32 1, %s6605_s12  }
 0x56b   : > { %p6607_p3 = scmp.ne.s32.totalorder %s6606_s23, 0  ;;  %s3984_s15 = scalar_lea.sflag [#allocation5], %s3983_s25 }
 0x56d   : > { %p4682_p5 = pnand %p4695_p11, %p6607_p3 }
 0x56f   : > { %4964 = dma.done.wait (!%p4682_p5), %s3984_s15, 16  }
 0x570   : > { %4966 = vsyncadd (!%p4682_p5), %s3984_s15, 4294967280  ;;  %s29_s30 = sadd.s32 1, %s6604_s24   ;;  %s6608_s28 = sld [smem:[#allocation18_spill]] }
 0x571   : > { %p26_p6 = scmp.ge.s32.totalorder %s29_s30, 4   ;;  %s6609_s27 = sld [smem:[#allocation23_spill]] }
 0x572   : > { %s6610_s18 = sld [smem:[#allocation19_spill]]  ;;  %s6611_s29 = sld [smem:[#allocation21_spill]] }
 0x573   : > { %s6612_s25 = smov %s4973_s26  ;;  %28 = sbr.rel (!%p26_p6) target bundleno = 11 (0xb), region = 136 }
 0x576   : > { %s6613_s26 = smov %s6608_s28 }
 0x578   : > { %s6614_s28 = smov %s6610_s18 }
 0x57a   :  { %3988 = vsyncpa [#allocation4], 1 }
 0x57b   :  { %3990 = vsyncpa [#allocation4 + $0x1], 1 }
 0x57c   :  { %3991 = vsyncpa [#allocation7], 1 }
 0x57d   :  { %3992 = vsyncpa [#allocation10], 1 }
 0x57e   :  { %3993 = vsyncpa [#allocation5], 1 }
 0x57f   :  { %3995 = vsyncpa [#allocation5 + $0x1], 1 }

</bundles_post_ra>
